<compile_context>
chip_gen: v6e
topology: v6e:2x2x1
jax: 0.10.0
libtpu: 0.0.40
codegen_flags: <defaults>
</compile_context>

<pallas_src>
import math

import numpy as np
import jax
import jax.numpy as jnp
from jax.experimental import pallas as pl
from jax.experimental.pallas import tpu as pltpu

# ----------------------------- configuration --------------------------------
ENC_LEVELS = 4                          # fourier levels
VIEW_ENC_DIM = 6 * ENC_LEVELS           # 24
FEAT_DIM = 16
APPEAR_DIM = 8
INPUT_BASE_DIM = 6                      # mode == 'idr': points_3D (3) + normals (3)
D_IN = INPUT_BASE_DIM + VIEW_ENC_DIM + FEAT_DIM + APPEAR_DIM   # 54
MERGED_DIM = 3 + 3 + FEAT_DIM + APPEAR_DIM + 3                 # 33 raw f32 per point
HIDDEN = 64
OUT_DIM = 3
DEFAULT_TILE_N = 2048                   # sweepable; VMEM use is a few MiB at this size


def _cdiv(a, b):
    return -(-a // b)


def _round_up(x, m):
    return ((x + m - 1) // m) * m


def _choose_tile(n, tile_n, num_splits=2):
    """128-aligned tile giving an even, near-balanced number of grid steps (v7x has 2 TCs;
    harmless on 1-TC v5e/v6e)."""
    tile_n = max(128, _round_up(tile_n, 128))
    steps = num_splits * max(1, _cdiv(n, num_splits * tile_n))
    return max(128, min(_round_up(_cdiv(n, steps), 128), tile_n))


# ------------------------------ Pallas kernel --------------------------------
def neural_rgb_kernel(xin_ref, wbase_ref, wenc_ref, b02_ref, fp_ref,
                      whid_ref, b13_ref, w4t_ref, b4t_ref, out_ref):
    """Fused NeuralRGB forward for one tile of points.

    MLPwithSkipConnection(layer_dims=[54, 64, 64, 64, 64, 3], skip=[2]) + sigmoid, with the
    fourier view encoding computed in-kernel on the VPU/EUP.  xin columns:
    [points 0:3, normals 3:6, feats 6:22, app 22:30, rays 30:33].  out_ref holds the transposed
    rgb tile (3, TN) so stores are lane-dense.
    """
    f32, bf16 = jnp.float32, jnp.bfloat16
    xin = xin_ref[...]                                   # [TN, 33] f32
    tn = xin.shape[0]

    # ---- fourier view encoding, f32 on the VPU/EUP (no MXU) -------------------------------
    # spec[:, c*8 + s*4 + l] = rays[:, c] * 2^l * pi; fp rows 0..2 are per-channel freq rows
    # (zero outside that channel's 8 columns), row 3 holds pi/2 in the cos columns.
    fp = fp_ref[...]                                     # [4, 24] f32
    spec = (jnp.broadcast_to(xin[:, 30:31], (tn, VIEW_ENC_DIM)) * fp[0:1, :]
            + jnp.broadcast_to(xin[:, 31:32], (tn, VIEW_ENC_DIM)) * fp[1:2, :]
            + jnp.broadcast_to(xin[:, 32:33], (tn, VIEW_ENC_DIM)) * fp[2:3, :])
    enc = jnp.sin(spec + fp[3:4, :])                     # [TN, 24] f32

    # ---- layer 0 + skip-layer x-contribution: two lane-dense [*, 128] bf16 matmuls --------
    # wbase rows follow the merged column order (rays rows are zero); columns 0:64 = w0,
    # 64:128 = w2x, so the skip contribution falls out of the same matmuls.
    xw = jnp.dot(xin.astype(bf16), wbase_ref[...], preferred_element_type=f32)
    xw = xw + jnp.dot(enc.astype(bf16), wenc_ref[...], preferred_element_type=f32)
    pre = xw + b02_ref[...]                              # [TN, 128] = [layer0 pre | skip pre]

    h = jnp.maximum(pre[:, :HIDDEN], 0.0)                # layer 0 (relu)
    skip = pre[:, HIDDEN:]                               # x @ w2x + b2 (pre-activation)

    h = jnp.maximum(jnp.dot(h.astype(bf16), whid_ref[0],
                            preferred_element_type=f32) + b13_ref[0:1, :], 0.0)   # layer 1
    h = jnp.maximum(jnp.dot(h.astype(bf16), whid_ref[1],
                            preferred_element_type=f32) + skip, 0.0)              # layer 2 (skip)
    h = jnp.maximum(jnp.dot(h.astype(bf16), whid_ref[2],
                            preferred_element_type=f32) + b13_ref[1:2, :], 0.0)   # layer 3

    # final layer emitted transposed: (3, TN) — lane-dense stores
    logits_t = jax.lax.dot_general(
        w4t_ref[...], h.astype(bf16),
        dimension_numbers=(((1,), (1,)), ((), ())),
        preferred_element_type=f32) + b4t_ref[...]       # [3, TN]
    out_ref[...] = jax.nn.sigmoid(logits_t)


# ------------------------------ parameter packing -----------------------------
def init_params(key):
    """Deterministic init mirroring torch.nn.Linear defaults (U(-1/sqrt(fan_in), ..));
    last-layer bias zeroed as in nerf_util.MLPwithSkipConnection."""
    def linear(k, fan_in, fan_out, zero_bias=False):
        kw, kb = jax.random.split(k)
        bound = 1.0 / math.sqrt(fan_in)
        w = jax.random.uniform(kw, (fan_in, fan_out), jnp.float32, -bound, bound)
        b = (jnp.zeros((1, fan_out), jnp.float32) if zero_bias else
             jax.random.uniform(kb, (1, fan_out), jnp.float32, -bound, bound))
        return w, b

    keys = jax.random.split(key, 5)
    w0, b0 = linear(keys[0], D_IN, HIDDEN)
    w1, b1 = linear(keys[1], HIDDEN, HIDDEN)
    w2, b2 = linear(keys[2], HIDDEN + D_IN, HIDDEN)   # skip layer acts on cat([feat, input])
    w3, b3 = linear(keys[3], HIDDEN, HIDDEN)
    w4, b4 = linear(keys[4], HIDDEN, OUT_DIM, zero_bias=True)
    return (w0, b0, w1, b1, w2, b2, w3, b3, w4, b4)


def pack_params(raw_params):
    """Convert torch-layout MLP params into the packed / permuted / bf16 kernel params."""
    w0, b0, w1, b1, w2, b2, w3, b3, w4, b4 = raw_params
    bf16, f32 = jnp.bfloat16, jnp.float32

    w2h = w2[:HIDDEN]                 # acts on the hidden features
    w2x = w2[HIDDEN:]                 # acts on the re-concatenated MLP input
    wx = jnp.concatenate([w0, w2x], axis=1)           # [D_IN, 128] = [w0 | w2x]

    # MLP-x column layout: [points 0:3, view_enc 3:27, normals 27:30, feats 30:46, app 46:54]
    # merged-input layout: [points 0:3, normals 3:6, feats 6:22, app 22:30, rays 30:33]
    w_base = jnp.concatenate([
        wx[0:3],                                        # points
        wx[3 + VIEW_ENC_DIM:6 + VIEW_ENC_DIM],          # normals
        wx[6 + VIEW_ENC_DIM:6 + VIEW_ENC_DIM + FEAT_DIM],           # feats
        wx[6 + VIEW_ENC_DIM + FEAT_DIM:],               # app
        jnp.zeros((3, 2 * HIDDEN), jnp.float32),        # rays enter only via the encoding
    ], axis=0)                                          # [33, 128]
    w_enc = wx[3:3 + VIEW_ENC_DIM]                      # [24, 128]

    b02 = jnp.concatenate([b0, b2], axis=1).astype(f32)          # [1, 128] = [b0 | b2]

    # freq / phase rows for the in-kernel fourier encoding (torch positional_encoding order:
    # per channel c -> [sin f0..f3, cos f0..f3]).
    fp = np.zeros((4, VIEW_ENC_DIM), np.float32)
    for c in range(3):
        for l in range(ENC_LEVELS):
            f = (2.0 ** l) * math.pi
            fp[c, c * 2 * ENC_LEVELS + l] = f                        # sin column
            fp[c, c * 2 * ENC_LEVELS + ENC_LEVELS + l] = f           # cos column
    fp[3] = np.tile([0.0] * ENC_LEVELS + [math.pi / 2.0] * ENC_LEVELS, 3)   # phase row
    fp = jnp.asarray(fp)

    whid = jnp.stack([w1, w2h, w3], axis=0)             # [3, 64, 64]
    b13 = jnp.concatenate([b1, b3], axis=0).astype(f32)  # [2, 64]

    return (w_base.astype(bf16), w_enc.astype(bf16), b02, fp,
            whid.astype(bf16), b13,
            jnp.transpose(w4).astype(bf16),              # [3, 64]
            jnp.reshape(b4, (OUT_DIM, 1)).astype(f32))   # [3, 1]


# ------------------------------ wrapper ---------------------------------------
def neural_rgb_forward(points_3D, normals, rays_unit, feats, app, kparams,
                       tile_n=DEFAULT_TILE_N):
    """NeuralRGB.forward (mode='idr', fourier view encoding, appearance embedding enabled)."""
    N = points_3D.shape[0]
    f32 = jnp.float32

    # single merged activation stream: [points | normals | feats | app | rays] -> [N, 33] f32
    xin = jnp.concatenate([points_3D, normals, feats, app, rays_unit], axis=-1).astype(f32)

    tn = _choose_tile(N, tile_n)
    grid = (pl.cdiv(N, tn),)

    in_specs = [pl.BlockSpec((tn, MERGED_DIM), lambda i: (i, 0))]
    # Constant-index weight blocks: fetched once, not re-DMA'd across grid steps.
    in_specs += [pl.BlockSpec(p.shape, lambda i, nd=p.ndim: (0,) * nd) for p in kparams]

    out_t = pl.pallas_call(
        neural_rgb_kernel,
        out_shape=jax.ShapeDtypeStruct((OUT_DIM, N), f32),
        grid_spec=pltpu.PrefetchScalarGridSpec(
            num_scalar_prefetch=0,
            grid=grid,
            in_specs=in_specs,
            out_specs=pl.BlockSpec((OUT_DIM, tn), lambda i: (0, i)),
        ),
        compiler_params=pltpu.CompilerParams(
            dimension_semantics=("parallel",),
            vmem_limit_bytes=32 * 1024 * 1024),
    )(xin, *kparams)
    return out_t.T                                          # [N, 3]


# ------------------------------ plain-JAX reference ----------------------------
def positional_encoding(x, num_freq):
    """nerf_util.positional_encoding: per channel c -> [sin(f0 x_c)..sin(fL-1 x_c), cos(...)]"""
    freqs = (2.0 ** jnp.arange(num_freq, dtype=jnp.float32)) * jnp.pi
    spectrum = x[..., None] * freqs                                   # [..., C, L]
    enc = jnp.stack([jnp.sin(spectrum), jnp.cos(spectrum)], axis=-2)  # [..., C, 2, L]
    return enc.reshape(*x.shape[:-1], -1)


def neural_rgb_reference(points_3D, normals, rays_unit, feats, app, raw_params):
    """f32 reference mirroring the PyTorch forward (validates packing/permutation too)."""
    w0, b0, w1, b1, w2, b2, w3, b3, w4, b4 = raw_params
    view_enc = positional_encoding(rays_unit, ENC_LEVELS)
    x = jnp.concatenate([points_3D, view_enc, normals, feats, app], axis=-1)
    h = jax.nn.relu(x @ w0 + b0)
    h = jax.nn.relu(h @ w1 + b1)
    h = jax.nn.relu(jnp.concatenate([h, x], axis=-1) @ w2 + b2)       # skip layer (li == 2)
    h = jax.nn.relu(h @ w3 + b3)
    return jax.nn.sigmoid(h @ w4 + b4)


# --------------------------------- main ----------------------------------------
if __name__ == "__main__":
    key = jax.random.PRNGKey(0)
    kp, kn, kr, kf, ka, kw = jax.random.split(key, 6)

    N = 200   # small, and deliberately not tile-aligned: exercises the ragged-tail masking
    points_3D = jax.random.normal(kp, (N, 3), jnp.float32)
    normals = jax.random.normal(kn, (N, 3), jnp.float32)
    normals = normals / jnp.linalg.norm(normals, axis=-1, keepdims=True)
    rays_unit = jax.random.normal(kr, (N, 3), jnp.float32)
    rays_unit = rays_unit / jnp.linalg.norm(rays_unit, axis=-1, keepdims=True)
    feats = jax.random.normal(kf, (N, FEAT_DIM), jnp.float32)
    app = jax.random.normal(ka, (N, APPEAR_DIM), jnp.float32)

    raw_params = init_params(kw)
    kparams = pack_params(raw_params)

    rgb = neural_rgb_forward(points_3D, normals, rays_unit, feats, app, kparams)
    rgb = jax.block_until_ready(rgb)

    rgb_ref = neural_rgb_reference(points_3D, normals, rays_unit, feats, app, raw_params)
    assert rgb.shape == (N, OUT_DIM)
    assert bool(jnp.all(jnp.isfinite(rgb)))
    max_err = float(jnp.max(jnp.abs(rgb - rgb_ref)))
    # bf16 matmuls with f32 accumulation: expect ~1e-3 deviation vs the f32 reference
    assert max_err < 2e-2, f"mismatch vs reference: {max_err}"
    print("KERNEL_OK")
</pallas_src>

<mosaic_0001>
module attributes {stable_mosaic.version = 11 : i64} {
  func.func @neural_rgb_kernel(%arg0: i32, %arg1: memref<128x33xf32, #tpu.memory_space<vmem>>, %arg2: memref<33x128xbf16, #tpu.memory_space<vmem>>, %arg3: memref<24x128xbf16, #tpu.memory_space<vmem>>, %arg4: memref<1x128xf32, #tpu.memory_space<vmem>>, %arg5: memref<4x24xf32, #tpu.memory_space<vmem>>, %arg6: memref<3x64x64xbf16, #tpu.memory_space<vmem>>, %arg7: memref<2x64xf32, #tpu.memory_space<vmem>>, %arg8: memref<3x64xbf16, #tpu.memory_space<vmem>>, %arg9: memref<3x1xf32, #tpu.memory_space<vmem>>, %arg10: memref<3x128xf32, #tpu.memory_space<vmem>>) attributes {dimension_semantics = [#tpu.dimension_semantics<parallel>], iteration_bounds = array<i64: 2>, scalar_prefetch = 0 : i64, scratch_operands = 0 : i64, tpu.core_type = #tpu.core_type<tc>, window_params = [{transform_indices = @transform_0, window_bounds = array<i64: 128, 33>}, {pipeline_mode = #tpu.pipeline_mode<synchronous>, transform_indices = @transform_1, window_bounds = array<i64: 33, 128>}, {pipeline_mode = #tpu.pipeline_mode<synchronous>, transform_indices = @transform_2, window_bounds = array<i64: 24, 128>}, {pipeline_mode = #tpu.pipeline_mode<synchronous>, transform_indices = @transform_3, window_bounds = array<i64: 1, 128>}, {pipeline_mode = #tpu.pipeline_mode<synchronous>, transform_indices = @transform_4, window_bounds = array<i64: 4, 24>}, {pipeline_mode = #tpu.pipeline_mode<synchronous>, transform_indices = @transform_5, window_bounds = array<i64: 3, 64, 64>}, {pipeline_mode = #tpu.pipeline_mode<synchronous>, transform_indices = @transform_6, window_bounds = array<i64: 2, 64>}, {pipeline_mode = #tpu.pipeline_mode<synchronous>, transform_indices = @transform_7, window_bounds = array<i64: 3, 64>}, {pipeline_mode = #tpu.pipeline_mode<synchronous>, transform_indices = @transform_8, window_bounds = array<i64: 3, 1>}, {transform_indices = @transform_9, window_bounds = array<i64: 3, 128>}]} {
    %c0 = arith.constant 0 : index
    %c0_0 = arith.constant 0 : index
    %0 = vector.load %arg1[%c0, %c0_0] : memref<128x33xf32, #tpu.memory_space<vmem>>, vector<128x33xf32>
    %c0_1 = arith.constant 0 : index
    %c0_2 = arith.constant 0 : index
    %1 = vector.load %arg5[%c0_1, %c0_2] : memref<4x24xf32, #tpu.memory_space<vmem>>, vector<4x24xf32>
    %2 = vector.extract_strided_slice %0 {offsets = [0, 30], sizes = [128, 1], strides = [1, 1]} : vector<128x33xf32> to vector<128x1xf32>
    %3 = vector.shape_cast %2 : vector<128x1xf32> to vector<128x1xf32>
    %4 = vector.broadcast %3 : vector<128x1xf32> to vector<128x24xf32>
    %5 = vector.extract_strided_slice %1 {offsets = [0, 0], sizes = [1, 24], strides = [1, 1]} : vector<4x24xf32> to vector<1x24xf32>
    %6 = vector.broadcast %5 : vector<1x24xf32> to vector<128x24xf32>
    %7 = arith.mulf %4, %6 : vector<128x24xf32>
    %8 = vector.extract_strided_slice %0 {offsets = [0, 31], sizes = [128, 1], strides = [1, 1]} : vector<128x33xf32> to vector<128x1xf32>
    %9 = vector.shape_cast %8 : vector<128x1xf32> to vector<128x1xf32>
    %10 = vector.broadcast %9 : vector<128x1xf32> to vector<128x24xf32>
    %11 = vector.extract_strided_slice %1 {offsets = [1, 0], sizes = [1, 24], strides = [1, 1]} : vector<4x24xf32> to vector<1x24xf32>
    %12 = vector.broadcast %11 : vector<1x24xf32> to vector<128x24xf32>
    %13 = arith.mulf %10, %12 : vector<128x24xf32>
    %14 = arith.addf %7, %13 : vector<128x24xf32>
    %15 = vector.extract_strided_slice %0 {offsets = [0, 32], sizes = [128, 1], strides = [1, 1]} : vector<128x33xf32> to vector<128x1xf32>
    %16 = vector.shape_cast %15 : vector<128x1xf32> to vector<128x1xf32>
    %17 = vector.broadcast %16 : vector<128x1xf32> to vector<128x24xf32>
    %18 = vector.extract_strided_slice %1 {offsets = [2, 0], sizes = [1, 24], strides = [1, 1]} : vector<4x24xf32> to vector<1x24xf32>
    %19 = vector.broadcast %18 : vector<1x24xf32> to vector<128x24xf32>
    %20 = arith.mulf %17, %19 : vector<128x24xf32>
    %21 = arith.addf %14, %20 : vector<128x24xf32>
    %22 = vector.extract_strided_slice %1 {offsets = [3, 0], sizes = [1, 24], strides = [1, 1]} : vector<4x24xf32> to vector<1x24xf32>
    %23 = vector.broadcast %22 : vector<1x24xf32> to vector<128x24xf32>
    %24 = arith.addf %21, %23 : vector<128x24xf32>
    %25 = math.sin %24 : vector<128x24xf32>
    %26 = arith.truncf %0 : vector<128x33xf32> to vector<128x33xbf16>
    %c0_3 = arith.constant 0 : index
    %c0_4 = arith.constant 0 : index
    %27 = vector.load %arg2[%c0_3, %c0_4] : memref<33x128xbf16, #tpu.memory_space<vmem>>, vector<33x128xbf16>
    %cst = arith.constant dense<0.000000e+00> : vector<128x128xf32>
    %28 = tpu.matmul %26, %27, %cst {dimension_numbers = #tpu.dot_dimension_numbers<[1], [0], [0], [1], [0, 0, 1, 1], [], []>} : vector<128x33xbf16>, vector<33x128xbf16>, vector<128x128xf32> -> vector<128x128xf32>
    %29 = arith.truncf %25 : vector<128x24xf32> to vector<128x24xbf16>
    %c0_5 = arith.constant 0 : index
    %c0_6 = arith.constant 0 : index
    %30 = vector.load %arg3[%c0_5, %c0_6] : memref<24x128xbf16, #tpu.memory_space<vmem>>, vector<24x128xbf16>
    %cst_7 = arith.constant dense<0.000000e+00> : vector<128x128xf32>
    %31 = tpu.matmul %29, %30, %cst_7 {dimension_numbers = #tpu.dot_dimension_numbers<[1], [0], [0], [1], [0, 0, 1, 1], [], []>} : vector<128x24xbf16>, vector<24x128xbf16>, vector<128x128xf32> -> vector<128x128xf32>
    %32 = arith.addf %28, %31 : vector<128x128xf32>
    %c0_8 = arith.constant 0 : index
    %c0_9 = arith.constant 0 : index
    %33 = vector.load %arg4[%c0_8, %c0_9] : memref<1x128xf32, #tpu.memory_space<vmem>>, vector<1x128xf32>
    %34 = vector.broadcast %33 : vector<1x128xf32> to vector<128x128xf32>
    %35 = arith.addf %32, %34 : vector<128x128xf32>
    %36 = vector.extract_strided_slice %35 {offsets = [0, 0], sizes = [128, 64], strides = [1, 1]} : vector<128x128xf32> to vector<128x64xf32>
    %cst_10 = arith.constant 0.000000e+00 : f32
    %37 = vector.broadcast %cst_10 : f32 to vector<128x64xf32>
    %38 = arith.maximumf %36, %37 : vector<128x64xf32>
    %39 = vector.extract_strided_slice %35 {offsets = [0, 64], sizes = [128, 64], strides = [1, 1]} : vector<128x128xf32> to vector<128x64xf32>
    %40 = arith.truncf %38 : vector<128x64xf32> to vector<128x64xbf16>
    %c0_11 = arith.constant 0 : index
    %c0_12 = arith.constant 0 : index
    %c0_13 = arith.constant 0 : index
    %41 = vector.load %arg6[%c0_11, %c0_12, %c0_13] : memref<3x64x64xbf16, #tpu.memory_space<vmem>>, vector<1x64x64xbf16>
    %42 = vector.shape_cast %41 : vector<1x64x64xbf16> to vector<64x64xbf16>
    %cst_14 = arith.constant dense<0.000000e+00> : vector<128x64xf32>
    %43 = tpu.matmul %40, %42, %cst_14 {dimension_numbers = #tpu.dot_dimension_numbers<[1], [0], [0], [1], [0, 0, 1, 1], [], []>} : vector<128x64xbf16>, vector<64x64xbf16>, vector<128x64xf32> -> vector<128x64xf32>
    %c0_15 = arith.constant 0 : index
    %c0_16 = arith.constant 0 : index
    %44 = vector.load %arg7[%c0_15, %c0_16] : memref<2x64xf32, #tpu.memory_space<vmem>>, vector<1x64xf32>
    %45 = vector.broadcast %44 : vector<1x64xf32> to vector<128x64xf32>
    %46 = arith.addf %43, %45 : vector<128x64xf32>
    %cst_17 = arith.constant 0.000000e+00 : f32
    %47 = vector.broadcast %cst_17 : f32 to vector<128x64xf32>
    %48 = arith.maximumf %46, %47 : vector<128x64xf32>
    %49 = arith.truncf %48 : vector<128x64xf32> to vector<128x64xbf16>
    %c1 = arith.constant 1 : index
    %c0_18 = arith.constant 0 : index
    %c0_19 = arith.constant 0 : index
    %50 = vector.load %arg6[%c1, %c0_18, %c0_19] : memref<3x64x64xbf16, #tpu.memory_space<vmem>>, vector<1x64x64xbf16>
    %51 = vector.shape_cast %50 : vector<1x64x64xbf16> to vector<64x64xbf16>
    %cst_20 = arith.constant dense<0.000000e+00> : vector<128x64xf32>
    %52 = tpu.matmul %49, %51, %cst_20 {dimension_numbers = #tpu.dot_dimension_numbers<[1], [0], [0], [1], [0, 0, 1, 1], [], []>} : vector<128x64xbf16>, vector<64x64xbf16>, vector<128x64xf32> -> vector<128x64xf32>
    %53 = arith.addf %52, %39 : vector<128x64xf32>
    %cst_21 = arith.constant 0.000000e+00 : f32
    %54 = vector.broadcast %cst_21 : f32 to vector<128x64xf32>
    %55 = arith.maximumf %53, %54 : vector<128x64xf32>
    %56 = arith.truncf %55 : vector<128x64xf32> to vector<128x64xbf16>
    %c2 = arith.constant 2 : index
    %c0_22 = arith.constant 0 : index
    %c0_23 = arith.constant 0 : index
    %57 = vector.load %arg6[%c2, %c0_22, %c0_23] : memref<3x64x64xbf16, #tpu.memory_space<vmem>>, vector<1x64x64xbf16>
    %58 = vector.shape_cast %57 : vector<1x64x64xbf16> to vector<64x64xbf16>
    %cst_24 = arith.constant dense<0.000000e+00> : vector<128x64xf32>
    %59 = tpu.matmul %56, %58, %cst_24 {dimension_numbers = #tpu.dot_dimension_numbers<[1], [0], [0], [1], [0, 0, 1, 1], [], []>} : vector<128x64xbf16>, vector<64x64xbf16>, vector<128x64xf32> -> vector<128x64xf32>
    %c1_25 = arith.constant 1 : index
    %c0_26 = arith.constant 0 : index
    %60 = vector.load %arg7[%c1_25, %c0_26] : memref<2x64xf32, #tpu.memory_space<vmem>>, vector<1x64xf32>
    %61 = vector.broadcast %60 : vector<1x64xf32> to vector<128x64xf32>
    %62 = arith.addf %59, %61 : vector<128x64xf32>
    %cst_27 = arith.constant 0.000000e+00 : f32
    %63 = vector.broadcast %cst_27 : f32 to vector<128x64xf32>
    %64 = arith.maximumf %62, %63 : vector<128x64xf32>
    %c0_28 = arith.constant 0 : index
    %c0_29 = arith.constant 0 : index
    %65 = vector.load %arg8[%c0_28, %c0_29] : memref<3x64xbf16, #tpu.memory_space<vmem>>, vector<3x64xbf16>
    %66 = arith.truncf %64 : vector<128x64xf32> to vector<128x64xbf16>
    %cst_30 = arith.constant dense<0.000000e+00> : vector<3x128xf32>
    %67 = tpu.matmul %65, %66, %cst_30 {dimension_numbers = #tpu.dot_dimension_numbers<[1], [1], [0], [0], [0, 0, 1, 0], [], []>} : vector<3x64xbf16>, vector<128x64xbf16>, vector<3x128xf32> -> vector<3x128xf32>
    %c0_31 = arith.constant 0 : index
    %c0_32 = arith.constant 0 : index
    %68 = vector.load %arg9[%c0_31, %c0_32] : memref<3x1xf32, #tpu.memory_space<vmem>>, vector<3x1xf32>
    %69 = vector.broadcast %68 : vector<3x1xf32> to vector<3x128xf32>
    %70 = arith.addf %67, %69 : vector<3x128xf32>
    %71 = arith.negf %70 : vector<3x128xf32>
    %72 = math.exp %71 : vector<3x128xf32>
    %cst_33 = arith.constant 1.000000e+00 : f32
    %73 = vector.broadcast %cst_33 : f32 to vector<3x128xf32>
    %74 = arith.addf %73, %72 : vector<3x128xf32>
    %75 = arith.divf %73, %74 : vector<3x128xf32>
    %c0_34 = arith.constant 0 : index
    %c0_35 = arith.constant 0 : index
    %76 = vector.load %arg10[%c0_34, %c0_35] : memref<3x128xf32, #tpu.memory_space<vmem>>, vector<3x128xf32>
    tpu.vector_store %arg10[%c0_34, %c0_35], %75 {strides = array<i32>} : memref<3x128xf32, #tpu.memory_space<vmem>>, vector<3x128xf32>,
    return
  }
  func.func @transform_0(%arg0: i32) -> (i32, i32) {
    %c0_i32 = arith.constant 0 : i32
    %c0_i32_0 = arith.constant 0 : i32
    return %arg0, %c0_i32 : i32, i32
  }
  func.func @transform_1(%arg0: i32) -> (i32, i32) {
    %c0_i32 = arith.constant 0 : i32
    %c0_i32_0 = arith.constant 0 : i32
    %c0_i32_1 = arith.constant 0 : i32
    return %c0_i32, %c0_i32_0 : i32, i32
  }
  func.func @transform_2(%arg0: i32) -> (i32, i32) {
    %c0_i32 = arith.constant 0 : i32
    %c0_i32_0 = arith.constant 0 : i32
    %c0_i32_1 = arith.constant 0 : i32
    return %c0_i32, %c0_i32_0 : i32, i32
  }
  func.func @transform_3(%arg0: i32) -> (i32, i32) {
    %c0_i32 = arith.constant 0 : i32
    %c0_i32_0 = arith.constant 0 : i32
    %c0_i32_1 = arith.constant 0 : i32
    return %c0_i32, %c0_i32_0 : i32, i32
  }
  func.func @transform_4(%arg0: i32) -> (i32, i32) {
    %c0_i32 = arith.constant 0 : i32
    %c0_i32_0 = arith.constant 0 : i32
    %c0_i32_1 = arith.constant 0 : i32
    return %c0_i32, %c0_i32_0 : i32, i32
  }
  func.func @transform_5(%arg0: i32) -> (i32, i32, i32) {
    %c0_i32 = arith.constant 0 : i32
    %c0_i32_0 = arith.constant 0 : i32
    %c0_i32_1 = arith.constant 0 : i32
    %c0_i32_2 = arith.constant 0 : i32
    return %c0_i32, %c0_i32_0, %c0_i32_1 : i32, i32, i32
  }
  func.func @transform_6(%arg0: i32) -> (i32, i32) {
    %c0_i32 = arith.constant 0 : i32
    %c0_i32_0 = arith.constant 0 : i32
    %c0_i32_1 = arith.constant 0 : i32
    return %c0_i32, %c0_i32_0 : i32, i32
  }
  func.func @transform_7(%arg0: i32) -> (i32, i32) {
    %c0_i32 = arith.constant 0 : i32
    %c0_i32_0 = arith.constant 0 : i32
    %c0_i32_1 = arith.constant 0 : i32
    return %c0_i32, %c0_i32_0 : i32, i32
  }
  func.func @transform_8(%arg0: i32) -> (i32, i32) {
    %c0_i32 = arith.constant 0 : i32
    %c0_i32_0 = arith.constant 0 : i32
    %c0_i32_1 = arith.constant 0 : i32
    return %c0_i32, %c0_i32_0 : i32, i32
  }
  func.func @transform_9(%arg0: i32) -> (i32, i32) {
    %c0_i32 = arith.constant 0 : i32
    %c0_i32_0 = arith.constant 0 : i32
    return %c0_i32, %arg0 : i32, i32
  }
}

</mosaic_0001>

<bundles_post_ra>
// kernel: tpu_custom_call.1
= control target key start
LH: loop header
LB: loop body
LE: loop exit
PB: predicated region body
PF: predicated region fallthrough
CT: control target
= control target key end

     0   :  { %14 = vsyncpa [#allocation3], 0  ;;  %s6206_s0 = inlined_call_operand.vmem [shape: f32[200,33], index: 0, kind: input, shape index: {}]   ;;  %s6207_s1 = inlined_call_operand.vmem [shape: bf16[33,128], index: 1, kind: input, shape index: {}]   ;;  %s6208_s2 = inlined_call_operand.vmem [shape: bf16[24,128], index: 2, kind: input, shape index: {}]   ;;  %s6209_s3 = inlined_call_operand.vmem [shape: f32[1,128], index: 3, kind: input, shape index: {}]   ;;  %s6210_s4 = inlined_call_operand.vmem [shape: f32[4,24], index: 4, kind: input, shape index: {}]   ;;  %s6211_s5 = inlined_call_operand.vmem [shape: bf16[3,64,64], index: 5, kind: input, shape index: {}]   ;;  %s6212_s6 = inlined_call_operand.vmem [shape: f32[2,64], index: 6, kind: input, shape index: {}]   ;;  %s6213_s7 = inlined_call_operand.vmem [shape: bf16[3,64], index: 7, kind: input, shape index: {}]   ;;  %s6214_s8 = inlined_call_operand.vmem [shape: f32[3,1], index: 8, kind: input, shape index: {}]   ;;  %s6215_s9 = inlined_call_operand.hbm [shape: f32[3,200], index: 9, kind: output, shape index: {}]  }
   0x1   :  { %16 = vsyncpa [#allocation3 + $0x1], 0  ;;  %s4188_s30 = smov 0   ;;  %s4190_s10 = smov 0  }
   0x2   :  { %s4192_s11 = smov 0   ;;  %s4194_s12 = smov 0  }
   0x3 LB: > { %s4209_s13 = sadd.s32 4294967295, %s4122_s12   ;;  %s3466_s14 = sadd.s32 4294967294, %s4122_s12   ;;  %s4122_s12 = sphi %s4194_s12, %s6482_s12   ;;  %s4118_s11 = sphi %s4192_s11, %s6481_s11   ;;  %s4114_s10 = sphi %s4190_s10, %s6480_s10   ;;  %s4110_s30 = sphi %s4188_s30, %s6479_s30  }
   0x4   : > { %s4213_s15 = sadd.s32 1, %s4122_s12   ;;  %s223_s16 = sadd.s32 1, %s4118_s11 }
   0x5   : > { %s220_s17 = ssub.s32 %s4122_s12, %s4213_s15  ;;  %p233_p0 = scmp.ne.s32.totalorder %s4118_s11, %s4114_s10 }
   0x6   : > { %p221_p1 = scmp.eq.s32.totalorder %s220_s17, 0  ;;  %p234_p2 = scmp.eq.s32.totalorder %s4209_s13, 1 }
   0x7   : > { %p239_p3 = scmp.ne.s32.totalorder %s4114_s10, %s4110_s30  ;;  %p240_p4 = scmp.eq.s32.totalorder %s3466_s14, 1 }
   0x8   : > { %s4224_s18 = scalar_select %p221_p1, %s4118_s11, %s223_s16  }
   0x9   : > { %p4226_p5 = por %p234_p2, %p233_p0  ;;  %p4230_p6 = por %p240_p4, %p239_p3 }
   0xa   : > { %p3469_p7 = scmp.ge.s32.totalorder %s4122_s12, 1  ;;  %p299_p8 = scmp.lt.s32.totalorder %s4122_s12, 3 }
   0xc   : > { %p300_p9 = pnand %p3469_p7, %p299_p8 }
   0xe   : > { %303 = sbr.rel (%p300_p9) target bundleno = 1752 (0x6d8), region = 56 }
  0x13   : > { %s3471_s21 = sshll.u32 %s4209_s13, 4  ;;  %v4124_v0 = vmov 32   ;;  %v4125_v1 = vmov 31   ;;  %v4126_v8 = vmov 30   ;;  %v451_v25 = vlaneseq  ;;  %v370_v32 = vld [vmem:[%s6210_s4] sm:$0xf] }
  0x14   : > { %3940 = vset.pattern.permute.xlu0 %v4124_v0  ;;  %3936 = vset.pattern.permute.xlu1 %v4125_v1  ;;  %p344_p10 = scmp.lt.s32.totalorder %s3471_s21, 24  ;;  %s4134_s24 = smov 64  }
  0x15   : > { %v452_v27 = vshrl.u32 %v451_v25, 7  ;;  %s336_s26 = sand.u32 1, %s4114_s10   ;;  %s3616_s27 = sshll.u32 %s4209_s13, 6 }
  0x16   : > { %s6484_s21 = smov (!%p344_p10, %s3471_s21), 24  ;;  %s6171_s17 = scalar_lea.hbm %s6215_s9, %s3616_s27 }
  0x17   : > { %s3472_s22 = sshll.u32 %s6484_s21, 3  ;;  %v537_v30 = vsub.s32 1, %v452_v27  ;;  %v453_v31 = vsub.s32 0, %v452_v27  ;;  %v637_v34 = vsub.s32 2, %v452_v27  ;;  %v673_v44 = vsub.s32 3, %v452_v27  ;;  %s3394_s21 = scalar_lea.sflag [#allocation3], %s336_s26 }
  0x18   : > { %s4242_s25 = scalar_lea.vmem %s6206_s0, %s3472_s22  ;;  %s4137_s23 = smov [#allocation2]  }
  0x19   : > { %v355_v2 = vld [vmem:[%s4242_s25 + $0x8] sm:$0xff]  ;;  %v354_v3 = vld [vmem:[%s4242_s25] sm:$0xff]  ;;  %v361_v5 = vld [vmem:[%s4242_s25 + $0x38] sm:$0xff]  ;;  %v4288_v36 = vrot.slane %v370_v32, %v537_v30  ;;  %v4290_v37 = vrot.slane %v370_v32, %v453_v31  ;;  %v4295_v40 = vrot.slane %v370_v32, %v637_v34  ;;  %v4302_v52 = vrot.slane %v370_v32, %v673_v44 }
  0x1a   : > { %576 = vperm.xlu0 %3940, %v355_v2   ;;  %472 = vperm.xlu1 %3936, %v354_v3   ;;  %v358_v4 = vld [vmem:[%s4242_s25 + $0x20] sm:$0xff]  ;;  %v357_v6 = vld [vmem:[%s4242_s25 + $0x18] sm:$0xff]  ;;  %v363_v7 = vld [vmem:[%s4242_s25 + $0x48] sm:$0xff]  ;;  %v6232_v30 = vmov 2475754826  }
  0x1b   : > { %v356_v9 = vld [vmem:[%s4242_s25 + $0x10] sm:$0xff]  ;;  %v359_v10 = vld [vmem:[%s4242_s25 + $0x28] sm:$0xff]  ;;  %v366_v12 = vld [vmem:[%s4242_s25 + $0x60] sm:$0xff]  ;;  %v6238_v32 = vmov 2131351028  }
  0x1c   : > { %v364_v11 = vld [vmem:[%s4242_s25 + $0x50] sm:$0xff]  ;;  %v367_v14 = vld [vmem:[%s4242_s25 + $0x68] sm:$0xff]  ;;  %v362_v15 = vld [vmem:[%s4242_s25 + $0x40] sm:$0xff] }
  0x1d   : > { %v360_v13 = vld [vmem:[%s4242_s25 + $0x30] sm:$0xff]  ;;  %v369_v17 = vld [vmem:[%s4242_s25 + $0x78] sm:$0xff] }
  0x1e   : > { %588 = vperm.xlu0 %3940, %v358_v4   ;;  %476 = vperm.xlu1 %3936, %v355_v2   ;;  %v368_v16 = vld [vmem:[%s4242_s25 + $0x70] sm:$0xff]  ;;  %v365_v18 = vld [vmem:[%s4242_s25 + $0x58] sm:$0xff] }
  0x22   : > { %600 = vperm.xlu0 %3940, %v361_v5   ;;  %3937 = vset.pattern.permute.xlu1 %v4126_v8 }
  0x23   : > { %388 = vperm.xlu1 %3937, %v357_v6  }
  0x26   : > { %608 = vperm.xlu0 %3940, %v363_v7  }
  0x27   : > { %3938 = vset.pattern.permute.xlu1 %v4125_v1 }
  0x28   : > { %484 = vperm.xlu1 %3938, %v357_v6  }
  0x2a   : > { %3951 = vset.pattern.permute.xlu0 %v4126_v8 }
  0x2b   : > { %373 = vperm.xlu0 %3951, %v354_v3  }
  0x2c   : > { %3939 = vset.pattern.permute.xlu1 %v4124_v0 }
  0x2d   : > { %572 = vperm.xlu1 %3939, %v354_v3  }
  0x2f   : > { %378 = vperm.xlu0 %3951, %v355_v2  }
  0x31   : > { %580 = vperm.xlu1 %3939, %v356_v9  }
  0x33   : > { %383 = vperm.xlu0 %3951, %v356_v9  }
  0x35   : > { %584 = vperm.xlu1 %3939, %v357_v6  }
  0x37   : > { %393 = vperm.xlu0 %3951, %v358_v4  }
  0x39   : > { %3941 = vset.pattern.permute.xlu1 %v4126_v8 }
  0x3a   : > { %398 = vperm.xlu1 %3941, %v359_v10  }
  0x3b   : > { %418 = vperm.xlu0 %3951, %v363_v7  }
  0x3e   : > { %3942 = vset.pattern.permute.xlu1 %v4125_v1 }
  0x3f   : > { %423 = vperm.xlu0 %3951, %v364_v11   ;;  %488 = vperm.xlu1 %3942, %v358_v4  }
  0x43   : > { %433 = vperm.xlu0 %3951, %v366_v12   ;;  %3943 = vset.pattern.permute.xlu1 %v4126_v8 }
  0x44   : > { %403 = vperm.xlu1 %3943, %v360_v13  }
  0x47   : > { %3952 = vset.pattern.permute.xlu0 %v4125_v1 }
  0x48   : > { %480 = vperm.xlu0 %3952, %v356_v9   ;;  %408 = vperm.xlu1 %3943, %v361_v5  }
  0x4c   : > { %492 = vperm.xlu0 %3952, %v359_v10   ;;  %3944 = vset.pattern.permute.xlu1 %v4125_v1 }
  0x4d   : > { %500 = vperm.xlu1 %3944, %v361_v5  }
  0x50   : > { %496 = vperm.xlu0 %3952, %v360_v13  }
  0x51   : > { %3945 = vset.pattern.permute.xlu1 %v4124_v0 }
  0x52   : > { %592 = vperm.xlu1 %3945, %v359_v10  }
  0x54   : > { %512 = vperm.xlu0 %3952, %v364_v11  }
  0x56   : > { %596 = vperm.xlu1 %3945, %v360_v13  }
  0x58   : > { %524 = vperm.xlu0 %3952, %v367_v14  }
  0x5a   : > { %3946 = vset.pattern.permute.xlu1 %v4126_v8 }
  0x5b   : > { %413 = vperm.xlu1 %3946, %v362_v15  }
  0x5c   : > { %528 = vperm.xlu0 %3952, %v368_v16  }
  0x5f   : > { %3947 = vset.pattern.permute.xlu1 %v4125_v1 }
  0x60   : > { %504 = vperm.xlu1 %3947, %v362_v15   ;;  %3957 = vset.pattern.permute.xlu0 %v4124_v0 }
  0x61   : > { %620 = vperm.xlu0 %3957, %v366_v12  }
  0x64   : > { %508 = vperm.xlu1 %3947, %v363_v7  }
  0x65   : > { %632 = vperm.xlu0 %3957, %v369_v17  }
  0x68   : > { %3948 = vset.pattern.permute.xlu1 %v4126_v8 }
  0x69   : > { %428 = vperm.xlu1 %3948, %v365_v18  }
  0x6d   : > { %3949 = vset.pattern.permute.xlu1 %v4125_v1 }
  0x6e   : > { %516 = vperm.xlu1 %3949, %v365_v18  }
  0x72   : > { %3950 = vset.pattern.permute.xlu1 %v4124_v0 }
  0x73   : > { %604 = vperm.xlu1 %3950, %v362_v15  }
  0x77   : > { %612 = vperm.xlu1 %3950, %v364_v11  }
  0x7b   : > { %616 = vperm.xlu1 %3950, %v365_v18  }
  0x7f   : > { %3953 = vset.pattern.permute.xlu1 %v4126_v8 }
  0x80   : > { %438 = vperm.xlu1 %3953, %v367_v14  }
  0x84   : > { %3954 = vset.pattern.permute.xlu1 %v4125_v1 }
  0x85   : > { %520 = vperm.xlu1 %3954, %v366_v12  }
  0x89   : > { %3955 = vset.pattern.permute.xlu1 %v4126_v8 }
  0x8a   : > { %443 = vperm.xlu1 %3955, %v368_v16  }
  0x8e   : > { %448 = vperm.xlu1 %3955, %v369_v17  }
  0x92   : > { %3956 = vset.pattern.permute.xlu1 %v4125_v1 }
  0x93   : > { %532 = vperm.xlu1 %3956, %v369_v17  }
  0x95   : > { %v473_v19 = vpop.permute.xlu1 %472  ;;  %v577_v20 = vpop.permute.xlu0 %576 }
  0x96   : > { %v539_v45 = vmul.f32 %v4288_v36, %v473_v19  ;;  %v640_v62 = vmul.f32 %v4295_v40, %v577_v20 }
  0x97   : > { %3958 = vset.pattern.permute.xlu1 %v4124_v0 }
  0x98   : > { %624 = vperm.xlu1 %3958, %v367_v14  }
  0x99   : > { %v477_v21 = vpop.permute.xlu1 %476  ;;  %v589_v22 = vpop.permute.xlu0 %588 }
  0x9a   : > { %v540_v60 = vmul.f32 %v4288_v36, %v477_v21  ;;  %v643_v3 = vmul.f32 %v4295_v40, %v589_v22 }
  0x9c   : > { %628 = vperm.xlu1 %3958, %v368_v16  }
  0x9d   : > { %v4281_v23 = vpop.permute.xlu0 %600 }
  0x9e   : > { %v389_v24 = vpop.permute.xlu1 %388 }
  0x9f   : > { %v458_v43 = vmul.f32 %v4290_v37, %v389_v24 }
  0xa1   : > { %v4283_v26 = vpop.permute.xlu0 %608 }
  0xa3   : > { %v485_v28 = vpop.permute.xlu1 %484 }
  0xa4   : > { %v542_v39 = vmul.f32 %v4288_v36, %v485_v28  ;;  %v6226_v28 = vmov 683565275  }
  0xa6   : > { %v374_v29 = vpop.permute.xlu0 %373  ;;  %v558_v47 = vadd.f32 %v542_v39, %v458_v43 }
  0xa7   : > { %v455_v41 = vmul.f32 %v4290_v37, %v374_v29 }
  0xa8   : > { %v573_v33 = vpop.permute.xlu1 %572 }
  0xa9   : > { %v555_v49 = vadd.f32 %v539_v45, %v455_v41  ;;  %v639_v50 = vmul.f32 %v4295_v40, %v573_v33  ;;  %v6223_v41 = vmov 920167782  }
  0xaa   : > { %v379_v35 = vpop.permute.xlu0 %378 }
  0xab   : > { %v655_v56 = vadd.f32 %v639_v50, %v555_v49  ;;  %v456_v58 = vmul.f32 %v4290_v37, %v379_v35  ;;  %v6221_v35 = vmov 2102212464   ;;  %v6228_v49 = vmov 1326507024  }
  0xac   : > { %v4292_v38 = vpop.permute.xlu1 %580 }
  0xad   : > { %v4317_v63 = vadd.f32 %v4302_v52, %v655_v56  ;;  %v556_v4 = vadd.f32 %v540_v60, %v456_v58 }
  0xae   : > { %v384_v42 = vpop.permute.xlu0 %383 }
  0xaf   : > { %6312 = vst [vmem:[#allocation6_spill] sm:$0xff] %v4317_v63  ;;  %v694_v9 = vand.u32 2139095040, %v4317_v63  ;;  %v656_v11 = vadd.f32 %v640_v62, %v556_v4  ;;  %v457_v18 = vmul.f32 %v4290_v37, %v384_v42 }
  0xb0   : > { %v585_v46 = vpop.permute.xlu1 %584 }
  0xb1   : > { %v642_v48 = vmul.f32 %v4295_v40, %v585_v46  ;;  %v4332_v17 = vshrl.u32 %v694_v9, 23  ;;  %v4336_v21 = vadd.f32 %v4302_v52, %v656_v11 }
  0xb2   : > { %v394_v51 = vpop.permute.xlu0 %393 }
  0xb3   : > { %v658_v53 = vadd.f32 %v642_v48, %v558_v47  ;;  %v459_v61 = vmul.f32 %v4290_v37, %v394_v51  ;;  %6313 = vst [vmem:[#allocation7_spill] sm:$0xff] %v4336_v21 }
  0xb5   : > { %v4305_v54 = vadd.f32 %v4302_v52, %v658_v53  ;;  %v4307_v55 = vpop.permute.xlu1 %398 }
  0xb6   : > { %v4309_v57 = vpop.permute.xlu0 %418 }
  0xb7   : > { %6311 = vst [vmem:[#allocation5_spill] sm:$0xff] %v4305_v54  ;;  %v1006_v59 = vand.u32 2139095040, %v4305_v54  ;;  %v6220_v5 = vand.u32 2147483647, %v4305_v54 }
  0xb9   : > { %v1007_v0 = vshrl.u32 %v1006_v59, 23  ;;  %v1010_v12 = vand.u32 8388607, %v6220_v5 }
  0xba   : > { %v489_v1 = vpop.permute.xlu1 %488  ;;  %v4319_v2 = vpop.permute.xlu0 %423 }
  0xbb   : > { %v543_v6 = vmul.f32 %v4288_v36, %v489_v1  ;;  %v3485_v7 = vadd.s32 4294967169, %v1007_v0  ;;  %v1011_v22 = vor.u32 8388608, %v1010_v12 }
  0xbd   : > { %v559_v8 = vadd.f32 %v543_v6, %v459_v61  ;;  %v1013_v10 = vadd.s32 1, %v3485_v7 }
  0xbe   : > { %v4327_v14 = vpop.permute.xlu0 %433 }
  0xbf   : > { %v659_v13 = vadd.f32 %v643_v3, %v559_v8  ;;  %vm1014_vm0 = vcmp.gt.s32.totalorder %v1013_v10, 0  ;;  %v4343_v34 = vpop.permute.xlu1 %403 }
  0xc0   : > { %v1015_v15 = vsel %vm1014_vm0, %v1013_v10, 0 }
  0xc1   : > { %v4330_v16 = vadd.f32 %v4302_v52, %v659_v13  ;;  %v1016_v19 = vshrl.u32 %v1015_v15, 5  ;;  %v1017_v20 = vand.u32 31, %v1015_v15  ;;  %v1051_v15 = vshll.u32 %v1011_v22, 8 }
  0xc3   : > { %v6217_v24 = vand.u32 2147483647, %v4330_v16  ;;  %v1110_v25 = vand.u32 2139095040, %v4330_v16  ;;  %v1018_v27 = vsub.s32 32, %v1017_v20  ;;  %v1020_v29 = vshll.u32 %v6226_v28, %v1017_v20  ;;  %v481_v47 = vpop.permute.xlu0 %480  ;;  %v4360_v6 = vpop.permute.xlu1 %408 }
  0xc4   : > { %v1023_v31 = vshll.u32 %v6232_v30, %v1017_v20  ;;  %v1026_v33 = vshll.u32 %v6238_v32, %v1017_v20  ;;  %v1029_v39 = vshll.u32 %v6221_v35, %v1017_v20  ;;  %v1032_v42 = vshll.u32 %v6223_v41, %v1017_v20 }
  0xc5   : > { %vm1035_vm1 = vcmp.lt.s32.totalorder %v1016_v19, 1  ;;  %vm1036_vm2 = vcmp.lt.s32.totalorder %v1016_v19, 2  ;;  %v1019_v43 = vshrl.u32 %v6226_v28, %v1018_v27  ;;  %v1021_v44 = vshrl.u32 %v6232_v30, %v1018_v27 }
  0xc6   : > { %v1024_v45 = vshrl.u32 %v6238_v32, %v1018_v27  ;;  %v1027_v46 = vshrl.u32 %v6221_v35, %v1018_v27  ;;  %v1030_v48 = vshrl.u32 %v6223_v41, %v1018_v27  ;;  %v1033_v50 = vshrl.u32 %v6228_v49, %v1018_v27 }
  0xc7   : > { %vm1037_vm3 = vcmp.lt.s32.totalorder %v1016_v19, 3  ;;  %vm1038_vm4 = vcmp.lt.s32.totalorder %v1016_v19, 4  ;;  %v1022_v51 = vor.u32 %v1021_v44, %v1020_v29  ;;  %v1111_v58 = vshrl.u32 %v1110_v25, 23 }
  0xc8   : > { %v1025_v53 = vor.u32 %v1024_v45, %v1023_v31  ;;  %v1028_v56 = vor.u32 %v1027_v46, %v1026_v33  ;;  %v1031_v59 = vor.u32 %v1030_v48, %v1029_v39  ;;  %v1034_v60 = vor.u32 %v1033_v50, %v1032_v42  ;;  %v501_v22 = vpop.permute.xlu1 %500 }
  0xc9   : > { %v1114_v61 = vand.u32 8388607, %v6217_v24  ;;  %v541_v62 = vmul.f32 %v4288_v36, %v481_v47  ;;  %v1039_v0 = vsel %vm1035_vm1, %v1019_v43, %v1022_v51  ;;  %v3489_v10 = vadd.s32 4294967169, %v1111_v58 }
  0xca   : > { %v1040_v1 = vsel %vm1038_vm4, %v1028_v56, 2102212464  ;;  %v1043_v3 = vsel %vm1035_vm1, %v1022_v51, %v1025_v53  ;;  %v1047_v4 = vsel %vm1035_vm1, %v1025_v53, %v1028_v56  ;;  %v1044_v8 = vsel %vm1038_vm4, %v1031_v59, 920167782 }
  0xcb   : > { %v1041_v7 = vsel %vm1037_vm3, %v1025_v53, %v1040_v1  ;;  %v1048_v9 = vsel %vm1038_vm4, %v1034_v60, 1326507024  ;;  %v1045_v12 = vsel %vm1037_vm3, %v1028_v56, %v1044_v8  ;;  %v1115_v27 = vor.u32 8388608, %v1114_v61 }
  0xcc   : > { %v1042_v11 = vsel %vm1036_vm2, %v1039_v0, %v1041_v7  ;;  %v1049_v13 = vsel %vm1037_vm3, %v1031_v59, %v1048_v9  ;;  %v1046_v20 = vsel %vm1036_vm2, %v1043_v3, %v1045_v12  ;;  %v1117_v29 = vadd.s32 1, %v3489_v10 }
  0xcd   : > { %v1050_v25 = vsel %vm1036_vm2, %v1047_v4, %v1049_v13  ;;  %v4373_v39 = vmul.u32.u64.low %v1051_v15, %v1046_v20  ;;  %v4374_v42 = vmul.u32.u64.high %v1051_v15, %v1046_v20, %v4373_v39  ;;  %v557_v43 = vadd.f32 %v541_v62, %v457_v18 }
  0xce   : > { %v4370_v31 = vmul.u32.u64.low %v1051_v15, %v1050_v25  ;;  %v4371_v33 = vmul.u32.u64.high %v1051_v15, %v1050_v25, %v4370_v31  ;;  %vm1118_vm5 = vcmp.gt.s32.totalorder %v1117_v29, 0  ;;  %v641_v44 = vmul.f32 %v4295_v40, %v4292_v38 }
  0xcf   : > { %v1119_v45 = vsel %vm1118_vm5, %v1117_v29, 0  ;;  %v3473_v46 = vadd.s32 4294967169, %v4332_v17  ;;  %v798_v19 = vand.u32 2139095040, %v4336_v21  ;;  %v1058_v47 = vmul.u32 %v1051_v15, %v1042_v11 }
  0xd0   : > { %v1121_v48 = vand.u32 31, %v1119_v45  ;;  %vm1060_vm6 = vc.u32 %v4371_v33, %v4373_v39  ;;  %v1061_v50 = vadd.s32 1, %v4374_v42  ;;  %v1120_v51 = vshrl.u32 %v1119_v45, 5 }
  0xd1   : > { %v4384_v53 = vshll.u32 %v1115_v27, 8  ;;  %v657_v38 = vadd.f32 %v641_v44, %v557_v43  ;;  %v546_v58 = vmul.f32 %v4288_v36, %v501_v22 }
  0xd2   : > { %v1122_v18 = vsub.s32 32, %v1121_v48  ;;  %v1124_v56 = vshll.u32 %v6226_v28, %v1121_v48  ;;  %v1062_v17 = vsel %vm1060_vm6, %v1061_v50, %v4374_v42  ;;  %v1127_v59 = vshll.u32 %v6232_v30, %v1121_v48 }
  0xd3   : > { %v1130_v60 = vshll.u32 %v6238_v32, %v1121_v48  ;;  %v1133_v61 = vshll.u32 %v6221_v35, %v1121_v48  ;;  %v1063_v62 = vadd.s32 %v1062_v17, %v1058_v47  ;;  %v1136_v3 = vshll.u32 %v6223_v41, %v1121_v48 }
  0xd4   : > { %v1125_v0 = vshrl.u32 %v6232_v30, %v1122_v18  ;;  %v1128_v1 = vshrl.u32 %v6238_v32, %v1122_v18  ;;  %v1131_v4 = vshrl.u32 %v6221_v35, %v1122_v18  ;;  %v1134_v7 = vshrl.u32 %v6223_v41, %v1122_v18 }
  0xd5   : > { %v1137_v8 = vshrl.u32 %v6228_v49, %v1122_v18  ;;  %vm1139_vm7 = vcmp.lt.s32.totalorder %v1120_v51, 1  ;;  %v1064_v9 = vadd.s32 536870912, %v1063_v62  ;;  %v1123_v10 = vshrl.u32 %v6226_v28, %v1122_v18 }
  0xd6   : > { %v1126_v11 = vor.u32 %v1125_v0, %v1124_v56  ;;  %v1129_v12 = vor.u32 %v1128_v1, %v1127_v59  ;;  %v1132_v13 = vor.u32 %v1131_v4, %v1130_v60  ;;  %v1135_v15 = vor.u32 %v1134_v7, %v1133_v61 }
  0xd7   : > { %v1138_v20 = vor.u32 %v1137_v8, %v1136_v3  ;;  %vm1141_vm8 = vcmp.lt.s32.totalorder %v1120_v51, 3  ;;  %v4399_v25 = vshrl.u32 %v1064_v9, 30  ;;  %vm1142_vm9 = vcmp.lt.s32.totalorder %v1120_v51, 4 }
  0xd8   : > { %v1147_v27 = vsel %vm1139_vm7, %v1126_v11, %v1129_v12  ;;  %v4403_v29 = vadd.f32 %v4302_v52, %v657_v38  ;;  %v1144_v31 = vsel %vm1142_vm9, %v1132_v13, 2102212464  ;;  %v1148_v42 = vsel %vm1142_vm9, %v1135_v15, 920167782 }
  0xd9   : > { %6314 = vst [vmem:[#allocation8_spill] sm:$0xff] %v4399_v25  ;;  %v1151_v43 = vsel %vm1139_vm7, %v1129_v12, %v1132_v13  ;;  %v1152_v44 = vsel %vm1142_vm9, %v1138_v20, 1326507024  ;;  %v1066_v45 = vshll.u32 %v4399_v25, 30  ;;  %vm1140_vm10 = vcmp.lt.s32.totalorder %v1120_v51, 2 }
  0xda   : > { %v1149_v22 = vsel %vm1141_vm8, %v1132_v13, %v1148_v42  ;;  %v1153_v47 = vsel %vm1141_vm8, %v1135_v15, %v1152_v44  ;;  %v1143_v48 = vsel %vm1139_vm7, %v1123_v10, %v1126_v11  ;;  %v462_v56 = vmul.f32 %v4290_v37, %v4360_v6  ;;  %v493_v10 = vpop.permute.xlu0 %492 }
  0xdb   : > { %v1150_v50 = vsel %vm1140_vm10, %v1147_v27, %v1149_v22  ;;  %v1154_v18 = vsel %vm1140_vm10, %v1151_v43, %v1153_v47  ;;  %v4414_v38 = vsub.s32 %v1063_v62, %v1066_v45  ;;  %v1145_v17 = vsel %vm1141_vm8, %v1129_v12, %v1144_v31 }
  0xdc   : > { %v4418_v59 = vmul.u32.u64.low %v4384_v53, %v1154_v18  ;;  %v4419_v60 = vmul.u32.u64.high %v4384_v53, %v1154_v18, %v4418_v59  ;;  %v646_v61 = vmul.f32 %v4295_v40, %v4281_v23  ;;  %v902_v3 = vand.u32 2139095040, %v4403_v29 }
  0xdd   : > { %v4424_v0 = vmul.u32.u64.low %v4384_v53, %v1150_v50  ;;  %v4425_v1 = vmul.u32.u64.high %v4384_v53, %v1150_v50, %v4424_v0  ;;  %v701_v4 = vadd.s32 1, %v3473_v46  ;;  %v1069_v6 = vsub.s32 0, %v4414_v38 }
  0xde   : > { %v562_v62 = vadd.f32 %v546_v58, %v462_v56  ;;  %v799_v7 = vshrl.u32 %v798_v19, 23  ;;  %v1146_v8 = vsel %vm1140_vm10, %v1143_v48, %v1145_v17  ;;  %v903_v9 = vshrl.u32 %v902_v3, 23  ;;  %v593_v19 = vpop.permute.xlu1 %592  ;;  %v497_v47 = vpop.permute.xlu0 %496 }
  0xdf   : > { %v3486_v11 = vmin.u32 %v1069_v6, %v4414_v38  ;;  %vm1164_vm11 = vc.u32 %v4419_v60, %v4424_v0  ;;  %v1165_v23 = vadd.s32 1, %v4425_v1  ;;  %v6218_v12 = vand.u32 2147483647, %v4403_v29 }
  0xe0   : > { %v3481_v13 = vadd.s32 4294967169, %v903_v9  ;;  %v662_v15 = vadd.f32 %v646_v61, %v562_v62  ;;  %vm702_vm12 = vcmp.gt.s32.totalorder %v701_v4, 0  ;;  %v1162_v58 = vmul.u32 %v4384_v53, %v1146_v8 }
  0xe1   : > { %v1071_v46 = vclz %v3486_v11  ;;  %v3477_v51 = vadd.s32 4294967169, %v799_v7  ;;  %v1166_v20 = vsel %vm1164_vm11, %v1165_v23, %v4425_v1  ;;  %v544_v31 = vmul.f32 %v4288_v36, %v493_v10 }
  0xe2   : > { %v909_v27 = vadd.s32 1, %v3481_v13  ;;  %v4441_v42 = vmul.f32 %v4295_v40, %v4283_v26  ;;  %v460_v44 = vmul.f32 %v4290_v37, %v4307_v55  ;;  %v1167_v45 = vadd.s32 %v1166_v20, %v1162_v58 }
  0xe3   : > { %v3487_v43 = vadd.s32 4294967294, %v1071_v46  ;;  %v906_v22 = vand.u32 8388607, %v6218_v12  ;;  %v4448_v53 = vadd.f32 %v4302_v52, %v662_v15  ;;  %v644_v48 = vmul.f32 %v4295_v40, %v593_v19 }
  0xe4   : > { %vm910_vm13 = vcmp.gt.s32.totalorder %v909_v27, 0  ;;  %v4452_v50 = vsel %vm702_vm12, %v701_v4, 0  ;;  %v1168_v26 = vadd.s32 536870912, %v1167_v45  ;;  %v4454_v56 = vadd.s32 1, %v3477_v51 }
  0xe5   : > { %6315 = vst [vmem:[#allocation9_spill] sm:$0xff] %v4448_v53  ;;  %vm3488_vm14 = vcmp.lt.s32.totalorder %v3487_v43, 0  ;;  %v911_v18 = vsel %vm910_vm13, %v909_v27, 0  ;;  %v560_v59 = vadd.f32 %v544_v31, %v460_v44  ;;  %v1059_v61 = vadd.s32 %v4373_v39, %v4371_v33 }
  0xe6   : > { %v4456_v55 = vsel %vm3488_vm14, 0, %v3487_v43  ;;  %v913_v17 = vand.u32 31, %v911_v18  ;;  %v4460_v1 = vshrl.u32 %v1168_v26, 30  ;;  %v4464_v3 = vmul.f32 %v4290_v37, %v4343_v34 }
  0xe7   : > { %v4467_v4 = vmul.f32 %v4288_v36, %v497_v47  ;;  %v907_v6 = vor.u32 8388608, %v906_v22  ;;  %v1422_v7 = vand.u32 2139095040, %v4448_v53  ;;  %v660_v8 = vadd.f32 %v644_v48, %v560_v59 }
  0xe8   : > { %6316 = vst [vmem:[#allocation10_spill] sm:$0xff] %v4460_v1  ;;  %v914_v62 = vsub.s32 32, %v913_v17  ;;  %v1079_v9 = vsub.s32 4294967266, %v4456_v55  ;;  %v1170_v10 = vshll.u32 %v4460_v1, 30  ;;  %v916_v33 = vshll.u32 %v6226_v28, %v913_v17 }
  0xe9   : > { %v919_v39 = vshll.u32 %v6232_v30, %v913_v17  ;;  %v922_v23 = vshll.u32 %v6238_v32, %v913_v17  ;;  %v912_v46 = vshrl.u32 %v911_v18, 5  ;;  %v925_v58 = vshll.u32 %v6221_v35, %v913_v17 }
  0xea   : > { %v917_v11 = vshrl.u32 %v6232_v30, %v914_v62  ;;  %v920_v34 = vshrl.u32 %v6238_v32, %v914_v62  ;;  %v923_v13 = vshrl.u32 %v6221_v35, %v914_v62  ;;  %v4478_v15 = vsub.s32 %v1167_v45, %v1170_v10 }
  0xeb   : > { %v926_v19 = vshrl.u32 %v6223_v41, %v914_v62  ;;  %vm806_vm15 = vcmp.gt.s32.totalorder %v4454_v56, 0  ;;  %v947_v31 = vshll.u32 %v907_v6, 8  ;;  %v1080_v43 = vadd.s32 127, %v1079_v9 }
  0xec   : > { %v918_v51 = vor.u32 %v917_v11, %v916_v33  ;;  %v921_v20 = vor.u32 %v920_v34, %v919_v39  ;;  %v924_v27 = vor.u32 %v923_v13, %v922_v23  ;;  %v1173_v44 = vsub.s32 0, %v4478_v15 }
  0xed   : > { %v927_v22 = vor.u32 %v926_v19, %v925_v58  ;;  %v6216_v47 = vand.u32 2147483647, %v4448_v53  ;;  %v1075_v45 = vsub.s32 32, %v4456_v55  ;;  %v928_v48 = vshll.u32 %v6223_v41, %v913_v17 }
  0xee   : > { %v929_v26 = vshrl.u32 %v6228_v49, %v914_v62  ;;  %v1423_v18 = vshrl.u32 %v1422_v7, 23  ;;  %v915_v59 = vshrl.u32 %v6226_v28, %v914_v62  ;;  %vm931_vm0 = vcmp.lt.s32.totalorder %v912_v46, 1 }
  0xef   : > { %vm933_vm1 = vcmp.lt.s32.totalorder %v912_v46, 3  ;;  %vm934_vm2 = vcmp.lt.s32.totalorder %v912_v46, 4  ;;  %v939_v9 = vsel %vm931_vm0, %v918_v51, %v921_v20  ;;  %v1081_v39 = vshll.u32 %v1080_v43, 23 }
  0xf0   : > { %v930_v10 = vor.u32 %v929_v26, %v928_v48  ;;  %v936_v6 = vsel %vm934_vm2, %v924_v27, 2102212464  ;;  %v940_v33 = vsel %vm934_vm2, %v927_v22, 920167782  ;;  %v3490_v11 = vmin.u32 %v1173_v44, %v4478_v15 }
  0xf1   : > { %vm932_vm3 = vcmp.lt.s32.totalorder %v912_v46, 2  ;;  %v941_v34 = vsel %vm933_vm1, %v924_v27, %v940_v33  ;;  %v1076_v17 = vshll.u32 %v4414_v38, %v4456_v55  ;;  %v943_v62 = vsel %vm931_vm0, %v921_v20, %v924_v27  ;;  %v597_v27 = vpop.permute.xlu1 %596 }
  0xf2   : > { %v942_v7 = vsel %vm932_vm3, %v939_v9, %v941_v34  ;;  %v944_v23 = vsel %vm934_vm2, %v930_v10, 1326507024  ;;  %v1077_v13 = vshrl.u32 %v1059_v61, %v1075_v45  ;;  %v935_v58 = vsel %vm931_vm0, %v915_v59, %v918_v51 }
  0xf3   : > { %v937_v19 = vsel %vm933_vm1, %v921_v20, %v936_v6  ;;  %v945_v43 = vsel %vm933_vm1, %v927_v22, %v944_v23  ;;  %v4500_v48 = vmul.u32.u64.low %v947_v31, %v942_v7  ;;  %v4501_v26 = vmul.u32.u64.high %v947_v31, %v942_v7, %v4500_v48 }
  0xf4   : > { %v946_v44 = vsel %vm932_vm3, %v943_v62, %v945_v43  ;;  %v3501_v33 = vadd.s32 4294967169, %v1423_v18  ;;  %v1082_v38 = vor.u32 4788187, %v1081_v39  ;;  %v1175_v55 = vclz %v3490_v11 }
  0xf5   : > { %v4504_v9 = vmul.u32.u64.low %v947_v31, %v946_v44  ;;  %v4505_v34 = vmul.u32.u64.high %v947_v31, %v946_v44, %v4504_v9  ;;  %v938_v61 = vsel %vm932_vm3, %v935_v58, %v937_v19  ;;  %v1426_v51 = vand.u32 8388607, %v6216_v47 }
  0xf6   : > { %v1429_v20 = vadd.s32 1, %v3501_v33  ;;  %v4511_v22 = vadd.f32 %v4302_v52, %v660_v8  ;;  %v4516_v45 = vsel %vm806_vm15, %v4454_v56, 0  ;;  %v1078_v18 = vor.u32 %v1077_v13, %v1076_v17 }
  0xf7   : > { %v4520_v59 = vmul.f32 %v4290_v37, %v4309_v57  ;;  %v6219_v46 = vand.u32 2147483647, %v4317_v63  ;;  %v957_v10 = vadd.s32 1, %v4501_v26  ;;  %v561_v6 = vadd.f32 %v4467_v4, %v4464_v3 }
  0xf8   : > { %6317 = vst [vmem:[#allocation11_spill] sm:$0xff] %v4511_v22  ;;  %vm1430_vm4 = vcmp.gt.s32.totalorder %v1429_v20, 0  ;;  %v645_v8 = vmul.f32 %v4295_v40, %v597_v27  ;;  %v1083_v39 = vand.u32 2147483647, %v1082_v38  ;;  %v3491_v11 = vadd.s32 4294967294, %v1175_v55 }
  0xf9   : > { %v954_v7 = vmul.u32 %v947_v31, %v938_v61  ;;  %vm956_vm5 = vc.u32 %v4505_v34, %v4500_v48  ;;  %v1427_v57 = vor.u32 8388608, %v1426_v51  ;;  %v1431_v17 = vsel %vm1430_vm4, %v1429_v20, 0 }
  0xfa   : > { %v958_v56 = vsel %vm956_vm5, %v957_v10, %v4501_v26  ;;  %v1214_v62 = vand.u32 2139095040, %v4511_v22  ;;  %v4532_v23 = vshrl.u32 %v4452_v50, 5  ;;  %v4535_v13 = vand.u32 31, %v4452_v50 }
  0xfb   : > { %v1085_v3 = vcvt.s32.f32 %v1078_v18  ;;  %v959_v4 = vadd.s32 %v958_v56, %v954_v7  ;;  %v4538_v58 = vand.u32 31, %v4516_v45  ;;  %v1433_v31 = vand.u32 31, %v1431_v17 }
  0xfc   : > { %6318 = vst [vmem:[#allocation12_spill] sm:$0xff] %v4532_v23  ;;  %v4540_v19 = vadd.f32 %v645_v8, %v561_v6  ;;  %v4544_v43 = vand.u32 8388607, %v6219_v46  ;;  %vm3492_vm6 = vcmp.lt.s32.totalorder %v3491_v11, 0  ;;  %v6225_v33 = vand.u32 2147483647, %v4511_v22 }
  0xfd   : > { %6319 = vst [vmem:[#allocation13_spill] sm:$0xff] %v4538_v58  ;;  %v4546_v44 = vmul.f32 %v1085_v3, %v1083_v39  ;;  %v960_v26 = vadd.s32 536870912, %v959_v4  ;;  %v1432_v50 = vshrl.u32 %v1431_v17, 5  ;;  %v1434_v38 = vsub.s32 32, %v1433_v31 }
  0xfe   : > { %6320 = vst [vmem:[#allocation14_spill] sm:$0xff] %v4544_v43  ;;  %v4549_v55 = vshll.u32 %v1427_v57, 8  ;;  %v1215_v9 = vshrl.u32 %v1214_v62, 23  ;;  %v1436_v61 = vshll.u32 %v6226_v28, %v1433_v31  ;;  %v1439_v51 = vshll.u32 %v6232_v30, %v1433_v31 }
  0xff   : > { %v4551_v27 = vshrl.u32 %v960_v26, 30  ;;  %v1442_v20 = vshll.u32 %v6238_v32, %v1433_v31  ;;  %v1437_v18 = vshrl.u32 %v6232_v30, %v1434_v38  ;;  %v1440_v10 = vshrl.u32 %v6238_v32, %v1434_v38 }
 0x100   : > { %v1443_v6 = vshrl.u32 %v6221_v35, %v1434_v38  ;;  %v1445_v8 = vshll.u32 %v6221_v35, %v1433_v31  ;;  %v1446_v7 = vshrl.u32 %v6223_v41, %v1434_v38  ;;  %v1448_v56 = vshll.u32 %v6223_v41, %v1433_v31 }
 0x101   : > { %6321 = vst [vmem:[#allocation15_spill] sm:$0xff] %v4551_v27  ;;  %v962_v39 = vshll.u32 %v4551_v27, 30  ;;  %v1449_v57 = vshrl.u32 %v6228_v49, %v1434_v38  ;;  %v1438_v17 = vor.u32 %v1437_v18, %v1436_v61  ;;  %v1441_v62 = vor.u32 %v1440_v10, %v1439_v51 }
 0x102   : > { %v1444_v3 = vor.u32 %v1443_v6, %v1442_v20  ;;  %v3493_v26 = vadd.s32 4294967169, %v1215_v9  ;;  %v1447_v24 = vor.u32 %v1446_v7, %v1445_v8  ;;  %vm1451_vm7 = vcmp.lt.s32.totalorder %v1432_v50, 1 }
 0x103   : > { %v4564_v47 = vsub.s32 %v959_v4, %v962_v39  ;;  %v1450_v12 = vor.u32 %v1449_v57, %v1448_v56  ;;  %v1435_v46 = vshrl.u32 %v6226_v28, %v1434_v38  ;;  %vm1452_vm8 = vcmp.lt.s32.totalorder %v1432_v50, 2 }
 0x104   : > { %vm1454_vm9 = vcmp.lt.s32.totalorder %v1432_v50, 4  ;;  %v1459_v5 = vsel %vm1451_vm7, %v1438_v17, %v1441_v62  ;;  %vm1453_vm10 = vcmp.lt.s32.totalorder %v1432_v50, 3  ;;  %vm6299_vm11 = vcmp.lt.s32.totalorder %v4305_v54, 0 }
 0x105   : > { %v965_v35 = vsub.s32 0, %v4564_v47  ;;  %v1456_v31 = vsel %vm1454_vm9, %v1444_v3, 2102212464  ;;  %v1460_v41 = vsel %vm1454_vm9, %v1447_v24, 920167782  ;;  %v1455_v61 = vsel %vm1451_vm7, %v1435_v46, %v1438_v17  ;;  %v4580_v46 = vpop.permute.xlu1 %413 }
 0x106   : > { %v1461_v51 = vsel %vm1453_vm10, %v1444_v3, %v1460_v41  ;;  %v1463_v9 = vsel %vm1451_vm7, %v1441_v62, %v1444_v3  ;;  %v1464_v4 = vsel %vm1454_vm9, %v1450_v12, 1326507024  ;;  %v1457_v18 = vsel %vm1453_vm10, %v1441_v62, %v1456_v31 }
 0x107   : > { %v3482_v20 = vmin.u32 %v965_v35, %v4564_v47  ;;  %v1462_v10 = vsel %vm1452_vm8, %v1459_v5, %v1461_v51  ;;  %v1465_v38 = vsel %vm1453_vm10, %v1447_v24, %v1464_v4  ;;  %v4572_v6 = vsel %vm3492_vm6, 0, %v3491_v11 }
 0x108   : > { %v1466_v8 = vsel %vm1452_vm8, %v1463_v9, %v1465_v38  ;;  %v4576_v39 = vmul.u32.u64.low %v4549_v55, %v1462_v10  ;;  %v4577_v7 = vmul.u32.u64.high %v4549_v55, %v1462_v10, %v4576_v39  ;;  %v4583_v41 = vsub.s32 32, %v4535_v13 }
 0x109   : > { %v967_v35 = vclz %v3482_v20  ;;  %v4586_v12 = vmul.u32.u64.low %v4549_v55, %v1466_v8  ;;  %v4587_v5 = vmul.u32.u64.high %v4549_v55, %v1466_v8, %v4586_v12  ;;  %v4590_v24 = vshrl.u32 %v4516_v45, 5  ;;  %v4620_v10 = vpop.permute.xlu1 %504 }
 0x10a   : > { %v4594_v11 = vmul.f32 %v4290_v37, %v4319_v2  ;;  %v1458_v56 = vsel %vm1452_vm8, %v1455_v61, %v1457_v18  ;;  %v1221_v57 = vadd.s32 1, %v3493_v26  ;;  %v4598_v17 = vsub.s32 32, %v4538_v58 }
 0x10b   : > { %6322 = vst [vmem:[#allocation16_spill] sm:$0xff] %v4590_v24  ;;  %v1087_v62 = vxor.u32 2147483648, %v4546_v44  ;;  %v1183_v3 = vsub.s32 4294967266, %v4572_v6  ;;  %v1477_v51 = vadd.s32 1, %v4577_v7  ;;  %v1218_v45 = vand.u32 8388607, %v6225_v33 }
 0x10c   : > { %6323 = vst [vmem:[#allocation17_spill] sm:$0xff] %v4598_v17  ;;  %vm1222_vm12 = vcmp.gt.s32.totalorder %v1221_v57, 0  ;;  %v4608_v2 = vadd.f32 %v4302_v52, %v4540_v19  ;;  %v3483_v50 = vadd.s32 4294967294, %v967_v35  ;;  %v1474_v26 = vmul.u32 %v4549_v55, %v1458_v56 }
 0x10d   : > { %vm1476_vm13 = vc.u32 %v4587_v5, %v4576_v39  ;;  %v1223_v61 = vsel %vm1222_vm12, %v1221_v57, 0  ;;  %v1163_v9 = vadd.s32 %v4424_v0, %v4419_v60  ;;  %v4617_v4 = vmul.f32 %v4290_v37, %v4327_v14  ;;  %v4641_v1 = vpop.permute.xlu1 %508 }
 0x10e   : > { %6324 = vst [vmem:[#allocation18_spill] sm:$0xff] %v4608_v2  ;;  %v1478_v20 = vsel %vm1476_vm13, %v1477_v51, %v4577_v7  ;;  %v1225_v18 = vand.u32 31, %v1223_v61  ;;  %v4625_v19 = vsel %vm6299_vm11, %v1087_v62, %v4546_v44  ;;  %v1179_v55 = vsub.s32 32, %v4572_v6 }
 0x10f   : > { %v1180_v38 = vshll.u32 %v4478_v15, %v4572_v6  ;;  %v1479_v60 = vadd.s32 %v1478_v20, %v1474_v26  ;;  %v1184_v0 = vadd.s32 127, %v1183_v3  ;;  %v1219_v8 = vor.u32 8388608, %v1218_v45 }
 0x110   : > { %v1226_v14 = vsub.s32 32, %v1225_v18  ;;  %v1318_v35 = vand.u32 2139095040, %v4608_v2  ;;  %vm3484_vm14 = vcmp.lt.s32.totalorder %v3483_v50, 0  ;;  %v1228_v12 = vshll.u32 %v6226_v28, %v1225_v18 }
 0x111   : > { %v1480_v7 = vadd.s32 536870912, %v1479_v60  ;;  %v1231_v56 = vshll.u32 %v6232_v30, %v1225_v18  ;;  %v1234_v62 = vshll.u32 %v6238_v32, %v1225_v18  ;;  %v6325_v51 = vmov 2102212464  }
 0x112   : > { %v1229_v44 = vshrl.u32 %v6232_v30, %v1226_v14  ;;  %v1232_v57 = vshrl.u32 %v6238_v32, %v1226_v14  ;;  %v1235_v15 = vshrl.u32 %v6325_v51, %v1226_v14  ;;  %v1224_v3 = vshrl.u32 %v1223_v61, 5 }
 0x113   : > { %v4637_v6 = vshrl.u32 %v1480_v7, 30  ;;  %v1237_v45 = vshll.u32 %v6325_v51, %v1225_v18  ;;  %v6327_v26 = vmov 920167782   ;;  %v1181_v31 = vshrl.u32 %v1163_v9, %v1179_v55 }
 0x114   : > { %v1238_v20 = vshrl.u32 %v6327_v26, %v1226_v14  ;;  %v1230_v33 = vor.u32 %v1229_v44, %v1228_v12  ;;  %v1233_v28 = vor.u32 %v1232_v57, %v1231_v56  ;;  %v1236_v49 = vor.u32 %v1235_v15, %v1234_v62 }
 0x115   : > { %6326 = vst [vmem:[#allocation19_spill] sm:$0xff] %v4637_v6  ;;  %v1185_v30 = vshll.u32 %v1184_v0, 23  ;;  %v1482_v25 = vshll.u32 %v4637_v6, 30  ;;  %v1259_v32 = vshll.u32 %v1219_v8, 8  ;;  %v6328_v63 = vand.u32 2147483647, %v4305_v54 }
 0x116   : > { %v1239_v27 = vor.u32 %v1238_v20, %v1237_v45  ;;  %v6329_v7 = vmov 0  ;;  %v4651_v61 = vsel %vm3484_vm14, 0, %v3483_v50  ;;  %v1240_v9 = vshll.u32 %v6327_v26, %v1225_v18  ;;  %v4664_v20 = vpop.permute.xlu1 %428 }
 0x117   : > { %vm4646_vm15 = vcmp.le.f32.partialorder %v6328_v63, 0.7853982  ;;  %v6332_v55 = vmov 1326507024   ;;  %v1319_v56 = vshrl.u32 %v1318_v35, 23  ;;  %v4655_v44 = vsub.s32 %v1479_v60, %v1482_v25 }
 0x118   : > { %v6330_v7 = vsel %vm4646_vm15, 4294967295, %v6329_v7  ;;  %v1241_v12 = vshrl.u32 %v6332_v55, %v1226_v14  ;;  %vm1243_vm0 = vcmp.lt.s32.totalorder %v1224_v3, 1  ;;  %vm1245_vm1 = vcmp.lt.s32.totalorder %v1224_v3, 3 }
 0x119   : > { %6331 = vst [vmem:[#allocation20_spill] sm:$0xff] %v6330_v7  ;;  %vm1246_vm2 = vcmp.lt.s32.totalorder %v1224_v3, 4  ;;  %v1251_v63 = vsel %vm1243_vm0, %v1230_v33, %v1233_v28  ;;  %v1485_v62 = vsub.s32 0, %v4655_v44  ;;  %v6333_v15 = vmov 683565275  }
 0x11a   : > { %v1242_v0 = vor.u32 %v1241_v12, %v1240_v9  ;;  %v1248_v8 = vsel %vm1246_vm2, %v1236_v49, 2102212464  ;;  %v1252_v57 = vsel %vm1246_vm2, %v1239_v27, 920167782  ;;  %v1227_v50 = vshrl.u32 %v6333_v15, %v1226_v14 }
 0x11b   : > { %vm1244_vm3 = vcmp.lt.s32.totalorder %v1224_v3, 2  ;;  %v1253_v18 = vsel %vm1245_vm1, %v1236_v49, %v1252_v57  ;;  %v975_v45 = vsub.s32 4294967266, %v4651_v61  ;;  %v1255_v60 = vsel %vm1243_vm0, %v1233_v28, %v1236_v49 }
 0x11c   : > { %v1254_v25 = vsel %vm1244_vm3, %v1251_v63, %v1253_v18  ;;  %v1256_v35 = vsel %vm1246_vm2, %v1242_v0, 1326507024  ;;  %v3502_v9 = vmin.u32 %v1485_v62, %v4655_v44  ;;  %v1247_v12 = vsel %vm1243_vm0, %v1227_v50, %v1230_v33 }
 0x11d   : > { %v1249_v6 = vsel %vm1245_vm1, %v1233_v28, %v1248_v8  ;;  %v1257_v14 = vsel %vm1245_vm1, %v1239_v27, %v1256_v35  ;;  %v4671_v57 = vmul.u32.u64.low %v1259_v32, %v1254_v25  ;;  %v4672_v58 = vmul.u32.u64.high %v1259_v32, %v1254_v25, %v4671_v57 }
 0x11e   : > { %v1258_v24 = vsel %vm1244_vm3, %v1255_v60, %v1257_v14  ;;  %v3497_v63 = vadd.s32 4294967169, %v1319_v56  ;;  %v1487_v18 = vclz %v3502_v9  ;;  %v463_v62 = vmul.f32 %v4290_v37, %v4580_v46 }
 0x11f   : > { %v4675_v49 = vmul.u32.u64.low %v1259_v32, %v1258_v24  ;;  %v4676_v0 = vmul.u32.u64.high %v1259_v32, %v1258_v24, %v4675_v49  ;;  %v4680_v17 = vor.u32 %v1181_v31, %v1180_v38  ;;  %v4682_v33 = vor.u32 4788187, %v1185_v30 }
 0x120   : > { %v1250_v28 = vsel %vm1244_vm3, %v1247_v12, %v1249_v6  ;;  %v1325_v27 = vadd.s32 1, %v3497_v63  ;;  %v4689_v8 = vsel %vm4646_vm15, %v4305_v54, %v4625_v19  ;;  %v955_v24 = vadd.s32 %v4500_v48, %v4505_v34  ;;  %v4698_v6 = vpop.permute.xlu1 %516 }
 0x121   : > { %v971_v56 = vsub.s32 32, %v4651_v61  ;;  %v547_v46 = vmul.f32 %v4288_v36, %v4620_v10  ;;  %v976_v31 = vadd.s32 127, %v975_v45  ;;  %v1269_v30 = vadd.s32 1, %v4672_v58 }
 0x122   : > { %v6248_v38 = vand.u32 2147483647, %v4608_v2  ;;  %vm1326_vm4 = vcmp.gt.s32.totalorder %v1325_v27, 0  ;;  %v3503_v3 = vadd.s32 4294967294, %v1487_v18  ;;  %v1266_v50 = vmul.u32 %v1259_v32, %v1250_v28 }
 0x123   : > { %vm1268_vm5 = vc.u32 %v4676_v0, %v4671_v57  ;;  %v1327_v19 = vsel %vm1326_vm4, %v1325_v27, 0  ;;  %v972_v25 = vshll.u32 %v4564_v47, %v4651_v61  ;;  %v973_v60 = vshrl.u32 %v955_v24, %v971_v56 }
 0x124   : > { %v1270_v10 = vsel %vm1268_vm5, %v1269_v30, %v4672_v58  ;;  %v1329_v45 = vand.u32 31, %v1327_v19  ;;  %v4707_v9 = vadd.f32 %v547_v46, %v463_v62  ;;  %v977_v12 = vshll.u32 %v976_v31, 23  ;;  %v605_v56 = vpop.permute.xlu1 %604 }
 0x125   : > { %v1271_v35 = vadd.s32 %v1270_v10, %v1266_v50  ;;  %v1322_v32 = vand.u32 8388607, %v6248_v38  ;;  %v548_v63 = vmul.f32 %v4288_v36, %v4641_v1  ;;  %vm3504_vm6 = vcmp.lt.s32.totalorder %v3503_v3, 0 }
 0x126   : > { %v1330_v14 = vsub.s32 32, %v1329_v45  ;;  %v1328_v49 = vshrl.u32 %v1327_v19, 5  ;;  %v1332_v58 = vshll.u32 %v6333_v15, %v1329_v45  ;;  %v6334_v28 = vmov 2475754826  }
 0x127   : > { %v1272_v18 = vadd.s32 536870912, %v1271_v35  ;;  %v1335_v47 = vshll.u32 %v6334_v28, %v1329_v45  ;;  %v6335_v61 = vmov 2131351028   ;;  %v1341_v1 = vshll.u32 %v6325_v51, %v1329_v45 }
 0x128   : > { %v1333_v27 = vshrl.u32 %v6334_v28, %v1330_v14  ;;  %v1336_v62 = vshrl.u32 %v6335_v61, %v1330_v14  ;;  %v1339_v24 = vshrl.u32 %v6325_v51, %v1330_v14  ;;  %v1338_v31 = vshll.u32 %v6335_v61, %v1329_v45 }
 0x129   : > { %v4718_v46 = vshrl.u32 %v1272_v18, 30  ;;  %v1342_v30 = vshrl.u32 %v6327_v26, %v1330_v14  ;;  %v4723_v50 = vor.u32 %v973_v60, %v972_v25  ;;  %v4725_v19 = vor.u32 4788187, %v977_v12 }
 0x12a   : > { %v1334_v10 = vor.u32 %v1333_v27, %v1332_v58  ;;  %v1337_v38 = vor.u32 %v1336_v62, %v1335_v47  ;;  %v1340_v48 = vor.u32 %v1339_v24, %v1338_v31  ;;  %v647_v54 = vmul.f32 %v4295_v40, %v605_v56  ;;  %v513_v31 = vpop.permute.xlu0 %512 }
 0x12b   : > { %6336 = vst [vmem:[#allocation21_spill] sm:$0xff] %v4718_v46  ;;  %v1274_v34 = vshll.u32 %v4718_v46, 30  ;;  %v1343_v7 = vor.u32 %v1342_v30, %v1341_v1  ;;  %v4730_v18 = vsel %vm3504_vm6, 0, %v3503_v3  ;;  %v1323_v21 = vor.u32 8388608, %v1322_v32 }
 0x12c   : > { %v1344_v43 = vshll.u32 %v6327_v26, %v1329_v45  ;;  %v1345_v23 = vshrl.u32 %v6332_v55, %v1330_v14  ;;  %vm1347_vm7 = vcmp.lt.s32.totalorder %v1328_v49, 1  ;;  %vm1350_vm8 = vcmp.lt.s32.totalorder %v1328_v49, 4 }
 0x12d   : > { %v4734_v25 = vsub.s32 %v1271_v35, %v1274_v34  ;;  %v564_v60 = vadd.f32 %v548_v63, %v4520_v59  ;;  %vm1349_vm9 = vcmp.lt.s32.totalorder %v1328_v49, 3  ;;  %v1355_v58 = vsel %vm1347_vm7, %v1334_v10, %v1337_v38 }
 0x12e   : > { %v1346_v12 = vor.u32 %v1345_v23, %v1344_v43  ;;  %v1356_v27 = vsel %vm1350_vm8, %v1343_v7, 920167782  ;;  %v1495_v47 = vsub.s32 4294967266, %v4730_v18  ;;  %v1331_v32 = vshrl.u32 %v6333_v15, %v1330_v14 }
 0x12f   : > { %v1277_v3 = vsub.s32 0, %v4734_v25  ;;  %v1357_v45 = vsel %vm1349_vm9, %v1340_v48, %v1356_v27  ;;  %vm1348_vm10 = vcmp.lt.s32.totalorder %v1328_v49, 2  ;;  %v1352_v34 = vsel %vm1350_vm8, %v1340_v48, 2102212464 }
 0x130   : > { %v1359_v35 = vsel %vm1347_vm7, %v1337_v38, %v1340_v48  ;;  %v1360_v62 = vsel %vm1350_vm8, %v1346_v12, 1326507024  ;;  %v1358_v23 = vsel %vm1348_vm10, %v1355_v58, %v1357_v45  ;;  %v1363_v63 = vshll.u32 %v1323_v21, 8 }
 0x131   : > { %v3494_v59 = vmin.u32 %v1277_v3, %v4734_v25  ;;  %v1361_v43 = vsel %vm1349_vm9, %v1343_v7, %v1360_v62  ;;  %v1491_v24 = vsub.s32 32, %v4730_v18  ;;  %v1351_v56 = vsel %vm1347_vm7, %v1331_v32, %v1334_v10 }
 0x132   : > { %v1362_v14 = vsel %vm1348_vm10, %v1359_v35, %v1361_v43  ;;  %v664_v1 = vadd.f32 %v4441_v42, %v564_v60  ;;  %v1353_v48 = vsel %vm1349_vm9, %v1337_v38, %v1352_v34  ;;  %v1496_v3 = vadd.s32 127, %v1495_v47 }
 0x133   : > { %v1279_v30 = vclz %v3494_v59  ;;  %v4751_v12 = vmul.u32.u64.low %v1363_v63, %v1362_v14  ;;  %v4752_v27 = vmul.u32.u64.high %v1363_v63, %v1362_v14, %v4751_v12  ;;  %v1475_v7 = vadd.s32 %v4576_v39, %v4587_v5 }
 0x134   : > { %v4754_v58 = vmul.u32.u64.low %v1363_v63, %v1358_v23  ;;  %v4755_v45 = vmul.u32.u64.high %v1363_v63, %v1358_v23, %v4754_v58  ;;  %v4758_v21 = vadd.f32 %v4302_v52, %v664_v1  ;;  %v549_v32 = vmul.f32 %v4288_v36, %v513_v31 }
 0x135   : > { %v3495_v10 = vadd.s32 4294967294, %v1279_v30  ;;  %v663_v42 = vadd.f32 %v647_v54, %v4707_v9  ;;  %v981_v38 = vcvt.s32.f32 %v4723_v50  ;;  %v1354_v60 = vsel %vm1348_vm10, %v1351_v56, %v1353_v48  ;;  %v613_v30 = vpop.permute.xlu1 %612 }
 0x136   : > { %6337 = vst [vmem:[#allocation22_spill] sm:$0xff] %v4758_v21  ;;  %v6256_v47 = vand.u32 2147483647, %v4758_v21  ;;  %v1630_v34 = vand.u32 2139095040, %v4758_v21  ;;  %v979_v35 = vand.u32 2147483647, %v4725_v19  ;;  %v1493_v62 = vshrl.u32 %v1475_v7, %v1491_v24 }
 0x137   : > { %vm3496_vm12 = vcmp.lt.s32.totalorder %v3495_v10, 0  ;;  %vm1372_vm13 = vc.u32 %v4752_v27, %v4754_v58  ;;  %v1497_v39 = vshll.u32 %v1496_v3, 23  ;;  %v1373_v59 = vadd.s32 1, %v4755_v45 }
 0x138   : > { %v1282_v5 = vsel %vm3496_vm12, 0, %v3495_v10  ;;  %v1631_v23 = vshrl.u32 %v1630_v34, 23  ;;  %v1492_v54 = vshll.u32 %v4655_v44, %v4730_v18  ;;  %v1370_v9 = vmul.u32 %v1363_v63, %v1354_v60 }
 0x139   : > { %v1634_v49 = vand.u32 8388607, %v6256_v47  ;;  %v4776_v50 = vadd.f32 %v4302_v52, %v663_v42  ;;  %v6338_v19 = vand.u32 2147483647, %v4682_v33  ;;  %v6339_v43 = vcvt.s32.f32 %v4680_v17 }
 0x13a   : > { %v1283_v56 = vsub.s32 32, %v1282_v5  ;;  %v1374_v14 = vsel %vm1372_vm13, %v1373_v59, %v4755_v45  ;;  %v3509_v31 = vadd.s32 4294967169, %v1631_v23  ;;  %v4785_v1 = vmul.f32 %v981_v38, %v979_v35 }
 0x13b   : > { %v4782_v24 = vmul.f32 %v6339_v43, %v6338_v19  ;;  %v4787_v44 = vor.u32 %v1493_v62, %v1492_v54  ;;  %v1375_v18 = vadd.s32 %v1374_v14, %v1370_v9  ;;  %v565_v63 = vadd.f32 %v549_v32, %v4594_v11 }
 0x13c   : > { %v4790_v48 = vor.u32 4788187, %v1497_v39  ;;  %v1267_v33 = vadd.s32 %v4671_v57, %v4676_v0  ;;  %v1637_v17 = vadd.s32 1, %v3509_v31  ;;  %v4796_v12 = vmul.f32 %v4290_v37, %v4664_v20 }
 0x13d   : > { %v1287_v3 = vsub.s32 4294967266, %v1282_v5  ;;  %v1376_v45 = vadd.s32 536870912, %v1375_v18  ;;  %v1635_v7 = vor.u32 8388608, %v1634_v49  ;;  %v6257_v10 = vand.u32 2147483647, %v4776_v50 }
 0x13e   : > { %v1285_v42 = vshrl.u32 %v1267_v33, %v1283_v56  ;;  %vm1638_vm14 = vcmp.gt.s32.totalorder %v1637_v17, 0  ;;  %v1526_v11 = vand.u32 2139095040, %v4776_v50  ;;  %v649_v32 = vmul.f32 %v4295_v40, %v613_v30 }
 0x13f   : > { %v4802_v60 = vshrl.u32 %v1376_v45, 30  ;;  %v1639_v57 = vsel %vm1638_vm14, %v1637_v17, 0  ;;  %v4806_v20 = vmul.f32 %v4288_v36, %v4698_v6  ;;  %v1499_v0 = vand.u32 2147483647, %v4790_v48 }
 0x140   : > { %v1284_v34 = vshll.u32 %v4734_v25, %v1282_v5  ;;  %v4811_v35 = vadd.s32 %v4754_v58, %v4752_v27  ;;  %v1641_v62 = vand.u32 31, %v1639_v57  ;;  %v1288_v39 = vadd.s32 127, %v1287_v3 }
 0x141   : > { %6340 = vst [vmem:[#allocation23_spill] sm:$0xff] %v4802_v60  ;;  %v1378_v59 = vshll.u32 %v4802_v60, 30  ;;  %v4814_v23 = vshll.u32 %v1635_v7, 8  ;;  %v4818_v54 = vand.u32 8388607, %v6257_v10  ;;  %v1527_v49 = vshrl.u32 %v1526_v11, 23 }
 0x142   : > { %v4820_v9 = vor.u32 %v1285_v42, %v1284_v34  ;;  %v1642_v6 = vsub.s32 32, %v1641_v62  ;;  %v665_v19 = vadd.f32 %v649_v32, %v565_v63  ;;  %v1640_v25 = vshrl.u32 %v1639_v57, 5 }
 0x143   : > { %v4822_v43 = vsub.s32 %v1375_v18, %v1378_v59  ;;  %v1644_v27 = vshll.u32 %v6333_v15, %v1641_v62  ;;  %v1647_v58 = vshll.u32 %v6334_v28, %v1641_v62  ;;  %v1650_v14 = vshll.u32 %v6335_v61, %v1641_v62 }
 0x144   : > { %v1645_v5 = vshrl.u32 %v6334_v28, %v1642_v6  ;;  %v1648_v56 = vshrl.u32 %v6335_v61, %v1642_v6  ;;  %v1651_v31 = vshrl.u32 %v6325_v51, %v1642_v6  ;;  %v1653_v33 = vshll.u32 %v6325_v51, %v1641_v62 }
 0x145   : > { %v1381_v30 = vsub.s32 0, %v4822_v43  ;;  %v1654_v18 = vshrl.u32 %v6327_v26, %v1642_v6  ;;  %v1657_v63 = vshrl.u32 %v6332_v55, %v1642_v6  ;;  %v1656_v7 = vshll.u32 %v6327_v26, %v1641_v62 }
 0x146   : > { %v1646_v17 = vor.u32 %v1645_v5, %v1644_v27  ;;  %v1649_v3 = vor.u32 %v1648_v56, %v1647_v58  ;;  %v1652_v45 = vor.u32 %v1651_v31, %v1650_v14  ;;  %v1289_v42 = vshll.u32 %v1288_v39, 23 }
 0x147   : > { %v3498_v11 = vmin.u32 %v1381_v30, %v4822_v43  ;;  %v1655_v32 = vor.u32 %v1654_v18, %v1653_v33  ;;  %v1531_v57 = vor.u32 8388608, %v4818_v54  ;;  %v1658_v34 = vor.u32 %v1657_v63, %v1656_v7 }
 0x148   : > { %vm1662_vm0 = vcmp.lt.s32.totalorder %v1640_v25, 4  ;;  %v3505_v59 = vadd.s32 4294967169, %v1527_v49  ;;  %v4838_v47 = vadd.f32 %v4302_v52, %v665_v19  ;;  %v1643_v38 = vshrl.u32 %v6333_v15, %v1642_v6 }
 0x149   : > { %v1383_v10 = vclz %v3498_v11  ;;  %vm1659_vm1 = vcmp.lt.s32.totalorder %v1640_v25, 1  ;;  %v1664_v27 = vsel %vm1662_vm0, %v1652_v45, 2102212464  ;;  %vm1660_vm2 = vcmp.lt.s32.totalorder %v1640_v25, 2 }
 0x14a   : > { %vm1661_vm3 = vcmp.lt.s32.totalorder %v1640_v25, 3  ;;  %v1667_v62 = vsel %vm1659_vm1, %v1646_v17, %v1649_v3  ;;  %v1668_v39 = vsel %vm1662_vm0, %v1655_v32, 920167782  ;;  %v1663_v5 = vsel %vm1659_vm1, %v1643_v38, %v1646_v17 }
 0x14b   : > { %v3499_v58 = vadd.s32 4294967294, %v1383_v10  ;;  %v1669_v54 = vsel %vm1661_vm3, %v1652_v45, %v1668_v39  ;;  %v1671_v56 = vsel %vm1659_vm1, %v1649_v3, %v1652_v45  ;;  %v1665_v14 = vsel %vm1661_vm3, %v1649_v3, %v1664_v27 }
 0x14c   : > { %v1670_v49 = vsel %vm1660_vm2, %v1667_v62, %v1669_v54  ;;  %v1672_v19 = vsel %vm1662_vm0, %v1658_v34, 1326507024  ;;  %v1533_v31 = vadd.s32 1, %v3505_v59  ;;  %v1290_v18 = vor.u32 4788187, %v1289_v42 }
 0x14d   : > { %vm3500_vm4 = vcmp.lt.s32.totalorder %v3499_v58, 0  ;;  %v1673_v6 = vsel %vm1661_vm3, %v1655_v32, %v1672_v19  ;;  %v4846_v30 = vmul.u32.u64.low %v4814_v23, %v1670_v49  ;;  %v4847_v33 = vmul.u32.u64.high %v4814_v23, %v1670_v49, %v4846_v30 }
 0x14e   : > { %v1386_v63 = vsel %vm3500_vm4, 0, %v3499_v58  ;;  %v1674_v10 = vsel %vm1660_vm2, %v1671_v56, %v1673_v6  ;;  %vm1534_vm5 = vcmp.gt.s32.totalorder %v1533_v31, 0  ;;  %v1666_v3 = vsel %vm1660_vm2, %v1663_v5, %v1665_v14 }
 0x14f   : > { %v1387_v38 = vsub.s32 32, %v1386_v63  ;;  %v1391_v17 = vsub.s32 4294967266, %v1386_v63  ;;  %v1535_v45 = vsel %vm1534_vm5, %v1533_v31, 0  ;;  %v1293_v7 = vcvt.s32.f32 %v4820_v9 }
 0x150   : > { %v4854_v11 = vmul.u32.u64.low %v4814_v23, %v1674_v10  ;;  %v4855_v32 = vmul.u32.u64.high %v4814_v23, %v1674_v10, %v4854_v11  ;;  %v1537_v34 = vand.u32 31, %v1535_v45  ;;  %v1685_v42 = vadd.s32 1, %v4847_v33 }
 0x151   : > { %v1389_v59 = vshrl.u32 %v4811_v35, %v1387_v38  ;;  %v1392_v27 = vadd.s32 127, %v1391_v17  ;;  %v4859_v62 = vshll.u32 %v1531_v57, 8  ;;  %v1291_v39 = vand.u32 2147483647, %v1290_v18 }
 0x152   : > { %v1388_v58 = vshll.u32 %v4822_v43, %v1386_v63  ;;  %v1682_v25 = vmul.u32 %v4814_v23, %v1666_v3  ;;  %v1538_v5 = vsub.s32 32, %v1537_v34  ;;  %v4863_v9 = vshrl.u32 %v1535_v45, 5 }
 0x153   : > { %v1393_v54 = vshll.u32 %v1392_v27, 23  ;;  %v1540_v56 = vshll.u32 %v6333_v15, %v1537_v34  ;;  %v1543_v14 = vshll.u32 %v6334_v28, %v1537_v34  ;;  %vm1684_vm6 = vc.u32 %v4855_v32, %v4846_v30 }
 0x154   : > { %v1390_v49 = vor.u32 %v1389_v59, %v1388_v58  ;;  %v1541_v35 = vshrl.u32 %v6334_v28, %v1538_v5  ;;  %v1546_v57 = vshll.u32 %v6335_v61, %v1537_v34  ;;  %v1686_v43 = vsel %vm1684_vm6, %v1685_v42, %v4847_v33 }
 0x155   : > { %v1394_v19 = vor.u32 4788187, %v1393_v54  ;;  %v1544_v23 = vshrl.u32 %v6335_v61, %v1538_v5  ;;  %v1549_v31 = vshll.u32 %v6325_v51, %v1537_v34  ;;  %v1687_v6 = vadd.s32 %v1686_v43, %v1682_v25 }
 0x156   : > { %v1542_v18 = vor.u32 %v1541_v35, %v1540_v56  ;;  %v1547_v63 = vshrl.u32 %v6325_v51, %v1538_v5  ;;  %v1550_v10 = vshrl.u32 %v6327_v26, %v1538_v5  ;;  %v1552_v17 = vshll.u32 %v6327_v26, %v1537_v34 }
 0x157   : > { %v1545_v38 = vor.u32 %v1544_v23, %v1543_v14  ;;  %v1553_v3 = vshrl.u32 %v6332_v55, %v1538_v5  ;;  %v6258_v45 = vand.u32 2147483647, %v4838_v47  ;;  %v1294_v11 = vmul.f32 %v1293_v7, %v1291_v39  ;;  %v617_v14 = vpop.permute.xlu1 %616 }
 0x158   : > { %v1688_v59 = vadd.s32 536870912, %v1687_v6  ;;  %v1548_v33 = vor.u32 %v1547_v63, %v1546_v57  ;;  %v1551_v27 = vor.u32 %v1550_v10, %v1549_v31  ;;  %vm6289_vm7 = vcmp.lt.s32.totalorder %v4511_v22, 0 }
 0x159   : > { %v1397_v42 = vcvt.s32.f32 %v1390_v49  ;;  %v1554_v58 = vor.u32 %v1553_v3, %v1552_v17  ;;  %vm1555_vm8 = vcmp.lt.s32.totalorder %v4863_v9, 1  ;;  %v1734_v25 = vand.u32 2139095040, %v4838_v47  ;;  %v4906_v3 = vpop.permute.xlu0 %524 }
 0x15a   : > { %v1395_v54 = vand.u32 2147483647, %v1394_v19  ;;  %v4882_v56 = vshrl.u32 %v1688_v59, 30  ;;  %vm1558_vm9 = vcmp.lt.s32.totalorder %v4863_v9, 4  ;;  %v1563_v34 = vsel %vm1555_vm8, %v1542_v18, %v1545_v38 }
 0x15b   : > { %vm1556_vm10 = vcmp.lt.s32.totalorder %v4863_v9, 2  ;;  %vm1557_vm12 = vcmp.lt.s32.totalorder %v4863_v9, 3  ;;  %v1564_v7 = vsel %vm1558_vm9, %v1551_v27, 920167782  ;;  %v1567_v39 = vsel %vm1555_vm8, %v1545_v38, %v1548_v33 }
 0x15c   : > { %6341 = vst [vmem:[#allocation24_spill] sm:$0xff] %v4882_v56  ;;  %vm6297_vm13 = vcmp.lt.s32.totalorder %v4330_v16, 0  ;;  %v1690_v49 = vshll.u32 %v4882_v56, 30  ;;  %v1560_v35 = vsel %vm1558_vm9, %v1548_v33, 2102212464  ;;  %v1565_v57 = vsel %vm1557_vm12, %v1548_v33, %v1564_v7 }
 0x15d   : > { %v1568_v19 = vsel %vm1558_vm9, %v1554_v58, 1326507024  ;;  %v6342_v43 = vand.u32 2147483647, %v4511_v22  ;;  %v6343_v23 = vmov 0  ;;  %v1295_v31 = vxor.u32 2147483648, %v1294_v11 }
 0x15e   : > { %v1539_v63 = vshrl.u32 %v6333_v15, %v1538_v5  ;;  %v1566_v10 = vsel %vm1556_vm10, %v1563_v34, %v1565_v57  ;;  %v1569_v17 = vsel %vm1557_vm12, %v1551_v27, %v1568_v19  ;;  %v1398_v59 = vmul.f32 %v1397_v42, %v1395_v54 }
 0x15f   : > { %vm4897_vm14 = vcmp.le.f32.partialorder %v6342_v43, 0.7853982  ;;  %v4908_v33 = vsub.s32 %v1687_v6, %v1690_v49  ;;  %v1570_v58 = vsel %vm1556_vm10, %v1567_v39, %v1569_v17  ;;  %v1735_v7 = vshrl.u32 %v1734_v25, 23 }
 0x160   : > { %v6344_v23 = vsel %vm4897_vm14, 4294967295, %v6343_v23  ;;  %vm6303_vm0 = vcmp.lt.s32.totalorder %v4403_v29, 0  ;;  %vm6287_vm1 = vcmp.lt.s32.totalorder %v4448_v53, 0  ;;  %v1559_v5 = vsel %vm1555_vm8, %v1539_v63, %v1542_v18  ;;  %v4948_v63 = vpop.permute.xlu0 %528 }
 0x161   : > { %6345 = vst [vmem:[#allocation25_spill] sm:$0xff] %v6344_v23  ;;  %v1561_v34 = vsel %vm1557_vm12, %v1545_v38, %v1560_v35  ;;  %v4919_v27 = vmul.u32.u64.low %v4859_v62, %v1570_v58  ;;  %v4920_v57 = vmul.u32.u64.high %v4859_v62, %v1570_v58, %v4919_v27  ;;  %v6346_v6 = vcvt.s32.f32 %v4787_v44  ;;  %v4935_v35 = vpop.permute.xlu1 %438 }
 0x162   : > { %v4927_v25 = vmul.u32.u64.low %v4859_v62, %v1566_v10  ;;  %v4928_v54 = vmul.u32.u64.high %v4859_v62, %v1566_v10, %v4927_v25  ;;  %v650_v39 = vmul.f32 %v4295_v40, %v617_v14  ;;  %3978 = vcosq.f32 %v4689_v8 }
 0x163   : > { %v1502_v42 = vmul.f32 %v6346_v6, %v1499_v0  ;;  %v1191_v18 = vxor.u32 2147483648, %v4782_v24  ;;  %v1693_v38 = vsub.s32 0, %v4908_v33  ;;  %v3513_v49 = vadd.s32 4294967169, %v1735_v7 }
 0x164   : > { %3980 = vsinq.f32 %v4689_v8  ;;  %v1296_v44 = vsel %vm6289_vm7, %v1295_v31, %v1294_v11  ;;  %v566_v48 = vadd.f32 %v4806_v20, %v4796_v12  ;;  %v1562_v0 = vsel %vm1556_vm10, %v1559_v5, %v1561_v34 }
 0x165   : > { %v1399_v14 = vxor.u32 2147483648, %v1398_v59  ;;  %vm1580_vm2 = vc.u32 %v4920_v57, %v4927_v25  ;;  %v1738_v19 = vand.u32 8388607, %v6258_v45  ;;  %v1741_v43 = vadd.s32 1, %v3513_v49  ;;  %v521_v6 = vpop.permute.xlu1 %520 }
 0x166   : > { %v983_v8 = vxor.u32 2147483648, %v4785_v1  ;;  %v1503_v10 = vxor.u32 2147483648, %v1502_v42  ;;  %v1581_v11 = vadd.s32 1, %v4928_v54  ;;  %v666_v31 = vadd.f32 %v650_v39, %v566_v48  ;;  %v621_v39 = vpop.permute.xlu0 %620 }
 0x167   : > { %v4955_v12 = vsel %vm6297_vm13, %v1191_v18, %v4782_v24  ;;  %v3510_v20 = vmin.u32 %v1693_v38, %v4908_v33  ;;  %v1578_v9 = vmul.u32 %v4859_v62, %v1562_v0  ;;  %vm1742_vm3 = vcmp.gt.s32.totalorder %v1741_v43, 0 }
 0x168   : > { %6347 = vst [vmem:[#allocation26_spill] sm:$0xff] %v4955_v12  ;;  %v1299_v17 = vsel %vm4897_vm14, %v4511_v22, %v1296_v44  ;;  %vm6288_vm4 = vcmp.lt.s32.totalorder %v4608_v2, 0  ;;  %v1582_v58 = vsel %vm1580_vm2, %v1581_v11, %v4928_v54  ;;  %v1743_v7 = vsel %vm1742_vm3, %v1741_v43, 0 }
 0x169   : > { %v1400_v5 = vsel %vm6288_vm4, %v1399_v14, %v1398_v59  ;;  %v1583_v34 = vadd.s32 %v1582_v58, %v1578_v9  ;;  %v1739_v24 = vor.u32 8388608, %v1738_v19  ;;  %v1745_v27 = vand.u32 31, %v1743_v7 }
 0x16a   : > { %v4969_v62 = vsel %vm6303_vm0, %v983_v8, %v4785_v1  ;;  %v4973_v18 = vsel %vm6287_vm1, %v1503_v10, %v1502_v42  ;;  %v6349_v54 = vand.u32 2147483647, %v4608_v2  ;;  %v6350_v38 = vmov 0 }
 0x16b   : > { %6348 = vst [vmem:[#allocation27_spill] sm:$0xff] %v4973_v18  ;;  %v4982_v59 = vadd.f32 %v4302_v52, %v666_v31  ;;  %3982 = vcosq.f32 %v1299_v17  ;;  %v1695_v49 = vclz %v3510_v20  ;;  %v1584_v44 = vadd.s32 536870912, %v1583_v34 }
 0x16c   : > { %vm4977_vm5 = vcmp.le.f32.partialorder %v6349_v54, 0.7853982  ;;  %v1746_v48 = vsub.s32 32, %v1745_v27  ;;  %3984 = vsinq.f32 %v1299_v17  ;;  %v551_v42 = vmul.f32 %v4288_v36, %v521_v6 }
 0x16d   : > { %v6351_v38 = vsel %vm4977_vm5, 4294967295, %v6350_v38  ;;  %v4987_v1 = vsel %vm4977_vm5, %v4608_v2, %v1400_v5  ;;  %v4991_v0 = vmul.f32 %v4295_v40, %v621_v39  ;;  %v4993_v14 = vshrl.u32 %v1584_v44, 30 }
 0x16e   : > { %6352 = vst [vmem:[#allocation28_spill] sm:$0xff] %v6351_v38  ;;  %v1749_v19 = vshrl.u32 %v6334_v28, %v1746_v48  ;;  %v1752_v43 = vshrl.u32 %v6335_v61, %v1746_v48  ;;  %v4997_v8 = vshll.u32 %v1739_v24, 8  ;;  %v1748_v10 = vshll.u32 %v6333_v15, %v1745_v27 }
 0x16f   : > { %6353 = vst [vmem:[#allocation29_spill] sm:$0xff] %v4993_v14  ;;  %v1751_v11 = vshll.u32 %v6334_v28, %v1745_v27  ;;  %v1755_v31 = vshrl.u32 %v6325_v51, %v1746_v48  ;;  %v1838_v20 = vand.u32 2139095040, %v4982_v59  ;;  %v3511_v9 = vadd.s32 4294967294, %v1695_v49  ;;  %v5005_v6 = vpop.eup %3978 }
 0x170   : > { %v1586_v17 = vshll.u32 %v4993_v14, 30  ;;  %v1744_v58 = vshrl.u32 %v1743_v7, 5  ;;  %v1754_v5 = vshll.u32 %v6335_v61, %v1745_v27  ;;  %v1750_v39 = vor.u32 %v1749_v19, %v1748_v10 }
 0x171   : > { %v1753_v54 = vor.u32 %v1752_v43, %v1751_v11  ;;  %v1757_v24 = vshll.u32 %v6325_v51, %v1745_v27  ;;  %v1758_v44 = vshrl.u32 %v6327_v26, %v1746_v48  ;;  %v5009_v45 = vpop.eup %3980  ;;  %v1760_v49 = vshll.u32 %v6327_v26, %v1745_v27 }
 0x172   : > { %v5011_v56 = vsub.s32 %v1583_v34, %v1586_v17  ;;  %v1756_v38 = vor.u32 %v1755_v31, %v1754_v5  ;;  %v1761_v14 = vshrl.u32 %v6332_v55, %v1746_v48  ;;  %v1839_v18 = vshrl.u32 %v1838_v20, 23 }
 0x173   : > { %v1759_v7 = vor.u32 %v1758_v44, %v1757_v24  ;;  %v567_v19 = vadd.f32 %v551_v42, %v4617_v4  ;;  %vm3512_vm6 = vcmp.lt.s32.totalorder %v3511_v9, 0  ;;  %vm1763_vm8 = vcmp.lt.s32.totalorder %v1744_v58, 1 }
 0x174   : > { %v1589_v43 = vsub.s32 0, %v5011_v56  ;;  %v1762_v10 = vor.u32 %v1761_v14, %v1760_v49  ;;  %v1747_v11 = vshrl.u32 %v6333_v15, %v1746_v48  ;;  %vm1765_vm9 = vcmp.lt.s32.totalorder %v1744_v58, 3 }
 0x175   : > { %vm1766_vm10 = vcmp.lt.s32.totalorder %v1744_v58, 4  ;;  %v1771_v34 = vsel %vm1763_vm8, %v1750_v39, %v1753_v54  ;;  %v1775_v5 = vsel %vm1763_vm8, %v1753_v54, %v1756_v38  ;;  %v5020_v24 = vsel %vm3512_vm6, 0, %v3511_v9 }
 0x176   : > { %v3506_v27 = vmin.u32 %v1589_v43, %v5011_v56  ;;  %v1768_v31 = vsel %vm1766_vm10, %v1756_v38, 2102212464  ;;  %v1772_v17 = vsel %vm1766_vm10, %v1759_v7, 920167782  ;;  %vm1764_vm12 = vcmp.lt.s32.totalorder %v1744_v58, 2 }
 0x177   : > { %v1773_v4 = vsel %vm1765_vm9, %v1756_v38, %v1772_v17  ;;  %v1776_v42 = vsel %vm1766_vm10, %v1762_v10, 1326507024  ;;  %v1767_v44 = vsel %vm1763_vm8, %v1747_v11, %v1750_v39  ;;  %v1769_v21 = vsel %vm1765_vm9, %v1753_v54, %v1768_v31 }
 0x178   : > { %v1591_v20 = vclz %v3506_v27  ;;  %v1774_v14 = vsel %vm1764_vm12, %v1771_v34, %v1773_v4  ;;  %v1777_v48 = vsel %vm1765_vm9, %v1759_v7, %v1776_v42  ;;  %v5025_v49 = vpop.eup %3982  ;;  %v3517_v11 = vadd.s32 4294967169, %v1839_v18 }
 0x179   : > { %6354 = vst [vmem:[#allocation30_spill] sm:$0xff] %v5025_v49  ;;  %v1778_v43 = vsel %vm1764_vm12, %v1775_v5, %v1777_v48  ;;  %v5030_v2 = vmul.u32.u64.low %v4997_v8, %v1774_v14  ;;  %v5031_v9 = vmul.u32.u64.high %v4997_v8, %v1774_v14, %v5030_v2  ;;  %v5034_v53 = vpop.eup %3984  ;;  %3986 = vcosq.f32 %v4987_v1 }
 0x17a   : > { %6355 = vst [vmem:[#allocation31_spill] sm:$0xff] %v5034_v53  ;;  %v3507_v38 = vadd.s32 4294967294, %v1591_v20  ;;  %v5037_v39 = vmul.u32.u64.low %v4997_v8, %v1778_v43  ;;  %v5038_v10 = vmul.u32.u64.high %v4997_v8, %v1778_v43, %v5037_v39  ;;  %v1683_v54 = vadd.s32 %v4846_v30, %v4855_v32 }
 0x17b   : > { %v5045_v7 = vmul.f32 %v4288_v36, %v4906_v3  ;;  %v6356_v34 = vand.u32 2147483647, %v4982_v59  ;;  %v1770_v31 = vsel %vm1764_vm12, %v1767_v44, %v1769_v21  ;;  %v1845_v17 = vadd.s32 1, %v3517_v11 }
 0x17c   : > { %vm3508_vm2 = vcmp.lt.s32.totalorder %v3507_v38, 0  ;;  %v5052_v5 = vmul.f32 %v4290_v37, %v4935_v35  ;;  %v1699_v18 = vsub.s32 32, %v5020_v24  ;;  %v1579_v30 = vadd.s32 %v4927_v25, %v4920_v57 }
 0x17d   : > { %v1842_v27 = vand.u32 8388607, %v6356_v34  ;;  %v1594_v32 = vsel %vm3508_vm2, 0, %v3507_v38  ;;  %v1789_v3 = vadd.s32 1, %v5031_v9  ;;  %v1703_v4 = vsub.s32 4294967266, %v5020_v24 }
 0x17e   : > { %v1595_v42 = vsub.s32 32, %v1594_v32  ;;  %v1599_v20 = vsub.s32 4294967266, %v1594_v32  ;;  %v667_v58 = vadd.f32 %v4991_v0, %v567_v19  ;;  %v1786_v21 = vmul.u32 %v4997_v8, %v1770_v31 }
 0x17f   : > { %vm1788_vm3 = vc.u32 %v5038_v10, %v5030_v2  ;;  %v1843_v35 = vor.u32 8388608, %v1842_v27  ;;  %vm1846_vm6 = vcmp.gt.s32.totalorder %v1845_v17, 0  ;;  %v5066_v43 = vshrl.u32 %v1683_v54, %v1699_v18 }
 0x180   : > { %v1597_v44 = vshrl.u32 %v1579_v30, %v1595_v42  ;;  %v1600_v14 = vadd.s32 127, %v1599_v20  ;;  %v1790_v57 = vsel %vm1788_vm3, %v1789_v3, %v5031_v9  ;;  %v1847_v25 = vsel %vm1846_vm6, %v1845_v17, 0 }
 0x181   : > { %v1791_v38 = vadd.s32 %v1790_v57, %v1786_v21  ;;  %v1849_v39 = vand.u32 31, %v1847_v25  ;;  %v5068_v0 = vadd.s32 127, %v1703_v4  ;;  %v1596_v8 = vshll.u32 %v5011_v56, %v1594_v32 }
 0x182   : > { %v1601_v19 = vshll.u32 %v1600_v14, 23  ;;  %v5072_v11 = vadd.f32 %v4302_v52, %v667_v58  ;;  %v1848_v27 = vshrl.u32 %v1847_v25, 5  ;;  %v5074_v9 = vshll.u32 %v1843_v35, 8 }
 0x183   : > { %v1792_v34 = vadd.s32 536870912, %v1791_v38  ;;  %v1850_v31 = vsub.s32 32, %v1849_v39  ;;  %v1598_v17 = vor.u32 %v1597_v44, %v1596_v8  ;;  %v1852_v54 = vshll.u32 %v6333_v15, %v1849_v39 }
 0x184   : > { %v1602_v30 = vor.u32 4788187, %v1601_v19  ;;  %v1855_v18 = vshll.u32 %v6334_v28, %v1849_v39  ;;  %v1858_v32 = vshll.u32 %v6335_v61, %v1849_v39  ;;  %v1861_v20 = vshll.u32 %v6325_v51, %v1849_v39 }
 0x185   : > { %v5078_v3 = vshrl.u32 %v1792_v34, 30  ;;  %v1853_v4 = vshrl.u32 %v6334_v28, %v1850_v31  ;;  %v1856_v56 = vshrl.u32 %v6335_v61, %v1850_v31  ;;  %v1859_v42 = vshrl.u32 %v6325_v51, %v1850_v31 }
 0x186   : > { %v1862_v58 = vshrl.u32 %v6327_v26, %v1850_v31  ;;  %v1864_v21 = vshll.u32 %v6327_v26, %v1849_v39  ;;  %v1865_v57 = vshrl.u32 %v6332_v55, %v1850_v31  ;;  %v5089_v25 = vpop.eup %3986  ;;  %v1942_v48 = vand.u32 2139095040, %v5072_v11 }
 0x187   : > { %6357 = vst [vmem:[#allocation32_spill] sm:$0xff] %v5078_v3  ;;  %v1794_v35 = vshll.u32 %v5078_v3, 30  ;;  %v1854_v44 = vor.u32 %v1853_v4, %v1852_v54  ;;  %v1857_v14 = vor.u32 %v1856_v56, %v1855_v18  ;;  %6358 = vst [vmem:[#allocation33_spill] sm:$0xff] %v5089_v25  ;;  %v1860_v8 = vor.u32 %v1859_v42, %v1858_v32 }
 0x188   : > { %v1863_v19 = vor.u32 %v1862_v58, %v1861_v20  ;;  %v1605_v60 = vcvt.s32.f32 %v1598_v17  ;;  %v1866_v53 = vor.u32 %v1865_v57, %v1864_v21  ;;  %vm1867_vm8 = vcmp.lt.s32.totalorder %v1848_v27, 1 }
 0x189   : > { %v5093_v49 = vsub.s32 %v1791_v38, %v1794_v35  ;;  %v1603_v39 = vand.u32 2147483647, %v1602_v30  ;;  %v1851_v3 = vshrl.u32 %v6333_v15, %v1850_v31  ;;  %vm1870_vm9 = vcmp.lt.s32.totalorder %v1848_v27, 4 }
 0x18a   : > { %v1875_v54 = vsel %vm1867_vm8, %v1854_v44, %v1857_v14  ;;  %vm1869_vm10 = vcmp.lt.s32.totalorder %v1848_v27, 3  ;;  %v1872_v4 = vsel %vm1870_vm9, %v1860_v8, 2102212464  ;;  %v1876_v56 = vsel %vm1870_vm9, %v1863_v19, 920167782 }
 0x18b   : > { %v1797_v18 = vsub.s32 0, %v5093_v49  ;;  %vm1868_vm12 = vcmp.lt.s32.totalorder %v1848_v27, 2  ;;  %v1877_v32 = vsel %vm1869_vm10, %v1860_v8, %v1876_v56  ;;  %v1879_v42 = vsel %vm1867_vm8, %v1857_v14, %v1860_v8 }
 0x18c   : > { %v1880_v20 = vsel %vm1870_vm9, %v1866_v53, 1326507024  ;;  %v1871_v38 = vsel %vm1867_vm8, %v1851_v3, %v1854_v44  ;;  %v1873_v58 = vsel %vm1869_vm10, %v1857_v14, %v1872_v4  ;;  %v1878_v21 = vsel %vm1868_vm12, %v1875_v54, %v1877_v32 }
 0x18d   : > { %v3514_v17 = vmin.u32 %v1797_v18, %v5093_v49  ;;  %v1705_v30 = vshll.u32 %v5068_v0, 23  ;;  %vm6286_vm2 = vcmp.lt.s32.totalorder %v4776_v50, 0  ;;  %v1881_v31 = vsel %vm1869_vm10, %v1863_v19, %v1880_v20 }
 0x18e   : > { %v5102_v35 = vmul.u32.u64.low %v5074_v9, %v1878_v21  ;;  %v5103_v57 = vmul.u32.u64.high %v5074_v9, %v1878_v21, %v5102_v35  ;;  %v1606_v34 = vmul.f32 %v1605_v60, %v1603_v39  ;;  %v1882_v53 = vsel %vm1868_vm12, %v1879_v42, %v1881_v31 }
 0x18f   : > { %v1799_v56 = vclz %v3514_v17  ;;  %v6359_v8 = vand.u32 2147483647, %v5072_v11  ;;  %v1874_v44 = vsel %vm1868_vm12, %v1871_v38, %v1873_v58  ;;  %v1943_v54 = vshrl.u32 %v1942_v48, 23 }
 0x190   : > { %v5111_v14 = vmul.u32.u64.low %v5074_v9, %v1882_v53  ;;  %v5112_v0 = vmul.u32.u64.high %v5074_v9, %v1882_v53, %v5111_v14  ;;  %3988 = vsinq.f32 %v4987_v1  ;;  %v5117_v18 = vmul.f32 %v4288_v36, %v4948_v63 }
 0x191   : > { %v1946_v3 = vand.u32 8388607, %v6359_v8  ;;  %v3515_v19 = vadd.s32 4294967294, %v1799_v56  ;;  %v5121_v60 = vadd.f32 %v5045_v7, %v5052_v5  ;;  %v6360_v27 = vshll.u32 %v4908_v33, %v5020_v24 }
 0x192   : > { %v5129_v4 = vor.u32 4788187, %v1705_v30  ;;  %v1893_v48 = vadd.s32 1, %v5103_v57  ;;  %v3521_v1 = vadd.s32 4294967169, %v1943_v54  ;;  %v1607_v32 = vxor.u32 2147483648, %v1606_v34 }
 0x193   : > { %v5127_v39 = vor.u32 %v5066_v43, %v6360_v27  ;;  %vm3516_vm3 = vcmp.lt.s32.totalorder %v3515_v19, 0  ;;  %v1890_v63 = vmul.u32 %v5074_v9, %v1874_v44  ;;  %v709_v42 = vshrl.u32 %v6334_v28, %v4583_v41 }
 0x194   : > { %v1802_v7 = vsel %vm3516_vm3, 0, %v3515_v19  ;;  %vm1892_vm6 = vc.u32 %v5112_v0, %v5102_v35  ;;  %v1947_v33 = vor.u32 8388608, %v1946_v3  ;;  %v1949_v24 = vadd.s32 1, %v3521_v1 }
 0x195   : > { %v1894_v5 = vsel %vm1892_vm6, %v1893_v48, %v5103_v57  ;;  %v5140_v43 = vshrl.u32 %v6333_v15, %v4583_v41  ;;  %v708_v20 = vshll.u32 %v6333_v15, %v4535_v13  ;;  %v712_v9 = vshrl.u32 %v6335_v61, %v4583_v41 }
 0x196   : > { %v1787_v17 = vadd.s32 %v5030_v2, %v5038_v10  ;;  %v1803_v38 = vsub.s32 32, %v1802_v7  ;;  %v1895_v58 = vadd.s32 %v1894_v5, %v1890_v63  ;;  %vm1950_vm8 = vcmp.gt.s32.totalorder %v1949_v24, 0 }
 0x197   : > { %v5150_v21 = vsel %vm6286_vm2, %v1607_v32, %v1606_v34  ;;  %v1807_v30 = vsub.s32 4294967266, %v1802_v7  ;;  %v1951_v31 = vsel %vm1950_vm8, %v1949_v24, 0  ;;  %v711_v57 = vshll.u32 %v6334_v28, %v4535_v13 }
 0x198   : > { %v1896_v56 = vadd.s32 536870912, %v1895_v58  ;;  %v1953_v53 = vand.u32 31, %v1951_v31  ;;  %v5154_v8 = vshll.u32 %v1947_v33, 8  ;;  %v5156_v3 = vor.u32 %v709_v42, %v708_v20 }
 0x199   : > { %v5158_v44 = vor.u32 %v712_v9, %v711_v57  ;;  %v714_v2 = vshll.u32 %v6335_v61, %v4535_v13  ;;  %v715_v10 = vshrl.u32 %v6325_v51, %v4583_v41  ;;  %v717_v34 = vshll.u32 %v6325_v51, %v4535_v13 }
 0x19a   : > { %v1804_v14 = vshll.u32 %v5093_v49, %v1802_v7  ;;  %v1805_v54 = vshrl.u32 %v1787_v17, %v1803_v38  ;;  %v5167_v19 = vshrl.u32 %v1896_v56, 30  ;;  %v1954_v27 = vsub.s32 32, %v1953_v53 }
 0x19b   : > { %v1808_v48 = vadd.s32 127, %v1807_v30  ;;  %v1952_v1 = vshrl.u32 %v1951_v31, 5  ;;  %v1956_v32 = vshll.u32 %v6333_v15, %v1953_v53  ;;  %v1959_v63 = vshll.u32 %v6334_v28, %v1953_v53 }
 0x19c   : > { %6361 = vst [vmem:[#allocation34_spill] sm:$0xff] %v5167_v19  ;;  %v1898_v42 = vshll.u32 %v5167_v19, 30  ;;  %v1957_v33 = vshrl.u32 %v6334_v28, %v1954_v27  ;;  %v1960_v24 = vshrl.u32 %v6335_v61, %v1954_v27  ;;  %v1962_v5 = vshll.u32 %v6335_v61, %v1953_v53 }
 0x19d   : > { %v1963_v49 = vshrl.u32 %v6325_v51, %v1954_v27  ;;  %v1965_v7 = vshll.u32 %v6325_v51, %v1953_v53  ;;  %v1966_v20 = vshrl.u32 %v6327_v26, %v1954_v27  ;;  %v1968_v9 = vshll.u32 %v6327_v26, %v1953_v53  ;;  %v5179_v17 = vpop.eup %3988 }
 0x19e   : > { %6362 = vst [vmem:[#allocation35_spill] sm:$0xff] %v5179_v17  ;;  %v5181_v38 = vsub.s32 %v1895_v58, %v1898_v42  ;;  %v1958_v30 = vor.u32 %v1957_v33, %v1956_v32  ;;  %v1961_v31 = vor.u32 %v1960_v24, %v1959_v63  ;;  %v1969_v57 = vshrl.u32 %v6332_v55, %v1954_v27 }
 0x19f   : > { %v5184_v56 = vor.u32 %v1805_v54, %v1804_v14  ;;  %v1964_v19 = vor.u32 %v1963_v49, %v1962_v5  ;;  %v1967_v25 = vor.u32 %v1966_v20, %v1965_v7  ;;  %v718_v23 = vshrl.u32 %v6327_v26, %v4583_v41 }
 0x1a0   : > { %v1809_v22 = vshll.u32 %v1808_v48, 23  ;;  %v1901_v46 = vsub.s32 0, %v5181_v38  ;;  %v1970_v12 = vor.u32 %v1969_v57, %v1968_v9  ;;  %vm1971_vm9 = vcmp.lt.s32.totalorder %v1952_v1, 1 }
 0x1a1   : > { %v1955_v53 = vshrl.u32 %v6333_v15, %v1954_v27  ;;  %vm1974_vm10 = vcmp.lt.s32.totalorder %v1952_v1, 4  ;;  %v1979_v58 = vsel %vm1971_vm9, %v1958_v30, %v1961_v31  ;;  %v721_v32 = vshrl.u32 %v6332_v55, %v4583_v41 }
 0x1a2   : > { %v3518_v14 = vmin.u32 %v1901_v46, %v5181_v38  ;;  %vm1973_vm12 = vcmp.lt.s32.totalorder %v1952_v1, 3  ;;  %v1976_v54 = vsel %vm1974_vm10, %v1964_v19, 2102212464  ;;  %v1980_v63 = vsel %vm1974_vm10, %v1967_v25, 920167782 }
 0x1a3   : > { %vm1972_vm3 = vcmp.lt.s32.totalorder %v1952_v1, 2  ;;  %v1981_v42 = vsel %vm1973_vm12, %v1964_v19, %v1980_v63  ;;  %v1983_v33 = vsel %vm1971_vm9, %v1961_v31, %v1964_v19  ;;  %v1984_v48 = vsel %vm1974_vm10, %v1970_v12, 1326507024 }
 0x1a4   : > { %v1903_v24 = vclz %v3518_v14  ;;  %v1975_v5 = vsel %vm1971_vm9, %v1955_v53, %v1958_v30  ;;  %v1977_v49 = vsel %vm1973_vm12, %v1961_v31, %v1976_v54  ;;  %v1982_v7 = vsel %vm1972_vm3, %v1979_v58, %v1981_v42  ;;  %v4054_v30 = vld [vmem:[%s4242_s25 + $0x48] sm:$0xff] }
 0x1a5   : > { %v1810_v27 = vor.u32 4788187, %v1809_v22  ;;  %v1985_v20 = vsel %vm1973_vm12, %v1967_v25, %v1984_v48  ;;  %v5195_v9 = vmul.u32.u64.low %v5154_v8, %v1982_v7  ;;  %v5196_v57 = vmul.u32.u64.high %v5154_v8, %v1982_v7, %v5195_v9 }
 0x1a6   : > { %v3519_v41 = vadd.s32 4294967294, %v1903_v24  ;;  %v1986_v46 = vsel %vm1972_vm3, %v1983_v33, %v1985_v20  ;;  %v716_v17 = vor.u32 %v715_v10, %v714_v2  ;;  %v720_v19 = vshll.u32 %v6327_v26, %v4535_v13  ;;  %v6366_v13 = vld [vmem:[#allocation12_spill] sm:$0xff] }
 0x1a7   : > { %v6363_v12 = vand.u32 2147483647, %v4776_v50  ;;  %v1978_v22 = vsel %vm1972_vm3, %v1975_v5, %v1977_v49  ;;  %v5210_v25 = vmul.u32.u64.low %v5154_v8, %v1986_v46  ;;  %v5211_v31 = vmul.u32.u64.high %v5154_v8, %v1986_v46, %v5210_v25  ;;  %v444_v46 = vpop.permute.xlu1 %443 }
 0x1a8   : > { %v719_v53 = vor.u32 %v718_v23, %v717_v34  ;;  %v1813_v58 = vcvt.s32.f32 %v5184_v56  ;;  %v1891_v2 = vadd.s32 %v5102_v35, %v5112_v0  ;;  %vm3520_vm8 = vcmp.lt.s32.totalorder %v3519_v41, 0 }
 0x1a9   : > { %vm5204_vm6 = vcmp.le.f32.partialorder %v6363_v12, 0.7853982  ;;  %vm723_vm9 = vcmp.lt.s32.totalorder %v6366_v13, 1  ;;  %v1811_v10 = vand.u32 2147483647, %v1810_v27  ;;  %v1906_v14 = vsel %vm3520_vm8, 0, %v3519_v41 }
 0x1aa   : > { %v1997_v54 = vadd.s32 1, %v5196_v57  ;;  %v722_v63 = vor.u32 %v721_v32, %v720_v19  ;;  %v1911_v1 = vsub.s32 4294967266, %v1906_v14  ;;  %v1994_v42 = vmul.u32 %v5154_v8, %v1978_v22  ;;  %v6367_v27 = vld [vmem:[#allocation14_spill] sm:$0xff] }
 0x1ab   : > { %vm725_vm10 = vcmp.lt.s32.totalorder %v6366_v13, 3  ;;  %vm726_vm12 = vcmp.lt.s32.totalorder %v6366_v13, 4  ;;  %vm1996_vm3 = vc.u32 %v5211_v31, %v5195_v9  ;;  %v731_v35 = vsel %vm723_vm9, %v5156_v3, %v5158_v44 }
 0x1ac   : > { %v728_v23 = vsel %vm726_vm12, %v716_v17, 2102212464  ;;  %v732_v0 = vsel %vm726_vm12, %v719_v53, 920167782  ;;  %v1907_v34 = vsub.s32 32, %v1906_v14  ;;  %v1912_v56 = vadd.s32 127, %v1911_v1 }
 0x1ad   : > { %v1998_v32 = vsel %vm1996_vm3, %v1997_v54, %v5196_v57  ;;  %v733_v8 = vsel %vm725_vm10, %v716_v17, %v732_v0  ;;  %vm724_vm8 = vcmp.lt.s32.totalorder %v6366_v13, 2  ;;  %v735_v48 = vsel %vm723_vm9, %v5158_v44, %v716_v17 }
 0x1ae   : > { %v1999_v33 = vadd.s32 %v1998_v32, %v1994_v42  ;;  %v736_v24 = vsel %vm726_vm12, %v722_v63, 1326507024  ;;  %v1913_v5 = vshll.u32 %v1912_v56, 23  ;;  %v734_v49 = vsel %vm724_vm8, %v731_v35, %v733_v8  ;;  %v6371_v8 = vld [vmem:[#allocation17_spill] sm:$0xff] }
 0x1af   : > { %v737_v7 = vsel %vm725_vm10, %v719_v53, %v736_v24  ;;  %v6368_v20 = vor.u32 8388608, %v6367_v27  ;;  %v727_v19 = vsel %vm723_vm9, %v5140_v43, %v5156_v3  ;;  %v729_v17 = vsel %vm725_vm10, %v5158_v44, %v728_v23  ;;  %v6372_v27 = vld [vmem:[#allocation13_spill] sm:$0xff] }
 0x1b0   : > { %v2000_v41 = vadd.s32 536870912, %v1999_v33  ;;  %v738_v12 = vsel %vm724_vm8, %v735_v48, %v737_v7  ;;  %v1611_v22 = vsel %vm5204_vm6, %v4776_v50, %v5150_v21  ;;  %v1909_v25 = vshrl.u32 %v1891_v2, %v1907_v34 }
 0x1b1   : > { %v739_v57 = vshll.u32 %v6368_v20, 8  ;;  %v1814_v63 = vmul.f32 %v1813_v58, %v1811_v10  ;;  %v1908_v44 = vshll.u32 %v5181_v38, %v1906_v14  ;;  %v1914_v42 = vor.u32 4788187, %v1913_v5  ;;  %v6370_v38 = vld [vmem:[#allocation7_spill] sm:$0xff] }
 0x1b2   : > { %v5256_v1 = vshrl.u32 %v2000_v41, 30  ;;  %v5264_v23 = vmul.f32 %v4290_v37, %v444_v46  ;;  %v730_v21 = vsel %vm724_vm8, %v727_v19, %v729_v17  ;;  %3990 = vcosq.f32 %v1611_v22 }
 0x1b3   : > { %v5253_v53 = vmul.u32.u64.low %v739_v57, %v738_v12  ;;  %v5254_v54 = vmul.u32.u64.high %v739_v57, %v738_v12, %v5253_v53  ;;  %v5258_v43 = vmul.u32.u64.low %v739_v57, %v734_v49  ;;  %v5259_v3 = vmul.u32.u64.high %v739_v57, %v734_v49, %v5258_v43 }
 0x1b4   : > { %6369 = vst [vmem:[#allocation12_spill] sm:$0xff] %v5256_v1  ;;  %vm6285_vm9 = vcmp.lt.s32.totalorder %v4838_v47, 0  ;;  %v2002_v58 = vshll.u32 %v5256_v1, 30  ;;  %3992 = vsinq.f32 %v1611_v22  ;;  %v1910_v10 = vor.u32 %v1909_v25, %v1908_v44 }
 0x1b5   : > { %vm748_vm10 = vc.u32 %v5254_v54, %v5258_v43  ;;  %v6290_v14 = vand.u32 2147483647, %v6370_v38  ;;  %v1815_v0 = vxor.u32 2147483648, %v1814_v63  ;;  %v746_v13 = vmul.u32 %v739_v57, %v730_v21 }
 0x1b6   : > { %v5275_v34 = vsub.s32 %v1999_v33, %v2002_v58  ;;  %v749_v56 = vadd.s32 1, %v5259_v3  ;;  %v1915_v32 = vand.u32 2147483647, %v1914_v42  ;;  %v813_v48 = vshrl.u32 %v6334_v28, %v6371_v8 }
 0x1b7   : > { %v816_v24 = vshrl.u32 %v6335_v61, %v6371_v8  ;;  %v819_v5 = vshrl.u32 %v6325_v51, %v6371_v8  ;;  %v821_v33 = vshll.u32 %v6325_v51, %v6372_v27  ;;  %v822_v20 = vshrl.u32 %v6327_v26, %v6371_v8 }
 0x1b8   : > { %v2005_v49 = vsub.s32 0, %v5275_v34  ;;  %v750_v7 = vsel %vm748_vm10, %v749_v56, %v5259_v3  ;;  %v6373_v57 = vand.u32 2147483647, %v4838_v47  ;;  %v6374_v41 = vmov 0 }
 0x1b9   : > { %v1917_v46 = vcvt.s32.f32 %v1910_v10  ;;  %v751_v19 = vadd.s32 %v750_v7, %v746_v13  ;;  %v802_v17 = vand.u32 8388607, %v6290_v14  ;;  %v818_v12 = vshll.u32 %v6335_v61, %v6372_v27  ;;  %v449_v7 = vpop.permute.xlu1 %448 }
 0x1ba   : > { %vm5292_vm12 = vcmp.le.f32.partialorder %v6373_v57, 0.7853982  ;;  %v3522_v22 = vmin.u32 %v2005_v49, %v5275_v34  ;;  %v812_v25 = vshll.u32 %v6333_v15, %v6372_v27  ;;  %v815_v53 = vshll.u32 %v6334_v28, %v6372_v27 }
 0x1bb   : > { %v6375_v41 = vsel %vm5292_vm12, 4294967295, %v6374_v41  ;;  %v823_v3 = vor.u32 %v822_v20, %v821_v33  ;;  %vm6296_vm3 = vcmp.lt.s32.totalorder %v4982_v59, 0  ;;  %v752_v44 = vadd.s32 536870912, %v751_v19  ;;  %v6377_v20 = vld [vmem:[#allocation16_spill] sm:$0xff] }
 0x1bc   : > { %6376 = vst [vmem:[#allocation14_spill] sm:$0xff] %v6375_v41  ;;  %v820_v42 = vor.u32 %v819_v5, %v818_v12  ;;  %v824_v21 = vshll.u32 %v6327_v26, %v6372_v27  ;;  %v825_v58 = vshrl.u32 %v6332_v55, %v6371_v8  ;;  %v1918_v10 = vmul.f32 %v1917_v46, %v1915_v32 }
 0x1bd   : > { %v2007_v13 = vclz %v3522_v22  ;;  %v814_v56 = vor.u32 %v813_v48, %v812_v25  ;;  %v817_v49 = vor.u32 %v816_v24, %v815_v53  ;;  %v1816_v57 = vsel %vm6285_vm9, %v1815_v0, %v1814_v63  ;;  %v6382_v24 = vld [vmem:[#allocation6_spill] sm:$0xff] }
 0x1be   : > { %v753_v35 = vshrl.u32 %v752_v44, 30  ;;  %v826_v33 = vor.u32 %v825_v58, %v824_v21  ;;  %vm830_vm8 = vcmp.lt.s32.totalorder %v6377_v20, 4  ;;  %v803_v5 = vor.u32 8388608, %v802_v17 }
 0x1bf   : > { %v3523_v2 = vadd.s32 4294967294, %v2007_v13  ;;  %v811_v27 = vshrl.u32 %v6333_v15, %v6371_v8  ;;  %v836_v12 = vsel %vm830_vm8, %v823_v3, 920167782  ;;  %v6378_v32 = vand.u32 2147483647, %v4982_v59  ;;  %v5330_v22 = vpop.eup %3990 }
 0x1c0   : > { %v6379_v48 = vmov 0  ;;  %vm693_vm9 = vcmp.lt.s32.totalorder %v6382_v24, 0  ;;  %v754_v63 = vshll.u32 %v753_v35, 30  ;;  %vm827_vm2 = vcmp.lt.s32.totalorder %v6377_v20, 1 }
 0x1c1   : > { %vm5319_vm10 = vcmp.le.f32.partialorder %v6378_v32, 0.7853982  ;;  %vm829_vm1 = vcmp.lt.s32.totalorder %v6377_v20, 3  ;;  %v832_v0 = vsel %vm830_vm8, %v820_v42, 2102212464  ;;  %v1919_v8 = vxor.u32 2147483648, %v1918_v10  ;;  %v5338_v58 = vpop.eup %3992 }
 0x1c2   : > { %v6380_v48 = vsel %vm5319_vm10, 4294967295, %v6379_v48  ;;  %vm3524_vm4 = vcmp.lt.s32.totalorder %v3523_v2, 0  ;;  %v835_v46 = vsel %vm827_vm2, %v814_v56, %v817_v49  ;;  %v837_v17 = vsel %vm829_vm1, %v820_v42, %v836_v12 }
 0x1c3   : > { %6381 = vst [vmem:[#allocation7_spill] sm:$0xff] %v6380_v48  ;;  %v5332_v25 = vsel %vm3524_vm4, 0, %v3523_v2  ;;  %v5334_v53 = vsub.s32 %v751_v19, %v754_v63  ;;  %v839_v44 = vsel %vm827_vm2, %v817_v49, %v820_v42  ;;  %v840_v21 = vsel %vm830_vm8, %v826_v33, 1326507024  ;;  %v533_v2 = vpop.permute.xlu1 %532 }
 0x1c4   : > { %v1819_v13 = vsel %vm5292_vm12, %v4838_v47, %v1816_v57  ;;  %vm828_vm7 = vcmp.lt.s32.totalorder %v6377_v20, 2  ;;  %v831_v32 = vsel %vm827_vm2, %v811_v27, %v814_v56  ;;  %v833_v12 = vsel %vm829_vm1, %v817_v49, %v832_v0 }
 0x1c5   : > { %v757_v19 = vsub.s32 0, %v5334_v53  ;;  %v838_v42 = vsel %vm828_vm7, %v835_v46, %v837_v17  ;;  %v841_v33 = vsel %vm829_vm1, %v823_v3, %v840_v21  ;;  %v843_v63 = vshll.u32 %v803_v5, 8  ;;  %v633_v21 = vpop.permute.xlu0 %632 }
 0x1c6   : > { %v1920_v14 = vsel %vm6296_vm3, %v1919_v8, %v1918_v10  ;;  %v2015_v57 = vsub.s32 4294967266, %v5332_v25  ;;  %v777_v1 = vsub.s32 4, %v753_v35  ;;  %v842_v56 = vsel %vm828_vm7, %v839_v44, %v841_v33 }
 0x1c7   : > { %v2011_v49 = vsub.s32 32, %v5332_v25  ;;  %v3474_v27 = vmin.u32 %v757_v19, %v5334_v53  ;;  %v5358_v0 = vmul.u32.u64.low %v843_v63, %v842_v56  ;;  %v5359_v41 = vmul.u32.u64.high %v843_v63, %v842_v56, %v5358_v0 }
 0x1c8   : > { %3994 = vcosq.f32 %v1819_v13  ;;  %v834_v3 = vsel %vm828_vm7, %v831_v32, %v833_v12  ;;  %v5363_v5 = vmul.u32.u64.low %v843_v63, %v838_v42  ;;  %v5364_v46 = vmul.u32.u64.high %v843_v63, %v838_v42, %v5363_v5 }
 0x1c9   : > { %3996 = vsinq.f32 %v1819_v13  ;;  %v1995_v10 = vadd.s32 %v5195_v9, %v5211_v31  ;;  %v5371_v8 = vadd.f32 %v5117_v18, %v5264_v23  ;;  %v6383_v17 = vand.u32 2147483647, %v6382_v24  ;;  %v625_v31 = vpop.permute.xlu1 %624 }
 0x1ca   : > { %v759_v20 = vclz %v3474_v27  ;;  %v5382_v32 = vsel %vm5319_vm10, %v4982_v59, %v1920_v14  ;;  %v2016_v13 = vadd.s32 127, %v2015_v57  ;;  %v747_v9 = vadd.s32 %v5258_v43, %v5254_v54 }
 0x1cb   : > { %vm5375_vm1 = vcmp.le.f32.partialorder %v6383_v17, 0.7853982  ;;  %v778_v18 = vsel %vm693_vm9, %v777_v1, %v753_v35  ;;  %v2013_v23 = vshrl.u32 %v1995_v10, %v2011_v49  ;;  %v850_v19 = vmul.u32 %v843_v63, %v834_v3  ;;  %v3961_v1 = vld [vmem:[%s6207_s1 + $0x10] ss:$0 sps:$4 sm:$0x11]  }
 0x1cc   : > { %v3475_v12 = vadd.s32 4294967294, %v759_v20  ;;  %vm852_vm7 = vc.u32 %v5359_v41, %v5363_v5  ;;  %v853_v42 = vadd.s32 1, %v5364_v46  ;;  %v470_v33 = vmul.f32 %v4290_v37, %v449_v7 }
 0x1cd   : > { %v554_v14 = vmul.f32 %v4288_v36, %v533_v2  ;;  %v654_v57 = vmul.f32 %v4295_v40, %v633_v21  ;;  %v652_v54 = vmul.f32 %v4295_v40, %v625_v31  ;;  %vm2554_vm2 = vcmask 1040384  }
 0x1ce   : > { %vm3476_vm4 = vcmp.lt.s32.totalorder %v3475_v12, 0  ;;  %v2017_v43 = vshll.u32 %v2016_v13, 23  ;;  %v854_v63 = vsel %vm852_vm7, %v853_v42, %v5364_v46  ;;  %v4133_v49 = vmov 0   ;;  %v3963_v13 = vld [vmem:[%s6207_s1 + $0x8] sm:$0xff]  }
 0x1cf   : > { %v762_v35 = vsel %vm3476_vm4, 0, %v3475_v12  ;;  %v570_v56 = vadd.f32 %v554_v14, %v470_v33  ;;  %3959 = vset.pattern.permute.xlu1 %v4133_v49  ;;  %3960 = vset.pattern.permute.xlu0 %v4133_v49  ;;  %v2012_v36 = vshll.u32 %v5275_v34, %v5332_v25  ;;  %v855_v2 = vadd.s32 %v854_v63, %v850_v19 }
 0x1d0   : > { %v763_v37 = vsub.s32 32, %v762_v35  ;;  %v767_v7 = vsub.s32 4294967266, %v762_v35  ;;  %v764_v27 = vshll.u32 %v5334_v53, %v762_v35  ;;  %v668_v3 = vadd.f32 %v652_v54, %v5121_v60 }
 0x1d1   : > { %v670_v0 = vadd.f32 %v654_v57, %v570_v56  ;;  %v2556_v10 = vsel %vm2554_vm2, 65535, %v4133_v49  ;;  %v856_v21 = vadd.s32 536870912, %v855_v2  ;;  %v2014_v31 = vor.u32 %v2013_v23, %v2012_v36 }
 0x1d2   : > { %v765_v17 = vshrl.u32 %v747_v9, %v763_v37  ;;  %v768_v20 = vadd.s32 127, %v767_v7  ;;  %v2558_v46 = vand.u32 %v3961_v1, %v2556_v10  ;;  %v2018_v12 = vor.u32 4788187, %v2017_v43  ;;  %v3965_v43 = vld [vmem:[%s6207_s1] sm:$0xff]   ;;  %v629_v37 = vpop.permute.xlu1 %628 }
 0x1d3   : > { %v780_v34 = vsel %vm5375_vm1, 0, %v778_v18  ;;  %v5409_v25 = vadd.f32 %v4302_v52, %v670_v0  ;;  %v6386_v60 = vand.u32 2147483647, %v6370_v38  ;;  %v857_v42 = vshrl.u32 %v856_v21, 30 }
 0x1d4   : > { %v766_v53 = vor.u32 %v765_v17, %v764_v27  ;;  %v769_v19 = vshll.u32 %v768_v20, 23  ;;  %3705 = vmatprep.subr.bf16.mxu1 %v2558_v46  ;;  %vm797_vm7 = vcmp.lt.s32.totalorder %v6370_v38, 0  ;;  %v5421_v18 = vadd.f32 %v4302_v52, %v668_v3 }
 0x1d5   : > { %vm5413_vm8 = vcmp.le.f32.partialorder %v6386_v60, 0.7853982  ;;  %v6295_v23 = vand.u32 2147483647, %v5409_v25  ;;  %v2254_v33 = vand.u32 2139095040, %v5409_v25  ;;  %3706 = vmatpush3.bf16.msra.mxu1 %v2558_v46  ;;  %v5423_v14 = vpop.eup %3994  ;;  %3998 = vcosq.f32 %v5382_v32 }
 0x1d6   : > { %v770_v57 = vor.u32 4788187, %v769_v19  ;;  %v784_v54 = vadd.s32 3, %v780_v34  ;;  %v858_v1 = vshll.u32 %v857_v42, 30  ;;  %3707 = vmatprep.subr.bf16.mxu1 %v3963_v13  ;;  %v5429_v35 = vpop.eup %3996  ;;  %v2019_v63 = vand.u32 2147483647, %v2018_v12 }
 0x1d7   : > { %v2021_v56 = vcvt.s32.f32 %v2014_v31  ;;  %v881_v49 = vsub.s32 4, %v857_v42  ;;  %v2255_v36 = vshrl.u32 %v2254_v33, 23  ;;  %v773_v27 = vcvt.s32.f32 %v766_v53  ;;  %v5445_v12 = vld [vmem:[%s6208_s2 + $0x8] ss:$0 sps:$4 sm:$0xff]  }
 0x1d8   : > { %v771_v7 = vand.u32 2147483647, %v770_v57  ;;  %v5431_v0 = vsub.s32 %v855_v2, %v858_v1  ;;  %v2258_v3 = vand.u32 8388607, %v6295_v23  ;;  %v6294_v20 = vand.u32 2147483647, %v5421_v18 }
 0x1d9   : > { %v882_v10 = vsel %vm797_vm7, %v881_v49, %v857_v42  ;;  %v3533_v17 = vadd.s32 4294967169, %v2255_v36  ;;  %v2046_v21 = vand.u32 2139095040, %v5421_v18  ;;  %3708 = vmatpush3.bf16.msra.mxu1 %v3963_v13  ;;  %4000 = vsinq.f32 %v5382_v32 }
 0x1da   : > { %v774_v46 = vmul.f32 %v773_v27, %v771_v7  ;;  %v861_v31 = vsub.s32 0, %v5431_v0  ;;  %v653_v2 = vmul.f32 %v4295_v40, %v629_v37  ;;  %3709 = vmatprep.subr.bf16.mxu1 %v3965_v43  ;;  %v5447_v34 = vmul.f32 %v2021_v56, %v2019_v63 }
 0x1db   : > { %v5449_v53 = vand.u32 3, %v784_v54  ;;  %v2261_v19 = vadd.s32 1, %v3533_v17  ;;  %v2047_v60 = vshrl.u32 %v2046_v21, 23  ;;  %v884_v42 = vsel %vm5413_vm8, 0, %v882_v10 }
 0x1dc   : > { %v775_v13 = vxor.u32 2147483648, %v774_v46  ;;  %v3478_v32 = vmin.u32 %v861_v31, %v5431_v0  ;;  %v2259_v33 = vor.u32 8388608, %v2258_v3  ;;  %v5456_v57 = vand.u32 8388607, %v6294_v20 }
 0x1dd   : > { %vm2262_vm4 = vcmp.gt.s32.totalorder %v2261_v19, 0  ;;  %v3525_v40 = vadd.s32 4294967169, %v2047_v60  ;;  %vm2413_vm2 = vcmask 1043456   ;;  %3710 = vmatpush3.bf16.msra.mxu1 %v3965_v43  ;;  %v669_v56 = vadd.f32 %v653_v2, %v5371_v8 }
 0x1de   : > { %v776_v54 = vsel %vm693_vm9, %v775_v13, %v774_v46  ;;  %v863_v1 = vclz %v3478_v32  ;;  %v2263_v63 = vsel %vm2262_vm4, %v2261_v19, 0  ;;  %3819 = vmatprep.subr.msk.bf16.mxu0 %vm2413_vm2, %v5445_v12  ;;  %v851_v37 = vadd.s32 %v5363_v5, %v5359_v41 }
 0x1df   : > { %v779_v36 = vsel %vm5375_vm1, %v6382_v24, %v776_v54  ;;  %v5469_v43 = vadd.s32 3, %v884_v42  ;;  %v2265_v27 = vand.u32 31, %v2263_v63  ;;  %v5471_v3 = vshll.u32 %v2259_v33, 8 }
 0x1e0   : > { %4002 = vcosq.f32 %v779_v36  ;;  %v3479_v7 = vadd.s32 4294967294, %v863_v1  ;;  %v2264_v8 = vshrl.u32 %v2263_v63, 5  ;;  %v5474_v17 = vadd.s32 1, %v3525_v40 }
 0x1e1   : > { %4004 = vsinq.f32 %v779_v36  ;;  %v2266_v21 = vsub.s32 32, %v2265_v27  ;;  %v2268_v44 = vshll.u32 %v6333_v15, %v2265_v27  ;;  %v5478_v46 = vadd.f32 %v4302_v52, %v669_v56 }
 0x1e2   : > { %vm3480_vm9 = vcmp.lt.s32.totalorder %v3479_v7, 0  ;;  %v5480_v41 = vpop.eup %3998  ;;  %v2271_v31 = vshll.u32 %v6334_v28, %v2265_v27  ;;  %v2274_v2 = vshll.u32 %v6335_v61, %v2265_v27  ;;  %v2277_v19 = vshll.u32 %v6325_v51, %v2265_v27 }
 0x1e3   : > { %6389 = vst [vmem:[#allocation17_spill] sm:$0xff] %v5480_v41  ;;  %v866_v5 = vsel %vm3480_vm9, 0, %v3479_v7  ;;  %v2280_v42 = vshll.u32 %v6327_v26, %v2265_v27  ;;  %v2269_v33 = vshrl.u32 %v6334_v28, %v2266_v21  ;;  %v2272_v52 = vshrl.u32 %v6335_v61, %v2266_v21 }
 0x1e4   : > { %v867_v60 = vsub.s32 32, %v866_v5  ;;  %v868_v13 = vshll.u32 %v5431_v0, %v866_v5  ;;  %v871_v32 = vsub.s32 4294967266, %v866_v5  ;;  %v2275_v40 = vshrl.u32 %v6325_v51, %v2266_v21 }
 0x1e5   : > { %v2278_v54 = vshrl.u32 %v6327_v26, %v2266_v21  ;;  %vm6302_vm1 = vcmp.lt.s32.totalorder %v5072_v11, 0  ;;  %v2267_v56 = vshrl.u32 %v6333_v15, %v2266_v21  ;;  %v2281_v36 = vshrl.u32 %v6332_v55, %v2266_v21 }
 0x1e6   : > { %v869_v1 = vshrl.u32 %v851_v37, %v867_v60  ;;  %v872_v63 = vadd.s32 127, %v871_v32  ;;  %v5494_v0 = vpop.eup %4000  ;;  %v2270_v7 = vor.u32 %v2269_v33, %v2268_v44  ;;  %v2273_v27 = vor.u32 %v2272_v52, %v2271_v31 }
 0x1e7   : > { %6390 = vst [vmem:[#allocation13_spill] sm:$0xff] %v5494_v0  ;;  %v2276_v5 = vor.u32 %v2275_v40, %v2274_v2  ;;  %v2279_v20 = vor.u32 %v2278_v54, %v2277_v19  ;;  %v2282_v49 = vor.u32 %v2281_v36, %v2280_v42  ;;  %vm2283_vm4 = vcmp.lt.s32.totalorder %v2264_v8, 1 }
 0x1e8   : > { %v870_v23 = vor.u32 %v869_v1, %v868_v13  ;;  %v873_v10 = vshll.u32 %v872_v63, 23  ;;  %vm2284_vm9 = vcmp.lt.s32.totalorder %v2264_v8, 2  ;;  %vm2285_vm3 = vcmp.lt.s32.totalorder %v2264_v8, 3 }
 0x1e9   : > { %vm2286_vm13 = vcmp.lt.s32.totalorder %v2264_v8, 4  ;;  %v2291_v41 = vsel %vm2283_vm4, %v2270_v7, %v2273_v27  ;;  %vm787_vm11 = vcmp.eq.s32.totalorder %v5449_v53, 0  ;;  %v2287_v60 = vsel %vm2283_vm4, %v2267_v56, %v2270_v7 }
 0x1ea   : > { %v874_v37 = vor.u32 4788187, %v873_v10  ;;  %v2288_v32 = vsel %vm2286_vm13, %v2276_v5, 2102212464  ;;  %v2292_v21 = vsel %vm2286_vm13, %v2279_v20, 920167782  ;;  %v2295_v44 = vsel %vm2283_vm4, %v2273_v27, %v2276_v5 }
 0x1eb   : > { %v2289_v48 = vsel %vm2285_vm3, %v2273_v27, %v2288_v32  ;;  %v2293_v0 = vsel %vm2285_vm3, %v2276_v5, %v2292_v21  ;;  %v2296_v31 = vsel %vm2286_vm13, %v2282_v49, 1326507024  ;;  %v877_v19 = vcvt.s32.f32 %v870_v23 }
 0x1ec   : > { %v875_v2 = vand.u32 2147483647, %v874_v37  ;;  %v2294_v13 = vsel %vm2284_vm9, %v2291_v41, %v2293_v0  ;;  %v2297_v42 = vsel %vm2285_vm3, %v2279_v20, %v2296_v31  ;;  %v2290_v52 = vsel %vm2284_vm9, %v2287_v60, %v2289_v48 }
 0x1ed   : > { %v4003_v33 = vpop.eup %4002  ;;  %v2298_v40 = vsel %vm2284_vm9, %v2295_v44, %v2297_v42  ;;  %v5501_v54 = vmul.u32.u64.low %v5471_v3, %v2294_v13  ;;  %v5502_v10 = vmul.u32.u64.high %v5471_v3, %v2294_v13, %v5501_v54  ;;  %v6391_v23 = vxor.u32 2147483648, %v5447_v34 }
 0x1ee   : > { %v4005_v1 = vpop.eup %4004  ;;  %v791_v63 = vxor.u32 2147483648, %v4003_v33  ;;  %v878_v56 = vmul.f32 %v877_v19, %v875_v2  ;;  %v5506_v49 = vmul.u32.u64.low %v5471_v3, %v2298_v40  ;;  %v5507_v36 = vmul.u32.u64.high %v5471_v3, %v2298_v40, %v5506_v49 }
 0x1ef   : > { %v5514_v48 = vsel %vm6302_vm1, %v6391_v23, %v5447_v34  ;;  %v788_v20 = vxor.u32 2147483648, %v4005_v1  ;;  %vm790_vm13 = vcmp.eq.s32.totalorder %v5449_v53, 2  ;;  %vm2054_vm3 = vcmp.gt.s32.totalorder %v5474_v17, 0 }
 0x1f0   : > { %v879_v8 = vxor.u32 2147483648, %v878_v56  ;;  %v5519_v41 = vand.u32 3, %v5469_v43  ;;  %v2055_v0 = vsel %vm2054_vm3, %v5474_v17, 0  ;;  %v6392_v7 = vor.u32 8388608, %v5456_v57 }
 0x1f1   : > { %v2306_v5 = vmul.u32 %v5471_v3, %v2290_v52  ;;  %v2309_v34 = vadd.s32 1, %v5502_v10  ;;  %v2057_v37 = vand.u32 31, %v2055_v0  ;;  %v2147_v60 = vand.u32 2147483647, %v5478_v46 }
 0x1f2   : > { %v5524_v27 = vshll.u32 %v6392_v7, 8  ;;  %v792_v32 = vsel %vm790_vm13, %v791_v63, %v4005_v1  ;;  %v880_v21 = vsel %vm797_vm7, %v879_v8, %v878_v56  ;;  %vm2308_vm4 = vc.u32 %v5507_v36, %v5501_v54 }
 0x1f3   : > { %v2150_v43 = vand.u32 2139095040, %v5478_v46  ;;  %v789_v57 = vsel %vm787_vm11, %v4003_v33, %v788_v20  ;;  %v883_v3 = vsel %vm5413_vm8, %v6370_v38, %v880_v21  ;;  %v2310_v17 = vsel %vm2308_vm4, %v2309_v34, %v5502_v10 }
 0x1f4   : > { %v2058_v44 = vsub.s32 32, %v2057_v37  ;;  %vm786_vm9 = vcmp.lt.s32.totalorder %v5449_v53, 2  ;;  %4006 = vcosq.f32 %v883_v3  ;;  %v2311_v31 = vadd.s32 %v2310_v17, %v2306_v5  ;;  %v3964_v53 = vld [vmem:[%s6208_s2] sm:$0xff]  }
 0x1f5   : > { %v2056_v2 = vshrl.u32 %v2055_v0, 5  ;;  %v2060_v19 = vshll.u32 %v6333_v15, %v2057_v37  ;;  %4008 = vsinq.f32 %v883_v3  ;;  %v2063_v42 = vshll.u32 %v6334_v28, %v2057_v37 }
 0x1f6   : > { %v2061_v13 = vshrl.u32 %v6334_v28, %v2058_v44  ;;  %v2064_v33 = vshrl.u32 %v6335_v61, %v2058_v44  ;;  %v2312_v52 = vadd.s32 536870912, %v2311_v31  ;;  %v2059_v9 = vshrl.u32 %v6333_v15, %v2058_v44 }
 0x1f7   : > { %v2066_v40 = vshll.u32 %v6335_v61, %v2057_v37  ;;  %v2067_v10 = vshrl.u32 %v6325_v51, %v2058_v44  ;;  %v2069_v56 = vshll.u32 %v6325_v51, %v2057_v37  ;;  %v2070_v49 = vshrl.u32 %v6327_v26, %v2058_v44 }
 0x1f8   : > { %v2062_v1 = vor.u32 %v2061_v13, %v2060_v19  ;;  %v2065_v63 = vor.u32 %v2064_v33, %v2063_v42  ;;  %vm783_vm11 = vweird.f32 %v6382_v24  ;;  %v5551_v23 = vshrl.u32 %v2312_v52, 30 }
 0x1f9   : > { %v2068_v20 = vor.u32 %v2067_v10, %v2066_v40  ;;  %v2072_v8 = vshll.u32 %v6327_v26, %v2057_v37  ;;  %v2073_v0 = vshrl.u32 %v6332_v55, %v2058_v44  ;;  %v2071_v7 = vor.u32 %v2070_v49, %v2069_v56 }
 0x1fa   : > { %vm2075_vm8 = vcmp.lt.s32.totalorder %v2056_v2, 1  ;;  %vm2077_vm7 = vcmp.lt.s32.totalorder %v2056_v2, 3  ;;  %vm2078_vm13 = vcmp.lt.s32.totalorder %v2056_v2, 4  ;;  %v2314_v5 = vshll.u32 %v5551_v23, 30 }
 0x1fb   : > { %v2074_v34 = vor.u32 %v2073_v0, %v2072_v8  ;;  %v2079_v21 = vsel %vm2075_vm8, %v2059_v9, %v2062_v1  ;;  %v2080_v3 = vsel %vm2078_vm13, %v2068_v20, 2102212464  ;;  %vm894_vm3 = vcmp.eq.s32.totalorder %v5519_v41, 2  ;;  %v4046_v0 = vld [vmem:[%s4242_s25 + $0x8] sm:$0xff] }
 0x1fc   : > { %v2081_v17 = vsel %vm2077_vm7, %v2065_v63, %v2080_v3  ;;  %v2083_v19 = vsel %vm2075_vm8, %v2062_v1, %v2065_v63  ;;  %v2084_v13 = vsel %vm2078_vm13, %v2071_v7, 920167782  ;;  %v2087_v42 = vsel %vm2075_vm8, %v2065_v63, %v2068_v20 }
 0x1fd   : > { %vm891_vm4 = vcmp.eq.s32.totalorder %v5519_v41, 0  ;;  %v5559_v37 = vsub.s32 %v2311_v31, %v2314_v5  ;;  %vm2076_vm1 = vcmp.lt.s32.totalorder %v2056_v2, 2  ;;  %v2085_v44 = vsel %vm2077_vm7, %v2068_v20, %v2084_v13 }
 0x1fe   : > { %v2088_v33 = vsel %vm2078_vm13, %v2074_v34, 1326507024  ;;  %v793_v52 = vsel %vm786_vm9, %v789_v57, %v792_v32  ;;  %vm890_vm0 = vcmp.lt.s32.totalorder %v5519_v41, 2  ;;  %v2082_v9 = vsel %vm2076_vm1, %v2079_v21, %v2081_v17 }
 0x1ff   : > { %v2086_v40 = vsel %vm2076_vm1, %v2083_v19, %v2085_v44  ;;  %v2089_v10 = vsel %vm2077_vm7, %v2071_v7, %v2088_v33  ;;  %vm887_vm8 = vweird.f32 %v6370_v38  ;;  %v2317_v31 = vsub.s32 0, %v5559_v37  ;;  %v4047_v7 = vld [vmem:[%s4242_s25] sm:$0xff]  ;;  %v6393_v44 = vld [vmem:[#allocation15_spill] sm:$0xff] }
 0x200   : > { %v2090_v1 = vsel %vm2076_vm1, %v2087_v42, %v2089_v10  ;;  %v5569_v63 = vmul.u32.u64.low %v5524_v27, %v2086_v40  ;;  %v5570_v56 = vmul.u32.u64.high %v5524_v27, %v2086_v40, %v5569_v63  ;;  %vm6306_vm9 = vcmask 195584  }
 0x201   : > { %v5577_v32 = vmul.u32.u64.low %v5524_v27, %v2090_v1  ;;  %v5578_v57 = vmul.u32.u64.high %v5524_v27, %v2090_v1, %v5577_v32  ;;  %v2151_v2 = vshrl.u32 %v2150_v43, 23  ;;  %v2154_v49 = vand.u32 8388607, %v2147_v60  ;;  %v4007_v34 = vpop.eup %4006 }
 0x202   : > { %v3534_v20 = vmin.u32 %v2317_v31, %v5559_v37  ;;  %v2415_v8 = vsel %vm2413_vm2, %v5445_v12, 0  ;;  %v2355_v5 = vpack.c.bf16 %v4046_v0, %v4047_v7  ;;  %vm6305_vm1 = vcmask 269312   ;;  %v4009_v19 = vpop.eup %4008 }
 0x203   : > { %v794_v21 = vsel %vm783_vm11, nan, %v793_v52  ;;  %v2307_v3 = vadd.s32 %v5501_v54, %v5507_v36  ;;  %v2098_v43 = vmul.u32 %v5524_v27, %v2082_v9  ;;  %v3529_v17 = vadd.s32 4294967169, %v2151_v2  ;;  %3686 = vmatpush3.bf16.msra.mxu0 %v2415_v8 }
 0x204   : > { %v895_v13 = vxor.u32 2147483648, %v4007_v34  ;;  %v2319_v42 = vclz %v3534_v20  ;;  %v2101_v12 = vadd.s32 1, %v5570_v56  ;;  %3687 = vmatprep.subr.bf16.mxu0 %v3964_v53  ;;  %3711 = vmatprep.mubr.msk.bf16.mxu1 %vm6305_vm1, %v2355_v5  ;;  %v985_v33 = vsub.s32 4, %v6393_v44 }
 0x205   : > { %v892_v40 = vxor.u32 2147483648, %v4009_v19  ;;  %vm2100_vm2 = vc.u32 %v5578_v57, %v5569_v63  ;;  %v2155_v24 = vor.u32 8388608, %v2154_v49  ;;  %v2157_v54 = vadd.s32 1, %v3529_v17 }
 0x206   : > { %v896_v36 = vsel %vm894_vm3, %v895_v13, %v4009_v19  ;;  %v3535_v27 = vadd.s32 4294967294, %v2319_v42  ;;  %v2102_v52 = vsel %vm2100_vm2, %v2101_v12, %v5570_v56  ;;  %v6394_v9 = vand.u32 2147483647, %v4403_v29 }
 0x207   : > { %v893_v31 = vsel %vm891_vm4, %v4007_v34, %v892_v40  ;;  %v2103_v1 = vadd.s32 %v2102_v52, %v2098_v43  ;;  %vm2158_vm7 = vcmp.gt.s32.totalorder %v2157_v54, 0  ;;  %3688 = vmatpush3.bf16.msra.mxu0 %v3964_v53  ;;  %vm6397_vm3 = vcmp.lt.s32.totalorder %v4403_v29, 0 }
 0x208   : > { %vm5602_vm11 = vcmp.le.f32.partialorder %v6394_v9, 0.7853982  ;;  %v897_v56 = vsel %vm890_vm0, %v893_v31, %v896_v36  ;;  %vm3536_vm13 = vcmp.lt.s32.totalorder %v3535_v27, 0  ;;  %v2159_v2 = vsel %vm2158_vm7, %v2157_v54, 0 }
 0x209   : > { %v5612_v32 = vsel %vm5602_vm11, %v4403_v29, %v4969_v62  ;;  %v5619_v49 = vsel %vm6397_vm3, %v985_v33, %v6393_v44  ;;  %v898_v20 = vsel %vm887_vm8, nan, %v897_v56  ;;  %v2322_v53 = vsel %vm3536_vm13, 0, %v3535_v27 }
 0x20a   : > { %v2104_v8 = vadd.s32 536870912, %v2103_v1  ;;  %v5623_v0 = vshrl.u32 %v2159_v2, 5  ;;  %v2368_v7 = vpack.c.bf16 %v898_v20, %v794_v21  ;;  %v2323_v62 = vsub.s32 32, %v2322_v53 }
 0x20b   : > { %v2327_v5 = vsub.s32 4294967266, %v2322_v53  ;;  %v5625_v34 = vshll.u32 %v2155_v24, 8  ;;  %v2324_v41 = vshll.u32 %v5559_v37, %v2322_v53  ;;  %v2161_v17 = vand.u32 31, %v2159_v2 }
 0x20c   : > { %v5628_v43 = vshrl.u32 %v2104_v8, 30  ;;  %v988_v19 = vsel %vm5602_vm11, 0, %v5619_v49  ;;  %3689 = vmatprep.mubr.msk.bf16.mxu0 %vm6306_vm9, %v2368_v7  ;;  %v2325_v38 = vshrl.u32 %v2307_v3, %v2323_v62  ;;  %vm2179_vm0 = vcmp.lt.s32.totalorder %v5623_v0, 1 }
 0x20d   : > { %v2328_v13 = vadd.s32 127, %v2327_v5  ;;  %vm2181_vm4 = vcmp.lt.s32.totalorder %v5623_v0, 3  ;;  %v2162_v42 = vsub.s32 32, %v2161_v17  ;;  %v2164_v37 = vshll.u32 %v6333_v15, %v2161_v17 }
 0x20e   : > { %v2106_v21 = vshll.u32 %v5628_v43, 30  ;;  %vm2180_vm8 = vcmp.lt.s32.totalorder %v5623_v0, 2  ;;  %vm2182_vm2 = vcmp.lt.s32.totalorder %v5623_v0, 4  ;;  %v2326_v12 = vor.u32 %v2325_v38, %v2324_v41 }
 0x20f   : > { %v2329_v44 = vshll.u32 %v2328_v13, 23  ;;  %v2167_v33 = vshll.u32 %v6334_v28, %v2161_v17  ;;  %v2170_v3 = vshll.u32 %v6335_v61, %v2161_v17  ;;  %v6398_v40 = vand.u32 2147483647, %v5072_v11 }
 0x210   : > { %v5648_v54 = vsub.s32 %v2103_v1, %v2106_v21  ;;  %v2165_v36 = vshrl.u32 %v6334_v28, %v2162_v42  ;;  %v2168_v27 = vshrl.u32 %v6335_v61, %v2162_v42  ;;  %v2173_v52 = vshll.u32 %v6325_v51, %v2161_v17 }
 0x211   : > { %vm5644_vm11 = vcmp.le.f32.partialorder %v6398_v40, 0.7853982  ;;  %v2330_v9 = vor.u32 4788187, %v2329_v44  ;;  %v2333_v10 = vcvt.s32.f32 %v2326_v12  ;;  %v2171_v31 = vshrl.u32 %v6325_v51, %v2162_v42 }
 0x212   : > { %v2174_v56 = vshrl.u32 %v6327_v26, %v2162_v42  ;;  %v2109_v2 = vsub.s32 0, %v5648_v54  ;;  %v2166_v49 = vor.u32 %v2165_v36, %v2164_v37  ;;  %v2169_v20 = vor.u32 %v2168_v27, %v2167_v33 }
 0x213   : > { %v2176_v53 = vshll.u32 %v6327_v26, %v2161_v17  ;;  %v2331_v1 = vand.u32 2147483647, %v2330_v9  ;;  %v2172_v8 = vor.u32 %v2171_v31, %v2170_v3  ;;  %v2177_v28 = vshrl.u32 %v6332_v55, %v2162_v42 }
 0x214   : > { %v2175_v7 = vor.u32 %v2174_v56, %v2173_v52  ;;  %v3526_v61 = vmin.u32 %v2109_v2, %v5648_v54  ;;  %v2163_v62 = vshrl.u32 %v6333_v15, %v2162_v42  ;;  %v2187_v51 = vsel %vm2179_vm0, %v2166_v49, %v2169_v20 }
 0x215   : > { %4010 = vcosq.f32 %v5612_v32  ;;  %v2334_v5 = vmul.f32 %v2333_v10, %v2331_v1  ;;  %v2178_v41 = vor.u32 %v2177_v28, %v2176_v53  ;;  %v2184_v38 = vsel %vm2182_vm2, %v2172_v8, 2102212464  ;;  %v6406_v28 = vld [vmem:[#allocation8_spill] sm:$0xff] }
 0x216   : > { %v2188_v26 = vsel %vm2182_vm2, %v2175_v7, 920167782  ;;  %v2111_v17 = vclz %v3526_v61  ;;  %v2183_v55 = vsel %vm2179_vm0, %v2163_v62, %v2166_v49  ;;  %v2191_v13 = vsel %vm2179_vm0, %v2169_v20, %v2172_v8 }
 0x217   : > { %v2189_v15 = vsel %vm2181_vm4, %v2172_v8, %v2188_v26  ;;  %v2335_v21 = vxor.u32 2147483648, %v2334_v5  ;;  %v2185_v42 = vsel %vm2181_vm4, %v2169_v20, %v2184_v38  ;;  %v2192_v12 = vsel %vm2182_vm2, %v2178_v41, 1326507024  ;;  %v6407_v38 = vld [vmem:[#allocation5_spill] sm:$0xff] }
 0x218   : > { %v2190_v37 = vsel %vm2180_vm8, %v2187_v51, %v2189_v15  ;;  %v3527_v44 = vadd.s32 4294967294, %v2111_v17  ;;  %v2193_v33 = vsel %vm2181_vm4, %v2175_v7, %v2192_v12  ;;  %v6401_v36 = vand.u32 2147483647, %v5129_v4 }
 0x219   : > { %v5682_v3 = vmul.u32.u64.low %v5625_v34, %v2190_v37  ;;  %v5683_v40 = vmul.u32.u64.high %v5625_v34, %v2190_v37, %v5682_v3  ;;  %v6402_v27 = vcvt.s32.f32 %v5127_v39  ;;  %v5696_v9 = vsel %vm5644_vm11, %v5072_v11, %v5514_v48 }
 0x21a   : > { %v2194_v10 = vsel %vm2180_vm8, %v2191_v13, %v2193_v33  ;;  %4012 = vsinq.f32 %v5612_v32  ;;  %vm3528_vm7 = vcmp.lt.s32.totalorder %v3527_v44, 0  ;;  %v2186_v31 = vsel %vm2180_vm8, %v2183_v55, %v2185_v42  ;;  %v4048_v13 = vld [vmem:[%s4242_s25 + $0x18] sm:$0xff] }
 0x21b   : > { %v5690_v52 = vmul.f32 %v6402_v27, %v6401_v36  ;;  %v5704_v4 = vmul.u32.u64.low %v5625_v34, %v2194_v10  ;;  %v5705_v39 = vmul.u32.u64.high %v5625_v34, %v2194_v10, %v5704_v4  ;;  %v6403_v56 = vand.u32 2147483647, %v5409_v25 }
 0x21c   : > { %vm6304_vm3 = vcmp.lt.s32.totalorder %v5409_v25, 0  ;;  %v2114_v48 = vsel %vm3528_vm7, 0, %v3527_v44  ;;  %v992_v49 = vadd.s32 3, %v988_v19  ;;  %v2099_v0 = vadd.s32 %v5569_v63, %v5578_v57 }
 0x21d   : > { %vm5709_vm13 = vcmp.le.f32.partialorder %v6403_v56, 0.7853982  ;;  %v2336_v32 = vsel %vm6304_vm3, %v2335_v21, %v2334_v5  ;;  %v2115_v20 = vsub.s32 32, %v2114_v48  ;;  %v2119_v53 = vsub.s32 4294967266, %v2114_v48  ;;  %v4049_v21 = vld [vmem:[%s4242_s25 + $0x10] sm:$0xff] }
 0x21e   : > { %v2202_v1 = vmul.u32 %v5625_v34, %v2186_v31  ;;  %v2205_v8 = vadd.s32 1, %v5683_v40  ;;  %v993_v7 = vand.u32 3, %v992_v49  ;;  %v1089_v61 = vsub.s32 4, %v6406_v28  ;;  %v6413_v31 = vld [vmem:[#allocation10_spill] sm:$0xff] }
 0x21f   : > { %v2116_v62 = vshll.u32 %v5648_v54, %v2114_v48  ;;  %v2117_v51 = vshrl.u32 %v2099_v0, %v2115_v20  ;;  %v2120_v19 = vadd.s32 127, %v2119_v53  ;;  %vm2204_vm0 = vc.u32 %v5705_v39, %v5682_v3 }
 0x220   : > { %v1711_v63 = vxor.u32 2147483648, %v5690_v52  ;;  %4014 = vcosq.f32 %v5696_v9  ;;  %v5729_v57 = vsel %vm5709_vm13, %v5409_v25, %v2336_v32  ;;  %v2206_v34 = vsel %vm2204_vm0, %v2205_v8, %v5683_v40  ;;  %v6414_v32 = vld [vmem:[#allocation26_spill] sm:$0xff] }
 0x221   : > { %v2118_v5 = vor.u32 %v2117_v51, %v2116_v62  ;;  %v2121_v54 = vshll.u32 %v2120_v19, 23  ;;  %v2207_v41 = vadd.s32 %v2206_v34, %v2202_v1  ;;  %vm6408_vm4 = vcmp.lt.s32.totalorder %v6407_v38, 0  ;;  %v6416_v1 = vld [vmem:[#allocation21_spill] sm:$0xff] }
 0x222   : > { %v1090_v26 = vsel %vm6408_vm4, %v1089_v61, %v6406_v28  ;;  %v4011_v17 = vpop.eup %4010  ;;  %vm994_vm8 = vcmp.lt.s32.totalorder %v993_v7, 2  ;;  %vm995_vm2 = vcmp.eq.s32.totalorder %v993_v7, 0  ;;  %vm998_vm7 = vcmp.eq.s32.totalorder %v993_v7, 2 }
 0x223   : > { %v1092_v15 = vsel %vm4646_vm15, 0, %v1090_v26  ;;  %v2356_v42 = vpack.c.bf16 %v4048_v13, %v4049_v21  ;;  %vm6307_vm3 = vcmp.lt.s32.totalorder %v5421_v18, 0  ;;  %v2122_v37 = vor.u32 4788187, %v2121_v54  ;;  %v6417_v21 = vld [vmem:[#allocation11_spill] sm:$0xff] }
 0x224   : > { %v2208_v12 = vadd.s32 536870912, %v2207_v41  ;;  %vm991_vm0 = vweird.f32 %v4403_v29  ;;  %v1100_v44 = vxor.u32 2147483648, %v5009_v45  ;;  %v1103_v33 = vxor.u32 2147483648, %v5005_v6 }
 0x225   : > { %v999_v40 = vxor.u32 2147483648, %v4011_v17  ;;  %v1096_v36 = vadd.s32 3, %v1092_v15  ;;  %3712 = vmatmul.mubr.msk.bf16.vlgmr.msra.gmra.mxu1 %vm6305_vm1, %v2356_v42  ;;  %v6410_v27 = vand.u32 2147483647, %v4330_v16  ;;  %v1193_v4 = vsub.s32 4, %v6413_v31 }
 0x226   : > { %v2123_v56 = vand.u32 2147483647, %v2122_v37  ;;  %v2125_v48 = vcvt.s32.f32 %v2118_v5  ;;  %v5751_v49 = vshrl.u32 %v2208_v12, 30  ;;  %vm6415_vm4 = vcmp.lt.s32.totalorder %v4330_v16, 0 }
 0x227   : > { %vm5746_vm15 = vcmp.le.f32.partialorder %v6410_v27, 0.7853982  ;;  %v1097_v20 = vand.u32 3, %v1096_v36  ;;  %v1194_v53 = vsel %vm6415_vm4, %v1193_v4, %v6413_v31  ;;  %v1297_v8 = vsub.s32 4, %v6416_v1  ;;  %v4013_v28 = vpop.eup %4012 }
 0x228   : > { %v1195_v0 = vsel %vm5746_vm15, %v4330_v16, %v6414_v32  ;;  %v2126_v61 = vmul.f32 %v2125_v48, %v2123_v56  ;;  %v2210_v62 = vshll.u32 %v5751_v49, 30  ;;  %v1196_v51 = vsel %vm5746_vm15, 0, %v1194_v53  ;;  %v6424_v56 = vld [vmem:[#allocation31_spill] sm:$0xff]  ;;  %v6425_v32 = vld [vmem:[#allocation30_spill] sm:$0xff] }
 0x229   : > { %4016 = vcosq.f32 %v1195_v0  ;;  %v996_v19 = vxor.u32 2147483648, %v4013_v28  ;;  %v1000_v34 = vsel %vm998_vm7, %v999_v40, %v4013_v28  ;;  %vm1098_vm1 = vcmp.lt.s32.totalorder %v1097_v20, 2  ;;  %v6426_v53 = vld [vmem:[#allocation23_spill] sm:$0xff] }
 0x22a   : > { %4018 = vsinq.f32 %v1195_v0  ;;  %vm1099_vm9 = vcmp.eq.s32.totalorder %v1097_v20, 0  ;;  %v2127_v5 = vxor.u32 2147483648, %v2126_v61  ;;  %v5765_v54 = vsub.s32 %v2207_v41, %v2210_v62 }
 0x22b   : > { %v1101_v26 = vsel %vm1099_vm9, %v5005_v6, %v1100_v44  ;;  %vm1102_vm4 = vcmp.eq.s32.totalorder %v1097_v20, 2  ;;  %v997_v55 = vsel %vm995_vm2, %v4011_v17, %v996_v19  ;;  %v1200_v13 = vadd.s32 3, %v1196_v51  ;;  %v4050_v20 = vld [vmem:[%s4242_s25 + $0x20] sm:$0xff]  ;;  %v6432_v19 = vld [vmem:[#allocation18_spill] sm:$0xff]  ;;  %v6443_v51 = vld [vmem:[#allocation35_spill] sm:$0xff] }
 0x22c   : > { %v1104_v15 = vsel %vm1102_vm4, %v1103_v33, %v5009_v45  ;;  %vm6418_vm15 = vcmp.lt.s32.totalorder %v6417_v21, 0  ;;  %v2213_v37 = vsub.s32 0, %v5765_v54  ;;  %v1001_v12 = vsel %vm994_vm8, %v997_v55, %v1000_v34  ;;  %v6435_v55 = vld [vmem:[#allocation27_spill] sm:$0xff] }
 0x22d   : > { %v1298_v42 = vsel %vm6418_vm15, %v1297_v8, %v6416_v1  ;;  %vm1095_vm7 = vweird.f32 %v6407_v38  ;;  %v1105_v41 = vsel %vm1098_vm1, %v1101_v26, %v1104_v15  ;;  %v2128_v6 = vsel %vm6307_vm3, %v2127_v5, %v2126_v61  ;;  %v5780_v33 = vpop.eup %4014  ;;  %v6427_v61 = vld [vmem:[#allocation9_spill] sm:$0xff]  ;;  %v6434_v5 = vld [vmem:[#allocation19_spill] sm:$0xff] }
 0x22e   : > { %v1002_v17 = vsel %vm991_vm0, nan, %v1001_v12  ;;  %v1106_v44 = vsel %vm1095_vm7, nan, %v1105_v41  ;;  %v1201_v45 = vand.u32 3, %v1200_v13  ;;  %4020 = vsinq.f32 %v5696_v9 }
 0x22f   : > { %v3530_v40 = vmin.u32 %v2213_v37, %v5765_v54  ;;  %v2369_v7 = vpack.c.bf16 %v1106_v44, %v1002_v17  ;;  %v1300_v38 = vsel %vm4897_vm14, 0, %v1298_v42  ;;  %4022 = vcosq.f32 %v5729_v57  ;;  %v6436_v42 = vld [vmem:[#allocation22_spill] sm:$0xff] }
 0x230   : > { %v6420_v27 = vand.u32 2147483647, %v5421_v18  ;;  %v2203_v10 = vadd.s32 %v5682_v3, %v5705_v39  ;;  %vm6423_vm14 = vcmask 195584   ;;  %v1304_v4 = vadd.s32 3, %v1300_v38  ;;  %v4051_v3 = vld [vmem:[%s4242_s25 + $0x28] sm:$0xff] }
 0x231   : > { %v2215_v31 = vclz %v3530_v40  ;;  %3690 = vmatmul.mubr.msk.bf16.vlgmr.msra.gmra.mxu0 %vm6423_vm14, %v2369_v7  ;;  %v1308_v48 = vxor.u32 2147483648, %v6424_v56  ;;  %v1311_v0 = vxor.u32 2147483648, %v6425_v32  ;;  %v2357_v39 = vpack.c.bf16 %v4051_v3, %v4050_v20 }
 0x232   : > { %vm5789_vm9 = vcmp.le.f32.partialorder %v6420_v27, 0.7853982  ;;  %v1401_v1 = vsub.s32 4, %v6426_v53  ;;  %v1305_v28 = vand.u32 3, %v1304_v4  ;;  %v6428_v62 = vand.u32 2147483647, %v6427_v61 }
 0x233   : > { %v5799_v9 = vsel %vm5789_vm9, %v5421_v18, %v2128_v6  ;;  %v3531_v8 = vadd.s32 4294967294, %v2215_v31  ;;  %vm1206_vm15 = vcmp.eq.s32.totalorder %v1201_v45, 2  ;;  %vm6431_vm7 = vcmask 269312   ;;  %v6454_v31 = vld [vmem:[#allocation24_spill] sm:$0xff] }
 0x234   : > { %vm5810_vm4 = vcmp.le.f32.partialorder %v6428_v62, 0.7853982  ;;  %3715 = vmatprep.mubr.msk.bf16.mxu1 %vm6431_vm7, %v2357_v39  ;;  %vm6433_vm14 = vcmp.lt.s32.totalorder %v6432_v19, 0  ;;  %v1505_v26 = vsub.s32 4, %v6434_v5  ;;  %vm1629_vm3 = vcmp.lt.s32.totalorder %v6436_v42, 0 }
 0x235   : > { %v1402_v34 = vsel %vm6433_vm14, %v1401_v1, %v6426_v53  ;;  %v1507_v15 = vsel %vm5810_vm4, %v6427_v61, %v6435_v55  ;;  %vm3532_vm2 = vcmp.lt.s32.totalorder %v3531_v8, 0  ;;  %vm1306_vm8 = vcmp.lt.s32.totalorder %v1305_v28, 2 }
 0x236   : > { %v4017_v13 = vpop.eup %4016  ;;  %vm1307_vm1 = vcmp.eq.s32.totalorder %v1305_v28, 0  ;;  %vm1310_vm0 = vcmp.eq.s32.totalorder %v1305_v28, 2  ;;  %v2218_v12 = vsel %vm3532_vm2, 0, %v3531_v8  ;;  %v1404_v4 = vsel %vm4977_vm5, 0, %v1402_v34 }
 0x237   : > { %v4019_v37 = vpop.eup %4018  ;;  %v1207_v41 = vxor.u32 2147483648, %v4017_v13  ;;  %v1309_v6 = vsel %vm1307_vm1, %v6425_v32, %v1308_v48  ;;  %v1312_v17 = vsel %vm1310_vm0, %v1311_v0, %v6424_v56  ;;  %v2219_v44 = vsub.s32 32, %v2218_v12 }
 0x238   : > { %v2220_v40 = vshll.u32 %v5765_v54, %v2218_v12  ;;  %v2223_v7 = vsub.s32 4294967266, %v2218_v12  ;;  %v1204_v36 = vxor.u32 2147483648, %v4019_v37  ;;  %v1313_v27 = vsel %vm1306_vm8, %v1309_v6, %v1312_v17 }
 0x239   : > { %v1208_v38 = vsel %vm1206_vm15, %v1207_v41, %v4019_v37  ;;  %vm6438_vm7 = vcmp.lt.s32.totalorder %v6427_v61, 0  ;;  %v2221_v3 = vshrl.u32 %v2203_v10, %v2219_v44  ;;  %vm6439_vm1 = vcmp.eq.s32.totalorder %v1201_v45, 0  ;;  %v6444_v37 = vld [vmem:[#allocation33_spill] sm:$0xff] }
 0x23a   : > { %v1506_v20 = vsel %vm6438_vm7, %v1505_v26, %v6434_v5  ;;  %v2224_v48 = vadd.s32 127, %v2223_v7  ;;  %v1205_v56 = vsel %vm6439_vm1, %v4017_v13, %v1204_v36  ;;  %vm6440_vm2 = vweird.f32 %v6417_v21  ;;  %v4052_v21 = vld [vmem:[%s4242_s25 + $0x38] sm:$0xff]  ;;  %v4053_v5 = vld [vmem:[%s4242_s25 + $0x30] sm:$0xff]  ;;  %v6445_v41 = vld [vmem:[#allocation29_spill] sm:$0xff] }
 0x23b   : > { %v1314_v54 = vsel %vm6440_vm2, nan, %v1313_v27  ;;  %vm6441_vm0 = vcmp.lt.s32.totalorder %v1201_v45, 2  ;;  %v1408_v0 = vadd.s32 3, %v1404_v4  ;;  %v1508_v39 = vsel %vm5810_vm4, 0, %v1506_v20  ;;  %v5841_v8 = vpop.eup %4020 }
 0x23c   : > { %v1209_v32 = vsel %vm6441_vm0, %v1205_v56, %v1208_v38  ;;  %4024 = vcosq.f32 %v1507_v15  ;;  %v2222_v53 = vor.u32 %v2221_v3, %v2220_v40  ;;  %v2225_v1 = vshll.u32 %v2224_v48, 23  ;;  %v5845_v26 = vpop.eup %4022  ;;  %v4055_v56 = vld [vmem:[%s4242_s25 + $0x40] sm:$0xff] }
 0x23d   : > { %vm6442_vm5 = vweird.f32 %v4330_v16  ;;  %4026 = vsinq.f32 %v1507_v15  ;;  %v1409_v62 = vand.u32 3, %v1408_v0  ;;  %v1512_v34 = vadd.s32 3, %v1508_v39  ;;  %v6455_v39 = vld [vmem:[#allocation32_spill] sm:$0xff] }
 0x23e   : > { %v1210_v10 = vsel %vm6442_vm5, nan, %v1209_v32  ;;  %v2358_v45 = vpack.c.bf16 %v4052_v21, %v4053_v5  ;;  %v2226_v55 = vor.u32 4788187, %v2225_v1  ;;  %v1412_v13 = vxor.u32 2147483648, %v6443_v51 }
 0x23f   : > { %v2370_v28 = vpack.c.bf16 %v1314_v54, %v1210_v10  ;;  %v1415_v12 = vxor.u32 2147483648, %v6444_v37  ;;  %v1609_v6 = vsub.s32 4, %v6445_v41  ;;  %v1712_v16 = vsel %vm1629_vm3, %v1711_v63, %v5690_v52 }
 0x240   : > { %4028 = vsinq.f32 %v5729_v57  ;;  %vm6308_vm8 = vcmp.lt.s32.totalorder %v5478_v46, 0  ;;  %vm6446_vm4 = vcmask 195584   ;;  %vm6447_vm15 = vcmask 269312  }
 0x241   : > { %3693 = vmatprep.mubr.msk.bf16.mxu0 %vm6446_vm4, %v2370_v28  ;;  %3716 = vmatmul.mubr.msk.bf16.gmra.mxu1 %vm6447_vm15, %v2358_v45  ;;  %4030 = vcosq.f32 %v5799_v9  ;;  %vm5862_vm14 = vcmp.le.f32.partialorder %v2147_v60, 0.7853982  ;;  %v2227_v17 = vand.u32 2147483647, %v2226_v55  ;;  %v2229_v44 = vcvt.s32.f32 %v2222_v53 }
 0x242   : > { %vm6450_vm7 = vcmp.lt.s32.totalorder %v4776_v50, 0  ;;  %4032 = vsinq.f32 %v5799_v9  ;;  %vm1411_vm1 = vcmp.eq.s32.totalorder %v1409_v62, 0  ;;  %vm1414_vm2 = vcmp.eq.s32.totalorder %v1409_v62, 2 }
 0x243   : > { %v1610_v52 = vsel %vm6450_vm7, %v1609_v6, %v6445_v41  ;;  %v1513_v63 = vand.u32 3, %v1512_v34  ;;  %v2230_v57 = vmul.f32 %v2229_v44, %v2227_v17  ;;  %vm1407_vm0 = vweird.f32 %v6432_v19 }
 0x244   : > { %v1413_v60 = vsel %vm1411_vm1, %v6444_v37, %v1412_v13  ;;  %v1416_v40 = vsel %vm1414_vm2, %v1415_v12, %v6443_v51  ;;  %v1612_v7 = vsel %vm5204_vm6, 0, %v1610_v52  ;;  %v1620_v38 = vxor.u32 2147483648, %v5338_v58 }
 0x245   : > { %v1616_v36 = vadd.s32 3, %v1612_v7  ;;  %v6451_v9 = vand.u32 2147483647, %v6436_v42  ;;  %v1713_v4 = vsub.s32 4, %v6454_v31  ;;  %v2231_v20 = vxor.u32 2147483648, %v2230_v57 }
 0x246   : > { %v1623_v3 = vxor.u32 2147483648, %v5330_v22  ;;  %v2359_v54 = vpack.c.bf16 %v4054_v30, %v4055_v56  ;;  %v1817_v53 = vsub.s32 4, %v6455_v39  ;;  %vm1410_vm15 = vcmp.lt.s32.totalorder %v1409_v62, 2  ;;  %v4058_v30 = vld [vmem:[%s4242_s25 + $0x60] sm:$0xff]  ;;  %v4059_v56 = vld [vmem:[%s4242_s25 + $0x68] sm:$0xff] }
 0x247   : > { %vm5878_vm5 = vcmp.le.f32.partialorder %v6451_v9, 0.7853982  ;;  %v1617_v32 = vand.u32 3, %v1616_v36  ;;  %v1714_v0 = vsel %vm1629_vm3, %v1713_v4, %v6454_v31  ;;  %v2232_v1 = vsel %vm6308_vm8, %v2231_v20, %v2230_v57  ;;  %v6459_v36 = vld [vmem:[#allocation34_spill] sm:$0xff]  ;;  %v4057_v20 = vld [vmem:[%s4242_s25 + $0x58] sm:$0xff] }
 0x248   : > { %v1715_v48 = vsel %vm5878_vm5, %v6436_v42, %v1712_v16  ;;  %v1716_v10 = vsel %vm5878_vm5, 0, %v1714_v0  ;;  %vm6456_vm7 = vcmask 269312   ;;  %v1417_v28 = vsel %vm1410_vm15, %v1413_v60, %v1416_v40  ;;  %v4056_v4 = vld [vmem:[%s4242_s25 + $0x50] sm:$0xff] }
 0x249   : > { %4034 = vcosq.f32 %v1715_v48  ;;  %3719 = vmatprep.mubr.msk.bf16.mxu1 %vm6456_vm7, %v2359_v54  ;;  %vm1514_vm1 = vcmp.lt.s32.totalorder %v1513_v63, 2  ;;  %vm1619_vm2 = vcmp.eq.s32.totalorder %v1617_v32, 0  ;;  %vm1622_vm4 = vcmp.eq.s32.totalorder %v1617_v32, 2  ;;  %v4025_v34 = vpop.eup %4024 }
 0x24a   : > { %4036 = vsinq.f32 %v1715_v48  ;;  %vm1515_vm6 = vcmp.eq.s32.totalorder %v1513_v63, 0  ;;  %v1621_v21 = vsel %vm1619_vm2, %v5330_v22, %v1620_v38  ;;  %v1624_v5 = vsel %vm1622_vm4, %v1623_v3, %v5338_v58  ;;  %v4027_v55 = vpop.eup %4026 }
 0x24b   : > { %v1720_v45 = vadd.s32 3, %v1716_v10  ;;  %v2235_v62 = vsel %vm5862_vm14, %v5478_v46, %v2232_v1  ;;  %vm1518_vm3 = vcmp.eq.s32.totalorder %v1513_v63, 2  ;;  %v1519_v51 = vxor.u32 2147483648, %v4025_v34  ;;  %v6467_v10 = vld [vmem:[#allocation13_spill] sm:$0xff] }
 0x24c   : > { %vm6457_vm5 = vcmp.lt.s32.totalorder %v4838_v47, 0  ;;  %v1516_v37 = vxor.u32 2147483648, %v4027_v55  ;;  %vm1618_vm15 = vcmp.lt.s32.totalorder %v1617_v32, 2  ;;  %v1418_v58 = vsel %vm1407_vm0, nan, %v1417_v28 }
 0x24d   : > { %v1818_v13 = vsel %vm6457_vm5, %v1817_v53, %v6455_v39  ;;  %v5908_v12 = vand.u32 3, %v1720_v45  ;;  %v1520_v6 = vsel %vm1518_vm3, %v1519_v51, %v4027_v55  ;;  %v1625_v16 = vsel %vm1618_vm15, %v1621_v21, %v1624_v5  ;;  %v5914_v44 = vpop.eup %4028  ;;  %v4060_v55 = vld [vmem:[%s4242_s25 + $0x70] sm:$0xff] }
 0x24e   : > { %v1820_v22 = vsel %vm5292_vm12, 0, %v1818_v13  ;;  %4038 = vcosq.f32 %v2235_v62  ;;  %v1517_v52 = vsel %vm1515_vm6, %v4025_v34, %v1516_v37  ;;  %v1828_v57 = vxor.u32 2147483648, %v5429_v35  ;;  %v5919_v40 = vpop.eup %4030  ;;  %v6468_v34 = vld [vmem:[#allocation17_spill] sm:$0xff] }
 0x24f   : > { %v1824_v17 = vadd.s32 3, %v1820_v22  ;;  %v1831_v60 = vxor.u32 2147483648, %v5423_v14  ;;  %4040 = vsinq.f32 %v2235_v62  ;;  %v1521_v19 = vsel %vm1514_vm1, %v1517_v52, %v1520_v6  ;;  %v5923_v9 = vpop.eup %4032  ;;  %v4061_v62 = vld [vmem:[%s4242_s25 + $0x78] sm:$0xff]  ;;  %s3470_s25 = sshll.u32 %s336_s26, 2 }
 0x250   : > { %v1921_v38 = vsub.s32 4, %v6459_v36  ;;  %vm6460_vm12 = vweird.f32 %v6427_v61  ;;  %vm6461_vm0 = vweird.f32 %v4776_v50  ;;  %vm1722_vm6 = vcmp.lt.s32.totalorder %v5908_v12, 2  ;;  %s338_s28 = scalar_lea.vmem [#allocation2], %s3470_s25 }
 0x251   : > { %v1825_v7 = vand.u32 3, %v1824_v17  ;;  %v1522_v27 = vsel %vm6460_vm12, nan, %v1521_v19  ;;  %v5929_v31 = vsel %vm6461_vm0, nan, %v1625_v16  ;;  %v2360_v63 = vpack.c.bf16 %v4057_v20, %v4056_v4  ;;  %s3407_s29 = sshll.u32 %s338_s28, 4  ;;  %s3408_s29 = int_to_ptr.vmem [resolvable:$true] %s3407_s29 }
 0x252   : > { %v2371_v3 = vpack.c.bf16 %v1522_v27, %v1418_v58  ;;  %vm1719_vm4 = vweird.f32 %v6436_v42  ;;  %vm1723_vm7 = vcmp.eq.s32.totalorder %v5908_v12, 0  ;;  %vm1823_vm3 = vweird.f32 %v4838_v47  ;;  %s4062_s22 = scalar_lea.vmem %s3408_s29, 64 }
 0x253   : > { %vm1827_vm1 = vcmp.eq.s32.totalorder %v1825_v7, 0  ;;  %vm1830_vm2 = vcmp.eq.s32.totalorder %v1825_v7, 2  ;;  %vm6462_vm5 = vcmp.lt.s32.totalorder %v4982_v59, 0  ;;  %vm6463_vm15 = vcmask 269312   ;;  %p4063_p11 = scmp.ne.s32.totalorder %s3408_s29, %s4062_s22 }
 0x254   : > { %v1829_v50 = vsel %vm1827_vm1, %v5423_v14, %v1828_v57  ;;  %v1832_v61 = vsel %vm1830_vm2, %v1831_v60, %v5429_v35  ;;  %v1922_v48 = vsel %vm6462_vm5, %v1921_v38, %v6459_v36  ;;  %3720 = vmatmul.mubr.msk.bf16.gmra.mxu1 %vm6463_vm15, %v2360_v63  ;;  %v2361_v54 = vpack.c.bf16 %v4059_v56, %v4058_v30  ;;  %v6466_v35 = vld [vmem:[#allocation12_spill] sm:$0xff]  ;;  %vm6469_vm1 = vmmov %vm6463_vm15 }
 0x255   : > { %vm6464_vm12 = vcmask 195584   ;;  %vm1726_vm0 = vcmp.eq.s32.totalorder %v5908_v12, 2  ;;  %vm1826_vm8 = vcmp.lt.s32.totalorder %v1825_v7, 2  ;;  %v1924_v14 = vsel %vm5319_vm10, 0, %v1922_v48  ;;  %p4064_p12 = pnand %p4063_p11, %p4226_p5 }
 0x256   : > { %3694 = vmatmul.mubr.msk.bf16.gmra.mxu0 %vm6464_vm12, %v2371_v3  ;;  %v2025_v0 = vsub.s32 4, %v6466_v35  ;;  %v4035_v39 = vpop.eup %4034  ;;  %v1833_v53 = vsel %vm1826_vm8, %v1829_v50, %v1832_v61  ;;  %v1928_v1 = vadd.s32 3, %v1924_v14  ;;  %v1932_v28 = vxor.u32 2147483648, %v6467_v10  ;;  %3723 = vmatprep.mubr.msk.bf16.mxu1 %vm6469_vm1, %v2361_v54  ;;  %vm6472_vm12 = vmmov %vm6469_vm1 }
 0x257   : > { %v1935_v21 = vxor.u32 2147483648, %v6468_v34  ;;  %v4037_v5 = vpop.eup %4036  ;;  %v1727_v45 = vxor.u32 2147483648, %v4035_v39  ;;  %v2362_v51 = vpack.c.bf16 %v4061_v62, %v4060_v55  ;;  %vm6470_vm2 = vcmp.lt.s32.totalorder %v5072_v11, 0  ;;  %p4065_p13 = pneg %p4064_p12 }
 0x258   : > { %v2026_v13 = vsel %vm6470_vm2, %v2025_v0, %v6466_v35  ;;  %v2129_v37 = vsub.s32 4, %v5628_v43  ;;  %v1724_v41 = vxor.u32 2147483648, %v4037_v5  ;;  %v1929_v22 = vand.u32 3, %v1928_v1 }
 0x259   : > { %v2028_v58 = vsel %vm5644_vm11, 0, %v2026_v13  ;;  %v2036_v6 = vxor.u32 2147483648, %v5841_v8  ;;  %v1728_v16 = vsel %vm1726_vm0, %v1727_v45, %v4037_v5  ;;  %v2039_v52 = vxor.u32 2147483648, %v5780_v33  ;;  %v3967_v13 = vld [vmem:[%s6211_s5 + $0x10] sm:$0xff]  }
 0x25a   : > { %v2032_v17 = vadd.s32 3, %v2028_v58  ;;  %vm6471_vm10 = vcmp.lt.s32.totalorder %v5421_v18, 0  ;;  %v1725_v60 = vsel %vm1723_vm7, %v4035_v39, %v1724_v41  ;;  %vm1930_vm8 = vcmp.lt.s32.totalorder %v1929_v22, 2 }
 0x25b   : > { %v2130_v57 = vsel %vm6471_vm10, %v2129_v37, %v5628_v43  ;;  %vm1931_vm5 = vcmp.eq.s32.totalorder %v1929_v22, 0  ;;  %vm1934_vm15 = vcmp.eq.s32.totalorder %v1929_v22, 2  ;;  %v1729_v24 = vsel %vm1722_vm6, %v1725_v60, %v1728_v16  ;;  %v4039_v4 = vpop.eup %4038 }
 0x25c   : > { %v1933_v19 = vsel %vm1931_vm5, %v6468_v34, %v1932_v28  ;;  %v1936_v7 = vsel %vm1934_vm15, %v1935_v21, %v6467_v10  ;;  %v2033_v36 = vand.u32 3, %v2032_v17  ;;  %v1730_v38 = vsel %vm1719_vm4, nan, %v1729_v24  ;;  %3724 = vmatmul.mubr.msk.bf16.gmra.mxu1 %vm6472_vm12, %v2362_v51  ;;  %v4041_v3 = vpop.eup %4040  ;;  %v6030_v17 = vld [vmem:[%s6209_s3] ss:$0 sm:$0xff] }
 0x25d   : > { %vm1927_vm11 = vweird.f32 %v4982_v59  ;;  %v1937_v43 = vsel %vm1930_vm8, %v1933_v19, %v1936_v7  ;;  %v2132_v27 = vsel %vm5789_vm9, 0, %v2130_v57  ;;  %v2372_v12 = vpack.c.bf16 %v1730_v38, %v5929_v31 }
 0x25e   : > { %v1834_v20 = vsel %vm1823_vm3, nan, %v1833_v53  ;;  %v1938_v63 = vsel %vm1927_vm11, nan, %v1937_v43  ;;  %vm2035_vm6 = vcmp.eq.s32.totalorder %v2033_v36, 0  ;;  %vm2038_vm4 = vcmp.eq.s32.totalorder %v2033_v36, 2 }
 0x25f   : > { %v2373_v50 = vpack.c.bf16 %v1938_v63, %v1834_v20  ;;  %v2037_v42 = vsel %vm2035_vm6, %v5780_v33, %v2036_v6  ;;  %v2136_v59 = vadd.s32 3, %v2132_v27  ;;  %vm6473_vm7 = vcmask 195584  }
 0x260   : > { %3697 = vmatprep.mubr.msk.bf16.mxu0 %vm6473_vm7, %v2372_v12  ;;  %v2040_v61 = vsel %vm2038_vm4, %v2039_v52, %v5841_v8  ;;  %v2140_v29 = vxor.u32 2147483648, %v5923_v9  ;;  %v2143_v48 = vxor.u32 2147483648, %v5919_v40  ;;  %v2233_v31 = vsub.s32 4, %v5751_v49  ;;  %vm6474_vm9 = vmmov %vm6473_vm7 }
 0x261   : > { %3698 = vmatmul.mubr.msk.bf16.gmra.mxu0 %vm6474_vm9, %v2373_v50  ;;  %vm2034_vm3 = vcmp.lt.s32.totalorder %v2033_v36, 2  ;;  %v2137_v47 = vand.u32 3, %v2136_v59  ;;  %v2337_v30 = vsub.s32 4, %v5551_v23  ;;  %vm2031_vm0 = vweird.f32 %v5072_v11  ;;  %vm6477_vm12 = vmmov %vm6473_vm7 }
 0x262   : > { %v2041_v33 = vsel %vm2034_vm3, %v2037_v42, %v2040_v61  ;;  %vm2135_vm1 = vweird.f32 %v5421_v18  ;;  %vm6475_vm2 = vcmp.lt.s32.totalorder %v5478_v46, 0  ;;  %vm6476_vm15 = vcmp.lt.s32.totalorder %v5409_v25, 0 }
 0x263   : > { %v2234_v8 = vsel %vm6475_vm2, %v2233_v31, %v5751_v49  ;;  %vm2138_vm10 = vcmp.lt.s32.totalorder %v2137_v47, 2  ;;  %vm2139_vm8 = vcmp.eq.s32.totalorder %v2137_v47, 0  ;;  %vm2142_vm5 = vcmp.eq.s32.totalorder %v2137_v47, 2 }
 0x264   : > { %v2236_v56 = vsel %vm5862_vm14, 0, %v2234_v8  ;;  %v2141_v54 = vsel %vm2139_vm8, %v5919_v40, %v2140_v29  ;;  %v2144_v32 = vsel %vm2142_vm5, %v2143_v48, %v5923_v9  ;;  %v2338_v35 = vsel %vm6476_vm15, %v2337_v30, %v5551_v23 }
 0x265   : > { %v2240_v14 = vadd.s32 3, %v2236_v56  ;;  %v2145_v18 = vsel %vm2138_vm10, %v2141_v54, %v2144_v32  ;;  %v2244_v0 = vxor.u32 2147483648, %v4041_v3  ;;  %v2247_v39 = vxor.u32 2147483648, %v4039_v4 }
 0x266   : > { %v2340_v49 = vsel %vm5709_vm13, 0, %v2338_v35  ;;  %v2042_v53 = vsel %vm2031_vm0, nan, %v2041_v33  ;;  %v2146_v15 = vsel %vm2135_vm1, nan, %v2145_v18  ;;  %v2348_v9 = vxor.u32 2147483648, %v5914_v44  ;;  %vm6478_vm0 = vmmov %vm6477_vm12 }
 0x267   : > { %v2241_v1 = vand.u32 3, %v2240_v14  ;;  %v2344_v10 = vadd.s32 3, %v2340_v49  ;;  %v2374_v40 = vpack.c.bf16 %v2146_v15, %v2042_v53  ;;  %v2351_v28 = vxor.u32 2147483648, %v5845_v26 }
 0x268   : > { %vm2239_vm13 = vweird.f32 %v5478_v46  ;;  %vm2343_vm3 = vweird.f32 %v5409_v25  ;;  %v3966_v46 = vld [vmem:[%s6211_s5 + $0x18] sm:$0xff]   ;;  %v3968_v25 = vld [vmem:[%s6211_s5 + $0x8] sm:$0xff]   ;;  %vm2741_vm1 = vcmask 523264   ;;  %vm4136_vm2 = vmmov 0  }
 0x269   : > { %vm2243_vm14 = vcmp.eq.s32.totalorder %v2241_v1, 0  ;;  %vm2246_vm11 = vcmp.eq.s32.totalorder %v2241_v1, 2  ;;  %v2345_v23 = vand.u32 3, %v2344_v10  ;;  %3701 = vmatprep.mubr.msk.bf16.mxu0 %vm6477_vm12, %v2374_v40  ;;  %vm2242_vm6 = vcmp.lt.s32.totalorder %v2241_v1, 2  ;;  %3727 = vmatprep.subr.bf16.mxu0 %v3966_v46 }
 0x26a   : > { %v2245_v34 = vsel %vm2243_vm14, %v4039_v4, %v2244_v0  ;;  %v2248_v2 = vsel %vm2246_vm11, %v2247_v39, %v4041_v3  ;;  %3728 = vmatpush3.bf16.msra.mxu0 %v3966_v46  ;;  %v3970_v46 = vld [vmem:[%s6211_s5 + $0x38] sm:$0xff]  }
 0x26b   : > { %v2249_v11 = vsel %vm2242_vm6, %v2245_v34, %v2248_v2  ;;  %vm2347_vm4 = vcmp.eq.s32.totalorder %v2345_v23, 0  ;;  %vm2350_vm7 = vcmp.eq.s32.totalorder %v2345_v23, 2  ;;  %vm2346_vm9 = vcmp.lt.s32.totalorder %v2345_v23, 2  ;;  %3729 = vmatprep.subr.bf16.mxu0 %v3967_v13  ;;  %3751 = vmatprep.subr.bf16.mxu1 %v3970_v46 }
 0x26c   : > { %v2250_v21 = vsel %vm2239_vm13, nan, %v2249_v11  ;;  %v2349_v5 = vsel %vm2347_vm4, %v5845_v26, %v2348_v9  ;;  %v2352_v45 = vsel %vm2350_vm7, %v2351_v28, %v5914_v44  ;;  %v3969_v26 = vld [vmem:[%s6211_s5] sm:$0xff]   ;;  %3752 = vmatpush3.bf16.msra.mxu1 %v3970_v46 }
 0x26d   : > { %v2353_v55 = vsel %vm2346_vm9, %v2349_v5, %v2352_v45 }
 0x26e   : > { %v2354_v62 = vsel %vm2343_vm3, nan, %v2353_v55  ;;  %3730 = vmatpush3.bf16.msra.mxu0 %v3967_v13 }
 0x26f   : > { %v2375_v51 = vpack.c.bf16 %v2354_v62, %v2250_v21  ;;  %3731 = vmatprep.subr.bf16.mxu0 %v3968_v25 }
 0x271   : > { %3702 = vmatmul.mubr.msk.bf16.gmra.mxu0 %vm6478_vm0, %v2375_v51 }
 0x272   : > { %3732 = vmatpush3.bf16.msra.mxu0 %v3968_v25 }
 0x273   : > { %3733 = vmatprep.subr.bf16.mxu0 %v3969_v26 }
 0x276   : > { %3734 = vmatpush3.bf16.msra.mxu0 %v3969_v26 }
 0x2e5   : > { %v3713_v44 = vpop.f32.mrf.mxu1 }
 0x2e7   : > { %v2594_v37 = vpop.f32.mrf.mxu1 }
 0x2e9   : > { %v3714_v22 = vpop.f32.mrf.mxu1 }
 0x2eb   : > { %v2597_v57 = vpop.f32.mrf.mxu1 }
 0x2f1   : > { %v3691_v41 = vpop.f32.mrf.mxu0 }
 0x2f2   : > { %v2603_v16 = vadd.f32 %v3713_v44, %v3691_v41 }
 0x2f3   : > { %v2451_v58 = vpop.f32.mrf.mxu0 }
 0x2f4   : > { %v2595_v6 = vadd.f32 %v2594_v37, %v2451_v58  ;;  %v2666_v38 = vadd.f32 %v6030_v17, %v2603_v16 }
 0x2f5   : > { %v3692_v52 = vpop.f32.mrf.mxu0 }
 0x2f6   : > { %v2664_v60 = vadd.f32 %v6030_v17, %v2595_v6  ;;  %v2606_v24 = vadd.f32 %v3714_v22, %v3692_v52  ;;  %v2682_v20 = vmax.f32 %v2666_v38, 0.0 }
 0x2f7   : > { %v2454_v19 = vpop.f32.mrf.mxu0 }
 0x2f8   : > { %v2667_v7 = vadd.f32 %v6030_v17, %v2606_v24  ;;  %v2598_v36 = vadd.f32 %v2597_v57, %v2454_v19  ;;  %2936 = vrot.lane.b32.xlu1 %v2664_v60, %s4134_s24  ;;  %v2680_v4 = vmax.f32 %v2664_v60, 0.0 }
 0x2fa   : > { %v2665_v43 = vadd.f32 %v6030_v17, %v2598_v36  ;;  %v2683_v27 = vmax.f32 %v2667_v7, 0.0 }
 0x2fc   : > { %v2681_v12 = vmax.f32 %v2665_v43, 0.0  ;;  %2938 = vrot.lane.b32.xlu0 %v2665_v43, %s4134_s24  ;;  %2940 = vrot.lane.b32.xlu1 %v2666_v38, %s4134_s24  ;;  %v2697_v3 = vpack.c.bf16 %v2683_v27, %v2682_v20 }
 0x2fe   : > { %v2696_v63 = vpack.c.bf16 %v2681_v12, %v2680_v4 }
 0x300   : > { %2942 = vrot.lane.b32.xlu0 %v2667_v7, %s4134_s24  ;;  %3735 = vmatprep.mubr.msk.bf16.mxu0 %vm2741_vm1, %v2696_v63 }
 0x301   : > { %3736 = vmatmul.mubr.msk.bf16.vlgmr.msra.gmra.mxu0 %vm2741_vm1, %v2697_v3  ;;  %v3717_v50 = vpop.f32.mrf.mxu1 }
 0x303   : > { %v2610_v42 = vpop.f32.mrf.mxu1 }
 0x305   : > { %v3718_v59 = vpop.f32.mrf.mxu1 }
 0x307   : > { %v2613_v29 = vpop.f32.mrf.mxu1 }
 0x314   : > { %v3721_v47 = vpop.f32.mrf.mxu1 }
 0x316   : > { %v3695_v61 = vpop.f32.mrf.mxu0  ;;  %v2626_v35 = vpop.f32.mrf.mxu1 }
 0x317   : > { %v2619_v30 = vadd.f32 %v3717_v50, %v3695_v61 }
 0x318   : > { %v2467_v48 = vpop.f32.mrf.mxu0  ;;  %v3722_v1 = vpop.f32.mrf.mxu1 }
 0x319   : > { %v2611_v31 = vadd.f32 %v2610_v42, %v2467_v48  ;;  %v2670_v18 = vadd.f32 %v6030_v17, %v2619_v30  ;;  %v3973_v48 = vld [vmem:[%s6211_s5 + $0x20] sm:$0xff]  }
 0x31a   : > { %v3696_v33 = vpop.f32.mrf.mxu0  ;;  %v2629_v11 = vpop.f32.mrf.mxu1 }
 0x31b   : > { %v2668_v8 = vadd.f32 %v6030_v17, %v2611_v31  ;;  %v2622_v56 = vadd.f32 %v3718_v59, %v3696_v33  ;;  %v2686_v10 = vmax.f32 %v2670_v18, 0.0  ;;  %v3974_v31 = vld [vmem:[%s6211_s5 + $0x58] sm:$0xff]   ;;  %v3559_v33 = vld [vmem:[%s6212_s6] ss:$0 sm:$0xff] }
 0x31c   : > { %v2470_v54 = vpop.f32.mrf.mxu0  ;;  %v3725_v25 = vpop.f32.mrf.mxu1  ;;  %3775 = vmatprep.subr.bf16.mxu0 %v3974_v31 }
 0x31d   : > { %v2671_v32 = vadd.f32 %v6030_v17, %v2622_v56  ;;  %v2614_v14 = vadd.f32 %v2613_v29, %v2470_v54  ;;  %2944 = vrot.lane.b32.xlu1 %v2668_v8, %s4134_s24  ;;  %v2684_v49 = vmax.f32 %v2668_v8, 0.0  ;;  %v3972_v29 = vld [vmem:[%s6211_s5 + $0x28] sm:$0xff]   ;;  %3776 = vmatpush3.bf16.msra.mxu0 %v3974_v31 }
 0x31e   : > { %v2642_v58 = vpop.f32.mrf.mxu1 }
 0x31f   : > { %v2669_v0 = vadd.f32 %v6030_v17, %v2614_v14  ;;  %v2687_v39 = vmax.f32 %v2671_v32, 0.0 }
 0x320   : > { %v3726_v52 = vpop.f32.mrf.mxu1 }
 0x321   : > { %v2685_v53 = vmax.f32 %v2669_v0, 0.0  ;;  %2946 = vrot.lane.b32.xlu0 %v2669_v0, %s4134_s24  ;;  %2948 = vrot.lane.b32.xlu1 %v2670_v18, %s4134_s24  ;;  %v3699_v15 = vpop.f32.mrf.mxu0  ;;  %v2699_v28 = vpack.c.bf16 %v2687_v39, %v2686_v10 }
 0x322   : > { %v2635_v34 = vadd.f32 %v3721_v47, %v3699_v15  ;;  %v2645_v38 = vpop.f32.mrf.mxu1 }
 0x323   : > { %v2698_v40 = vpack.c.bf16 %v2685_v53, %v2684_v49  ;;  %v2483_v9 = vpop.f32.mrf.mxu0 }
 0x324   : > { %v2627_v23 = vadd.f32 %v2626_v35, %v2483_v9  ;;  %v2674_v51 = vadd.f32 %v6030_v17, %v2635_v34 }
 0x325   : > { %2950 = vrot.lane.b32.xlu0 %v2671_v32, %s4134_s24  ;;  %3739 = vmatprep.mubr.msk.bf16.mxu0 %vm2741_vm1, %v2698_v40  ;;  %v3700_v2 = vpop.f32.mrf.mxu0 }
 0x326   : > { %3740 = vmatmul.mubr.msk.bf16.gmra.mxu0 %vm2741_vm1, %v2699_v28  ;;  %v2672_v21 = vadd.f32 %v6030_v17, %v2627_v23  ;;  %v2638_v5 = vadd.f32 %v3722_v1, %v3700_v2  ;;  %v2690_v41 = vmax.f32 %v2674_v51, 0.0 }
 0x327   : > { %v2486_v45 = vpop.f32.mrf.mxu0 }
 0x328   : > { %v2675_v55 = vadd.f32 %v6030_v17, %v2638_v5  ;;  %v2630_v62 = vadd.f32 %v2629_v11, %v2486_v45  ;;  %2952 = vrot.lane.b32.xlu1 %v2672_v21, %s4134_s24  ;;  %v2688_v44 = vmax.f32 %v2672_v21, 0.0 }
 0x32a   : > { %v2673_v13 = vadd.f32 %v6030_v17, %v2630_v62  ;;  %v2691_v26 = vmax.f32 %v2675_v55, 0.0 }
 0x32c   : > { %v2689_v37 = vmax.f32 %v2673_v13, 0.0  ;;  %2954 = vrot.lane.b32.xlu0 %v2673_v13, %s4134_s24  ;;  %2956 = vrot.lane.b32.xlu1 %v2674_v51, %s4134_s24  ;;  %v2701_v6 = vpack.c.bf16 %v2691_v26, %v2690_v41 }
 0x32e   : > { %v2700_v22 = vpack.c.bf16 %v2689_v37, %v2688_v44 }
 0x330   : > { %2958 = vrot.lane.b32.xlu0 %v2675_v55, %s4134_s24  ;;  %3743 = vmatprep.mubr.msk.bf16.mxu0 %vm2741_vm1, %v2700_v22 }
 0x331   : > { %v3703_v16 = vpop.f32.mrf.mxu0  ;;  %3744 = vmatmul.mubr.msk.bf16.gmra.mxu0 %vm2741_vm1, %v2701_v6 }
 0x332   : > { %v2651_v24 = vadd.f32 %v3725_v25, %v3703_v16 }
 0x333   : > { %v2499_v57 = vpop.f32.mrf.mxu0 }
 0x334   : > { %v2643_v60 = vadd.f32 %v2642_v58, %v2499_v57  ;;  %v2678_v12 = vadd.f32 %v6030_v17, %v2651_v24 }
 0x335   : > { %v3704_v19 = vpop.f32.mrf.mxu0 }
 0x336   : > { %v2676_v7 = vadd.f32 %v6030_v17, %v2643_v60  ;;  %v2654_v36 = vadd.f32 %v3726_v52, %v3704_v19  ;;  %v2694_v42 = vmax.f32 %v2678_v12, 0.0 }
 0x337   : > { %v2502_v43 = vpop.f32.mrf.mxu0 }
 0x338   : > { %v2679_v27 = vadd.f32 %v6030_v17, %v2654_v36  ;;  %v2646_v4 = vadd.f32 %v2645_v38, %v2502_v43  ;;  %2960 = vrot.lane.b32.xlu1 %v2676_v7, %s4134_s24  ;;  %v2692_v3 = vmax.f32 %v2676_v7, 0.0 }
 0x33a   : > { %v2677_v20 = vadd.f32 %v6030_v17, %v2646_v4  ;;  %v2695_v63 = vmax.f32 %v2679_v27, 0.0  ;;  %v3971_v17 = vld [vmem:[%s6211_s5 + $0x30] sm:$0xff]  }
 0x33b   : > { %3753 = vmatprep.subr.bf16.mxu1 %v3971_v17 }
 0x33c   : > { %v2693_v50 = vmax.f32 %v2677_v20, 0.0  ;;  %2962 = vrot.lane.b32.xlu0 %v2677_v20, %s4134_s24  ;;  %2964 = vrot.lane.b32.xlu1 %v2678_v12, %s4134_s24  ;;  %v2703_v61 = vpack.c.bf16 %v2695_v63, %v2694_v42  ;;  %v3975_v42 = vld [vmem:[%s6211_s5 + $0x50] sm:$0xff]  }
 0x33d   : > { %3754 = vmatpush3.bf16.msra.mxu1 %v3971_v17  ;;  %3777 = vmatprep.subr.bf16.mxu0 %v3975_v42 }
 0x33e   : > { %v2702_v59 = vpack.c.bf16 %v2693_v50, %v2692_v3  ;;  %3755 = vmatprep.subr.bf16.mxu1 %v3972_v29  ;;  %3778 = vmatpush3.bf16.msra.mxu0 %v3975_v42 }
 0x340   : > { %2966 = vrot.lane.b32.xlu0 %v2679_v27, %s4134_s24  ;;  %3747 = vmatprep.mubr.msk.bf16.mxu0 %vm2741_vm1, %v2702_v59  ;;  %v3976_v59 = vld [vmem:[%s6211_s5 + $0x48] sm:$0xff]   ;;  %s4066_s24 = sshll.u32 %s4137_s23, 4  ;;  %s4067_s24 = int_to_ptr.vmem [resolvable:$false] %s4066_s24 }
 0x341   : > { %3748 = vmatmul.mubr.msk.bf16.gmra.mxu0 %vm2741_vm1, %v2703_v61  ;;  %3756 = vmatpush3.bf16.msra.mxu1 %v3972_v29  ;;  %v3977_v61 = vld [vmem:[%s6211_s5 + $0x40] sm:$0xff]   ;;  %s4068_s13 = scalar_lea.vmem %s4067_s24, 128  ;;  %p4069_p0 = scmp.lt.s32.totalorder %s3408_s29, %s4067_s24 }
 0x342   : > { %3757 = vmatprep.subr.bf16.mxu1 %v3973_v48  ;;  %3779 = vmatprep.subr.bf16.mxu0 %v3976_v59  ;;  %p4070_p1 = scmp.lt.s32.totalorder %s4068_s13, %s4062_s22 }
 0x343   : > { %3780 = vmatpush3.bf16.msra.mxu0 %v3976_v59 }
 0x344   : > { %3781 = vmatprep.subr.bf16.mxu0 %v3977_v61  ;;  %p4071_p2 = por %p4070_p1, %p4069_p0 }
 0x345   : > { %3758 = vmatpush3.bf16.msra.mxu1 %v3973_v48 }
 0x346   : > { %p4072_p3 = pnand %p4071_p2, %p4065_p13 }
 0x347   : > { %3782 = vmatpush3.bf16.msra.mxu0 %v3977_v61 }
 0x36a   : > { %v2937_v29 = vpop.permute.xlu1 %2936 }
 0x36e   : > { %v2939_v17 = vpop.permute.xlu0 %2938 }
 0x3c1   : > { %v3737_v47 = vpop.f32.mrf.mxu0 }
 0x3c2   : > { %v2809_v32 = vadd.f32 %v3737_v47, %v3559_v33  ;;  %v2943_v47 = vpop.permute.xlu0 %2942 }
 0x3c3   : > { %v2800_v30 = vpop.f32.mrf.mxu0 }
 0x3c4   : > { %v2801_v56 = vadd.f32 %v3559_v33, %v2800_v30  ;;  %v2865_v49 = vmax.f32 %v2809_v32, 0.0 }
 0x3c5   : > { %v3738_v8 = vpop.f32.mrf.mxu0 }
 0x3c6   : > { %v2812_v54 = vadd.f32 %v3738_v8, %v3559_v33  ;;  %v2863_v0 = vmax.f32 %v2801_v56, 0.0 }
 0x3c7   : > { %v2803_v14 = vpop.f32.mrf.mxu0 }
 0x3c8   : > { %v2804_v35 = vadd.f32 %v3559_v33, %v2803_v14  ;;  %v2866_v18 = vmax.f32 %v2812_v54, 0.0 }
 0x3ca   : > { %v2864_v39 = vmax.f32 %v2804_v35, 0.0  ;;  %v2880_v15 = vpack.c.bf16 %v2866_v18, %v2865_v49 }
 0x3cc   : > { %v2879_v53 = vpack.c.bf16 %v2864_v39, %v2863_v0 }
 0x3ce   : > { %3759 = vmatprep.mubr.msk.bf16.mxu1 %vm2741_vm1, %v2879_v53 }
 0x3cf   : > { %3760 = vmatmul.mubr.msk.bf16.vlgmr.msra.gmra.mxu1 %vm2741_vm1, %v2880_v15  ;;  %v2947_v15 = vpop.permute.xlu0 %2946 }
 0x3e6   : > { %v3741_v1 = vpop.f32.mrf.mxu0 }
 0x3e7   : > { %v2825_v23 = vadd.f32 %v3741_v1, %v3559_v33 }
 0x3e8   : > { %v2816_v10 = vpop.f32.mrf.mxu0 }
 0x3e9   : > { %v2817_v9 = vadd.f32 %v3559_v33, %v2816_v10  ;;  %v2869_v45 = vmax.f32 %v2825_v23, 0.0 }
 0x3ea   : > { %v3742_v40 = vpop.f32.mrf.mxu0 }
 0x3eb   : > { %v2828_v28 = vadd.f32 %v3742_v40, %v3559_v33  ;;  %v2867_v21 = vmax.f32 %v2817_v9, 0.0  ;;  %v2951_v9 = vpop.permute.xlu0 %2950 }
 0x3ec   : > { %v2819_v34 = vpop.f32.mrf.mxu0 }
 0x3ed   : > { %v2820_v2 = vadd.f32 %v3559_v33, %v2819_v34  ;;  %v2870_v11 = vmax.f32 %v2828_v28, 0.0 }
 0x3ef   : > { %v2868_v5 = vmax.f32 %v2820_v2, 0.0  ;;  %v2882_v51 = vpack.c.bf16 %v2870_v11, %v2869_v45 }
 0x3f1   : > { %v2881_v55 = vpack.c.bf16 %v2868_v5, %v2867_v21  ;;  %v3745_v62 = vpop.f32.mrf.mxu0 }
 0x3f2   : > { %v2841_v44 = vadd.f32 %v3745_v62, %v3559_v33 }
 0x3f3   : > { %3763 = vmatprep.mubr.msk.bf16.mxu1 %vm2741_vm1, %v2881_v55  ;;  %v2832_v46 = vpop.f32.mrf.mxu0  ;;  %v2955_v55 = vpop.permute.xlu0 %2954 }
 0x3f4   : > { %3764 = vmatmul.mubr.msk.bf16.gmra.mxu1 %vm2741_vm1, %v2882_v51  ;;  %v2833_v25 = vadd.f32 %v3559_v33, %v2832_v46  ;;  %v2873_v16 = vmax.f32 %v2841_v44, 0.0 }
 0x3f5   : > { %v3746_v13 = vpop.f32.mrf.mxu0 }
 0x3f6   : > { %v2844_v26 = vadd.f32 %v3746_v13, %v3559_v33  ;;  %v2871_v58 = vmax.f32 %v2833_v25, 0.0 }
 0x3f7   : > { %v2835_v37 = vpop.f32.mrf.mxu0 }
 0x3f8   : > { %v2836_v41 = vadd.f32 %v3559_v33, %v2835_v37  ;;  %v2874_v22 = vmax.f32 %v2844_v26, 0.0 }
 0x3fa   : > { %v2872_v6 = vmax.f32 %v2836_v41, 0.0  ;;  %v2884_v57 = vpack.c.bf16 %v2874_v22, %v2873_v16  ;;  %v2959_v41 = vpop.permute.xlu0 %2958 }
 0x3fc   : > { %v2883_v52 = vpack.c.bf16 %v2872_v6, %v2871_v58 }
 0x3fe   : > { %3767 = vmatprep.mubr.msk.bf16.mxu1 %vm2741_vm1, %v2883_v52 }
 0x3ff   : > { %3768 = vmatmul.mubr.msk.bf16.gmra.mxu1 %vm2741_vm1, %v2884_v57 }
 0x401   : > { %v3749_v60 = vpop.f32.mrf.mxu0 }
 0x402   : > { %v2857_v38 = vadd.f32 %v3749_v60, %v3559_v33 }
 0x403   : > { %v2848_v24 = vpop.f32.mrf.mxu0 }
 0x404   : > { %v2849_v7 = vadd.f32 %v3559_v33, %v2848_v24  ;;  %v2877_v63 = vmax.f32 %v2857_v38, 0.0 }
 0x405   : > { %v3750_v19 = vpop.f32.mrf.mxu0 }
 0x406   : > { %v2860_v36 = vadd.f32 %v3750_v19, %v3559_v33  ;;  %v2875_v12 = vmax.f32 %v2849_v7, 0.0 }
 0x407   : > { %v2851_v43 = vpop.f32.mrf.mxu0 }
 0x408   : > { %v2852_v27 = vadd.f32 %v3559_v33, %v2851_v43  ;;  %v2878_v4 = vmax.f32 %v2860_v36, 0.0  ;;  %v2941_v33 = vpop.permute.xlu1 %2940 }
 0x40a   : > { %v2876_v20 = vmax.f32 %v2852_v27, 0.0  ;;  %v2886_v50 = vpack.c.bf16 %v2878_v4, %v2877_v63  ;;  %v2963_v27 = vpop.permute.xlu0 %2962 }
 0x40c   : > { %v2885_v3 = vpack.c.bf16 %v2876_v20, %v2875_v12  ;;  %v2945_v1 = vpop.permute.xlu1 %2944 }
 0x40e   : > { %3771 = vmatprep.mubr.msk.bf16.mxu1 %vm2741_vm1, %v2885_v3  ;;  %v2967_v63 = vpop.permute.xlu0 %2966 }
 0x40f   : > { %3772 = vmatmul.mubr.msk.bf16.gmra.mxu1 %vm2741_vm1, %v2886_v50 }
 0x410   : > { %v2949_v23 = vpop.permute.xlu1 %2948 }
 0x414   : > { %v2953_v46 = vpop.permute.xlu1 %2952 }
 0x418   : > { %v2957_v58 = vpop.permute.xlu1 %2956 }
 0x41c   : > { %v2961_v4 = vpop.permute.xlu1 %2960 }
 0x420   : > { %v2965_v50 = vpop.permute.xlu1 %2964 }
 0x48f   : > { %v3761_v48 = vpop.f32.mrf.mxu1 }
 0x490   : > { %v3051_v54 = vadd.f32 %v3761_v48, %v2941_v33 }
 0x491   : > { %v3042_v31 = vpop.f32.mrf.mxu1 }
 0x492   : > { %v3043_v8 = vadd.f32 %v3042_v31, %v2937_v29  ;;  %v3107_v39 = vmax.f32 %v3051_v54, 0.0 }
 0x493   : > { %v3762_v30 = vpop.f32.mrf.mxu1 }
 0x494   : > { %v3054_v56 = vadd.f32 %v3762_v30, %v2943_v47  ;;  %v3105_v18 = vmax.f32 %v3043_v8, 0.0 }
 0x495   : > { %v3045_v32 = vpop.f32.mrf.mxu1 }
 0x496   : > { %v3046_v14 = vadd.f32 %v3045_v32, %v2939_v17  ;;  %v3108_v35 = vmax.f32 %v3054_v56, 0.0  ;;  %v4135_v56 = vmov 0.0   ;;  %v6120_v32 = vld [vmem:[%s6212_s6 + $0x1] ss:$0 sm:$0xff] }
 0x497   : > { %3799 = vmatprep.subr.bf16.mxu1 %v4135_v56  ;;  %3815 = vmatprep.mubr.msk.bf16.mxu1 %vm4136_vm2, %v4135_v56 }
 0x498   : > { %v3106_v0 = vmax.f32 %v3046_v14, 0.0  ;;  %v3122_v53 = vpack.c.bf16 %v3108_v35, %v3107_v39 }
 0x49a   : > { %v3121_v49 = vpack.c.bf16 %v3106_v0, %v3105_v18  ;;  %v3313_v0 = vld [vmem:[%s6214_s8] sm:$0x7] }
 0x49b   : > { %3316 = vperm.xlu1 %3959, %v3313_v0  }
 0x49c   : > { %3783 = vmatprep.mubr.msk.bf16.mxu0 %vm2741_vm1, %v3121_v49 }
 0x49d   : > { %3784 = vmatmul.mubr.msk.bf16.vlgmr.msra.gmra.mxu0 %vm2741_vm1, %v3122_v53 }
 0x4b4   : > { %v3765_v10 = vpop.f32.mrf.mxu1 }
 0x4b5   : > { %v3067_v11 = vadd.f32 %v3765_v10, %v2949_v23 }
 0x4b6   : > { %v3058_v40 = vpop.f32.mrf.mxu1 }
 0x4b7   : > { %v3059_v34 = vadd.f32 %v3058_v40, %v2945_v1  ;;  %v3111_v13 = vmax.f32 %v3067_v11, 0.0 }
 0x4b8   : > { %v3766_v28 = vpop.f32.mrf.mxu1 }
 0x4b9   : > { %v3070_v2 = vadd.f32 %v3766_v28, %v2951_v9  ;;  %v3109_v62 = vmax.f32 %v3059_v34, 0.0 }
 0x4ba   : > { %v3061_v21 = vpop.f32.mrf.mxu1 }
 0x4bb   : > { %v3062_v5 = vadd.f32 %v3061_v21, %v2947_v15  ;;  %v3112_v45 = vmax.f32 %v3070_v2, 0.0 }
 0x4bd   : > { %v3110_v51 = vmax.f32 %v3062_v5, 0.0  ;;  %v3124_v44 = vpack.c.bf16 %v3112_v45, %v3111_v13 }
 0x4bf   : > { %v3123_v25 = vpack.c.bf16 %v3110_v51, %v3109_v62  ;;  %v3769_v26 = vpop.f32.mrf.mxu1 }
 0x4c0   : > { %v3083_v52 = vadd.f32 %v3769_v26, %v2957_v58 }
 0x4c1   : > { %3787 = vmatprep.mubr.msk.bf16.mxu0 %vm2741_vm1, %v3123_v25  ;;  %v3074_v37 = vpop.f32.mrf.mxu1 }
 0x4c2   : > { %3788 = vmatmul.mubr.msk.bf16.gmra.mxu0 %vm2741_vm1, %v3124_v44  ;;  %v3075_v6 = vadd.f32 %v3074_v37, %v2953_v46  ;;  %v3115_v36 = vmax.f32 %v3083_v52, 0.0 }
 0x4c3   : > { %v3770_v22 = vpop.f32.mrf.mxu1 }
 0x4c4   : > { %v3086_v16 = vadd.f32 %v3770_v22, %v2959_v41  ;;  %v3113_v19 = vmax.f32 %v3075_v6, 0.0 }
 0x4c5   : > { %v3077_v57 = vpop.f32.mrf.mxu1 }
 0x4c6   : > { %v3078_v60 = vadd.f32 %v3077_v57, %v2955_v55  ;;  %v3116_v24 = vmax.f32 %v3086_v16, 0.0 }
 0x4c8   : > { %v3114_v7 = vmax.f32 %v3078_v60, 0.0  ;;  %v3126_v43 = vpack.c.bf16 %v3116_v24, %v3115_v36 }
 0x4ca   : > { %v3125_v38 = vpack.c.bf16 %v3114_v7, %v3113_v19 }
 0x4cc   : > { %3791 = vmatprep.mubr.msk.bf16.mxu0 %vm2741_vm1, %v3125_v38 }
 0x4cd   : > { %3792 = vmatmul.mubr.msk.bf16.gmra.mxu0 %vm2741_vm1, %v3126_v43 }
 0x4cf   : > { %v3773_v12 = vpop.f32.mrf.mxu1 }
 0x4d0   : > { %v3099_v61 = vadd.f32 %v3773_v12, %v2965_v50 }
 0x4d1   : > { %v3090_v20 = vpop.f32.mrf.mxu1 }
 0x4d2   : > { %v3091_v42 = vadd.f32 %v3090_v20, %v2961_v4  ;;  %v3119_v30 = vmax.f32 %v3099_v61, 0.0 }
 0x4d3   : > { %v3774_v3 = vpop.f32.mrf.mxu1 }
 0x4d4   : > { %v3102_v59 = vadd.f32 %v3774_v3, %v2967_v63  ;;  %v3117_v31 = vmax.f32 %v3091_v42, 0.0 }
 0x4d5   : > { %v3093_v17 = vpop.f32.mrf.mxu1 }
 0x4d6   : > { %v3094_v29 = vadd.f32 %v3093_v17, %v2963_v27  ;;  %v3120_v48 = vmax.f32 %v3102_v59, 0.0 }
 0x4d8   : > { %v3118_v47 = vmax.f32 %v3094_v29, 0.0  ;;  %v3128_v8 = vpack.c.bf16 %v3120_v48, %v3119_v30 }
 0x4da   : > { %v3127_v33 = vpack.c.bf16 %v3118_v47, %v3117_v31 }
 0x4dc   : > { %3795 = vmatprep.mubr.msk.bf16.mxu0 %vm2741_vm1, %v3127_v33 }
 0x4dd   : > { %3796 = vmatmul.mubr.msk.bf16.gmra.mxu0 %vm2741_vm1, %v3128_v8 }
 0x55d   : > { %v3785_v54 = vpop.f32.mrf.mxu0 }
 0x55e   : > { %v3234_v35 = vadd.f32 %v3785_v54, %v6120_v32 }
 0x55f   : > { %v3225_v14 = vpop.f32.mrf.mxu0 }
 0x560   : > { %v3226_v39 = vadd.f32 %v6120_v32, %v3225_v14  ;;  %v3290_v15 = vmax.f32 %v3234_v35, 0.0  ;;  %v3304_v35 = vld [vmem:[%s6213_s7] sm:$0x3] }
 0x561   : > { %v3786_v18 = vpop.f32.mrf.mxu0 }
 0x562   : > { %v3237_v49 = vadd.f32 %v3786_v18, %v6120_v32  ;;  %v3288_v40 = vmax.f32 %v3226_v39, 0.0  ;;  %v3317_v18 = vpop.permute.xlu1 %3316 }
 0x563   : > { %v3228_v53 = vpop.f32.mrf.mxu0 }
 0x564   : > { %v3291_v1 = vmax.f32 %v3237_v49, 0.0  ;;  %v3229_v10 = vadd.f32 %v6120_v32, %v3228_v53 }
 0x566   : > { %v6129_v9 = vpack.c.bf16 %v3291_v1, %v3290_v15  ;;  %v3289_v28 = vmax.f32 %v3229_v10, 0.0 }
 0x568   : > { %v6131_v23 = vpack.c.bf16 %v3289_v28, %v3288_v40  ;;  %v3326_v14 = vsel %vm2741_vm1, %v6129_v9, 0 }
 0x582   : > { %v3789_v34 = vpop.f32.mrf.mxu0 }
 0x583   : > { %v3250_v42 = vadd.f32 %v3789_v34, %v6120_v32 }
 0x584   : > { %v3241_v2 = vpop.f32.mrf.mxu0 }
 0x585   : > { %v3294_v17 = vmax.f32 %v3250_v42, 0.0  ;;  %v3242_v31 = vadd.f32 %v6120_v32, %v3241_v2 }
 0x586   : > { %v3790_v11 = vpop.f32.mrf.mxu0 }
 0x587   : > { %v3253_v3 = vadd.f32 %v3790_v11, %v6120_v32  ;;  %v3292_v33 = vmax.f32 %v3242_v31, 0.0 }
 0x588   : > { %v3244_v21 = vpop.f32.mrf.mxu0 }
 0x589   : > { %v3295_v59 = vmax.f32 %v3253_v3, 0.0  ;;  %v3245_v48 = vadd.f32 %v6120_v32, %v3244_v21 }
 0x58b   : > { %v3308_v29 = vpack.c.bf16 %v3295_v59, %v3294_v17  ;;  %v3293_v47 = vmax.f32 %v3245_v48, 0.0 }
 0x58d   : > { %v3793_v5 = vpop.f32.mrf.mxu0  ;;  %v3332_v30 = vsel %vm2741_vm1, %v3308_v29, 0  ;;  %v3307_v8 = vpack.c.bf16 %v3293_v47, %v3292_v33 }
 0x58e   : > { %v3266_v19 = vadd.f32 %v3793_v5, %v6120_v32 }
 0x58f   : > { %v3257_v45 = vpop.f32.mrf.mxu0  ;;  %v3329_v54 = vsel %vm2741_vm1, %v3307_v8, 0 }
 0x590   : > { %v3298_v38 = vmax.f32 %v3266_v19, 0.0  ;;  %v3258_v4 = vadd.f32 %v6120_v32, %v3257_v45 }
 0x591   : > { %v3794_v55 = vpop.f32.mrf.mxu0 }
 0x592   : > { %v3269_v60 = vadd.f32 %v3794_v55, %v6120_v32  ;;  %v3296_v63 = vmax.f32 %v3258_v4, 0.0 }
 0x593   : > { %v3260_v62 = vpop.f32.mrf.mxu0 }
 0x594   : > { %v3299_v7 = vmax.f32 %v3269_v60, 0.0  ;;  %v3261_v27 = vadd.f32 %v6120_v32, %v3260_v62 }
 0x596   : > { %v3310_v43 = vpack.c.bf16 %v3299_v7, %v3298_v38  ;;  %v3297_v12 = vmax.f32 %v3261_v27, 0.0 }
 0x598   : > { %v3338_v20 = vsel %vm2741_vm1, %v3310_v43, 0  ;;  %v3309_v50 = vpack.c.bf16 %v3297_v12, %v3296_v63 }
 0x59a   : > { %v3335_v61 = vsel %vm2741_vm1, %v3309_v50, 0 }
 0x59d   : > { %v3797_v51 = vpop.f32.mrf.mxu0 }
 0x59e   : > { %v3282_v13 = vadd.f32 %v3797_v51, %v6120_v32 }
 0x59f   : > { %v3273_v46 = vpop.f32.mrf.mxu0 }
 0x5a0   : > { %v3302_v37 = vmax.f32 %v3282_v13, 0.0  ;;  %v3274_v58 = vadd.f32 %v6120_v32, %v3273_v46 }
 0x5a1   : > { %v3798_v25 = vpop.f32.mrf.mxu0 }
 0x5a2   : > { %v3285_v26 = vadd.f32 %v3798_v25, %v6120_v32  ;;  %v3300_v57 = vmax.f32 %v3274_v58, 0.0 }
 0x5a3   : > { %v3276_v44 = vpop.f32.mrf.mxu0 }
 0x5a4   : > { %v3303_v41 = vmax.f32 %v3285_v26, 0.0  ;;  %v3277_v22 = vadd.f32 %v6120_v32, %v3276_v44  ;;  %v3323_v32 = vsel %vm2741_vm1, %v6131_v23, 0 }
 0x5a6   : > { %v3312_v6 = vpack.c.bf16 %v3303_v41, %v3302_v37  ;;  %v3301_v16 = vmax.f32 %v3277_v22, 0.0 }
 0x5a8   : > { %v3344_v52 = vsel %vm2741_vm1, %v3312_v6, 0  ;;  %v3311_v24 = vpack.c.bf16 %v3301_v16, %v3300_v57 }
 0x5a9   : > { %3800 = vmatpush3.bf16.xpose.msra.mxu1 %v3344_v52 }
 0x5aa   : > { %3801 = vmatprep.subr.bf16.mxu1 %v4135_v56  ;;  %v3341_v36 = vsel %vm2741_vm1, %v3311_v24, 0 }
 0x5b1   : > { %3802 = vmatpush3.bf16.xpose.msra.mxu1 %v3341_v36 }
 0x5b2   : > { %3803 = vmatprep.subr.bf16.mxu1 %v4135_v56 }
 0x5b9   : > { %3804 = vmatpush3.bf16.xpose.msra.mxu1 %v3338_v20 }
 0x5ba   : > { %3805 = vmatprep.subr.bf16.mxu1 %v4135_v56 }
 0x5c1   : > { %3806 = vmatpush3.bf16.xpose.msra.mxu1 %v3335_v61 }
 0x5c2   : > { %3807 = vmatprep.subr.bf16.mxu1 %v4135_v56 }
 0x5c9   : > { %3808 = vmatpush3.bf16.xpose.msra.mxu1 %v3332_v30 }
 0x5ca   : > { %3809 = vmatprep.subr.bf16.mxu1 %v4135_v56 }
 0x5d1   : > { %3810 = vmatpush3.bf16.xpose.msra.mxu1 %v3329_v54 }
 0x5d2   : > { %3811 = vmatprep.subr.bf16.mxu1 %v4135_v56 }
 0x5d9   : > { %3812 = vmatpush3.bf16.xpose.msra.mxu1 %v3326_v14 }
 0x5da   : > { %3813 = vmatprep.subr.bf16.mxu1 %v4135_v56 }
 0x5e1   : > { %3814 = vmatpush3.bf16.xpose.msra.mxu1 %v3323_v32 }
 0x5e8   : > { %3816 = vmatmul.mubr.msk.bf16.vlgmr.msra.gmra.mxu1 %vm2741_vm1, %v3304_v35 }
 0x6a8   : > { %v3380_v0 = vpop.f32.mrf.mxu1 }
 0x6a9   : > { %v3381_v39 = vadd.f32 %v3380_v0, %v3317_v18 }
 0x6aa   : > { %v3817_v49 = vpop.f32.mrf.mxu1 }
 0x6ab   : > { %v3614_v53 = vmul.f32 -1.442695, %v3381_v39 }
 0x6ac   : > { %v3383_v15 = vpop.f32.mrf.mxu1 }
 0x6ad   : > { %4042 = vpow2.f32 %v3614_v53 }
 0x6ae   : > { %v3818_v56 = vpop.f32.mrf.mxu1 }
 0x6ba   : > { %v4043_v1 = vpop.eup %4042 }
 0x6bb   : > { %v3389_v10 = vadd.f32 1.0, %v4043_v1 }
 0x6bd   : > { %4044 = vrcp.f32 %v3389_v10 }
 0x6ca   : > { %v4045_v40 = vpop.eup %4044 }
 0x6cb   : > { %3392 = vst [vmem:[%s338_s28] sm:$0x7] %v4045_v40 }
 0x6cc   : > { %4075 = shalt.err (!%p4072_p3)
}
 0x6cd   : > { %s4076_s25 = scalar_lea.hbm %s6171_s17, 64  ;;  %s4080_s28 = scalar_lea.hbm %s6215_s9, 128 }
 0x6ce   : > { %p4077_p4 = scmp.ne.s32.totalorder %s6171_s17, %s4076_s25  ;;  %p4081_p9 = scmp.lt.s32.totalorder %s6171_s17, %s6215_s9 }
 0x6cf   : > { %p4082_p10 = scmp.lt.s32.totalorder %s4080_s28, %s4076_s25 }
 0x6d0   : > { %p4078_p7 = pnand %p4077_p4, %p4226_p5 }
 0x6d1   : > { %p4083_p11 = por %p4082_p10, %p4081_p9 }
 0x6d2   : > { %p4079_p8 = pneg %p4078_p7 }
 0x6d4   : > { %p4084_p12 = pnand %p4083_p11, %p4079_p8 }
 0x6d6   : > { %4087 = shalt.err (!%p4084_p12)
}
 0x6d7   : > { %3884 = dma.vmem_to_hbm [thread:$0]  (%p4226_p5), %s3408_s29, 64, %s6171_s17, %s3394_s21  }
 0x6d8 PF: > { %p3890_p13 = scmp.ge.s32.totalorder %s4122_s12, 2  ;;  %s3419_s22 = sand.u32 1, %s4110_s30  }
 0x6d9   : > { %s3420_s23 = scalar_lea.sflag [#allocation3], %s3419_s22 }
 0x6da   : > { %p3887_p0 = pnand %p3890_p13, %p4230_p6 }
 0x6dc   : > { %p3888_p1 = pneg %p3887_p0 }
 0x6de   : > { %4105 = dma.done.wait (%p3888_p1), %s3420_s23, 64  }
 0x6df   : > { %4107 = vsyncadd (%p3888_p1), %s3420_s23, 4294967232  ;;  %p19_p2 = scmp.ge.s32.totalorder %s4213_s15, 4   ;;  %s6479_s30 = smov %s4114_s10 }
 0x6e0   : > { %s6480_s10 = smov %s4118_s11  ;;  %s6481_s11 = smov %s4224_s18 }
 0x6e1   : > { %s6482_s12 = smov %s4213_s15  ;;  %21 = sbr.rel (!%p19_p2) target bundleno = 3 (0x3), region = 93 }
 0x6e6   :  { %3425 = vsyncpa [#allocation3], 1 }
 0x6e7   :  { %3427 = vsyncpa [#allocation3 + $0x1], 1 }

</bundles_post_ra>
